<compile_context>
chip_gen: v7x
topology: tpu7x:2x2x1
jax: 0.10.0
libtpu: 0.0.40
codegen_flags: <defaults>
</compile_context>

<pallas_src>
import jax
import jax.numpy as jnp
from jax.experimental import pallas as pl
from jax.experimental.pallas import tpu as pltpu

BETA = 0.95       # snn.Leaky(beta=0.95)
THRESHOLD = 1.0   # snntorch default threshold, reset_mechanism="subtract"


# ---------------------------------------------------------------------------
# LIF update (shared by all kernels).  snntorch Leaky, reset_delay=True:
#   reset  = H(mem_prev - thr)           (strict >, based on previous membrane)
#   mem    = beta*mem_prev + cur - reset*thr
#   spk    = H(mem - thr)                (strict >)
# fast_sigmoid surrogate only changes backward; forward is Heaviside.
# ---------------------------------------------------------------------------
def _lif(cur, mem_prev):
    reset = (mem_prev > THRESHOLD).astype(jnp.float32)
    mem_new = BETA * mem_prev + cur - reset * THRESHOLD
    spk = (mem_new > THRESHOLD).astype(jnp.float32)
    return spk, mem_new


# ---------------------------------------------------------------------------
# Pallas kernels — each runs with grid=(T,), membranes live in VMEM scratch.
# ---------------------------------------------------------------------------
def _conv1_lif_kernel(colsT_ref, w_ref, b_ref, spk_ref, mem_ref):
    # colsT_ref: (9, M1) bf16 im2col of this timestep, transposed so M1 is the
    # lane dim (lane-dense LIF + store).  w_ref: (16, 9) bf16, b_ref: (16, 1) f32.
    # mem_ref: (16, M1) f32 scratch, persists across the T grid steps.
    @pl.when(pl.program_id(0) == 0)
    def _init():
        mem_ref[...] = jnp.zeros_like(mem_ref)

    cur = jnp.dot(w_ref[...], colsT_ref[...],
                  preferred_element_type=jnp.float32) + b_ref[...]
    spk, mem_new = _lif(cur, mem_ref[...])
    mem_ref[...] = mem_new
    spk_ref[...] = spk.astype(spk_ref.dtype)


def _conv_pool_lif_kernel(cols_ref, w_ref, b_ref, spk_ref, mem_ref):
    # cols_ref: (4*Mp, K) bf16 — the 4 pool-neighbours of every pooled output
    # row stacked as row blocks.  One matmul, then max over the 4 blocks.
    # pool(conv) + b = max_n(conv_n) + b   (bias is per-channel, commutes).
    @pl.when(pl.program_id(0) == 0)
    def _init():
        mem_ref[...] = jnp.zeros_like(mem_ref)

    mp = spk_ref.shape[0]
    out = jnp.dot(cols_ref[...], w_ref[...], preferred_element_type=jnp.float32)
    cur = jnp.maximum(jnp.maximum(out[0:mp], out[mp:2 * mp]),
                      jnp.maximum(out[2 * mp:3 * mp], out[3 * mp:4 * mp]))
    cur = cur + b_ref[...]
    spk, mem_new = _lif(cur, mem_ref[...])
    mem_ref[...] = mem_new
    spk_ref[...] = spk.astype(spk_ref.dtype)


def _fc_stack_kernel(x_ref, w1_ref, b1_ref, w2_ref, b2_ref, w3_ref, b3_ref,
                     spk_ref, m4_ref, m5_ref, m6_ref):
    # fc1+LIF4 -> fc2+LIF5 -> fc3+LIF6; spk4/spk5 stay in VMEM, membranes are
    # scratch carried across the T grid.
    @pl.when(pl.program_id(0) == 0)
    def _init():
        m4_ref[...] = jnp.zeros_like(m4_ref)
        m5_ref[...] = jnp.zeros_like(m5_ref)
        m6_ref[...] = jnp.zeros_like(m6_ref)

    cur4 = jnp.dot(x_ref[...], w1_ref[...],
                   preferred_element_type=jnp.float32) + b1_ref[...]
    spk4, m4 = _lif(cur4, m4_ref[...])
    m4_ref[...] = m4
    cur5 = jnp.dot(spk4.astype(jnp.bfloat16), w2_ref[...],
                   preferred_element_type=jnp.float32) + b2_ref[...]
    spk5, m5 = _lif(cur5, m5_ref[...])
    m5_ref[...] = m5
    cur6 = jnp.dot(spk5.astype(jnp.bfloat16), w3_ref[...],
                   preferred_element_type=jnp.float32) + b3_ref[...]
    spk6, m6 = _lif(cur6, m6_ref[...])
    m6_ref[...] = m6
    spk_ref[...] = spk6


# ---------------------------------------------------------------------------
# Pallas wrappers — grid=(T,) and "arbitrary" (the LIF recurrence is sequential
# in time, so the grid must NOT be split across cores).
# ---------------------------------------------------------------------------
_ARB = pltpu.CompilerParams(dimension_semantics=("arbitrary",))


def conv1_lif_all(colsT, w, b):
    # colsT: (T, 9, M1) bf16, w: (16, 9) bf16, b: (16, 1) f32 -> (T, 16, M1) bf16
    T, K, M = colsT.shape
    C = w.shape[0]
    return pl.pallas_call(
        _conv1_lif_kernel,
        out_shape=jax.ShapeDtypeStruct((T, C, M), jnp.bfloat16),
        grid=(T,),
        in_specs=[
            pl.BlockSpec((None, K, M), lambda t: (t, 0, 0)),
            pl.BlockSpec((C, K), lambda t: (0, 0)),      # VMEM-resident for all T
            pl.BlockSpec((C, 1), lambda t: (0, 0)),
        ],
        out_specs=pl.BlockSpec((None, C, M), lambda t: (t, 0, 0)),
        scratch_shapes=[pltpu.VMEM((C, M), jnp.float32)],   # mem1 carry
        compiler_params=_ARB,
    )(colsT, w, b)


def conv_pool_lif_all(cols, w, b):
    # cols: (T, 4*Mp, K) bf16, w: (K, C) bf16, b: (1, C) f32 -> (T, Mp, C) bf16
    T, M4, K = cols.shape
    C = w.shape[1]
    mp = M4 // 4
    return pl.pallas_call(
        _conv_pool_lif_kernel,
        out_shape=jax.ShapeDtypeStruct((T, mp, C), jnp.bfloat16),
        grid=(T,),
        in_specs=[
            pl.BlockSpec((None, M4, K), lambda t: (t, 0, 0)),
            pl.BlockSpec((K, C), lambda t: (0, 0)),
            pl.BlockSpec((1, C), lambda t: (0, 0)),
        ],
        out_specs=pl.BlockSpec((None, mp, C), lambda t: (t, 0, 0)),
        scratch_shapes=[pltpu.VMEM((mp, C), jnp.float32)],   # mem carry
        compiler_params=_ARB,
    )(cols, w, b)


def fc_stack_all(x, w1, b1, w2, b2, w3, b3):
    # x: (T, B, D) bf16 -> (T, B, nc_pad) f32 binary spikes
    T, B, D = x.shape
    H1d, H2d, H3d = w1.shape[1], w2.shape[1], w3.shape[1]

    def const_spec(arr):
        return pl.BlockSpec(arr.shape, lambda t: (0, 0))

    return pl.pallas_call(
        _fc_stack_kernel,
        out_shape=jax.ShapeDtypeStruct((T, B, H3d), jnp.float32),
        grid=(T,),
        in_specs=[pl.BlockSpec((None, B, D), lambda t: (t, 0, 0)),
                  const_spec(w1), const_spec(b1),
                  const_spec(w2), const_spec(b2),
                  const_spec(w3), const_spec(b3)],
        out_specs=pl.BlockSpec((None, B, H3d), lambda t: (t, 0, 0)),
        scratch_shapes=[pltpu.VMEM((B, H1d), jnp.float32),   # mem4
                        pltpu.VMEM((B, H2d), jnp.float32),   # mem5
                        pltpu.VMEM((B, H3d), jnp.float32)],  # mem6
        compiler_params=_ARB,
    )(x, w1, b1, w2, b2, w3, b3)


# ---------------------------------------------------------------------------
# Plain-JAX glue: im2col over the full (T, ...) tensors (one op per layer, NOT
# per timestep), rate encoding, parameter init / prep.
# ---------------------------------------------------------------------------
def _conv_out(n, k, s, p):
    return (n + 2 * p - k) // s + 1


def _im2col_cin1_T(x, kh, kw, stride, pad):
    # x: (T, B, H, W) (Cin == 1) -> (T, kh*kw, B*OH*OW), tap order (i, j).
    T, B, H, W = x.shape
    xp = jnp.pad(x, ((0, 0), (0, 0), (pad, pad), (pad, pad)))
    OH = _conv_out(H, kh, stride, pad)
    OW = _conv_out(W, kw, stride, pad)
    taps = [xp[:, :, i:i + stride * OH:stride, j:j + stride * OW:stride]
            for i in range(kh) for j in range(kw)]
    cols = jnp.stack(taps, axis=1)                        # (T, kh*kw, B, OH, OW)
    return cols.reshape(T, kh * kw, B * OH * OW), OH, OW


def _im2col_pool4(x, kh, kw, stride, pad):
    # x: (T,B,H,W,C) -> (T, 4*Mp_pad, kh*kw*C): for every 2x2-pool output cell
    # its 4 conv-output neighbours, stacked as sublane-aligned row blocks.
    # Floor-mode pool (drops odd trailing row/col), matching nn.MaxPool2d(2,2).
    T, B, H, W, C = x.shape
    xp = jnp.pad(x, ((0, 0), (0, 0), (pad, pad), (pad, pad), (0, 0)))
    OH = _conv_out(H, kh, stride, pad)
    OW = _conv_out(W, kw, stride, pad)
    K = kh * kw * C
    taps = [xp[:, :, i:i + stride * OH:stride, j:j + stride * OW:stride, :]
            for i in range(kh) for j in range(kw)]
    cols = jnp.concatenate(taps, axis=-1)                 # (T, B, OH, OW, K)
    OH2, OW2 = OH // 2, OW // 2
    cols = cols[:, :, :OH2 * 2, :OW2 * 2, :]
    cols = cols.reshape(T, B, OH2, 2, OW2, 2, K)
    cols = jnp.transpose(cols, (0, 3, 5, 1, 2, 4, 6))     # (T, 2, 2, B, OH2, OW2, K)
    mp = B * OH2 * OW2
    mp_pad = ((mp + 7) // 8) * 8                          # keep in-kernel slices aligned
    cols = cols.reshape(T, 4, mp, K)
    if mp_pad != mp:
        cols = jnp.pad(cols, ((0, 0), (0, 0), (0, mp_pad - mp), (0, 0)))
    return cols.reshape(T, 4 * mp_pad, K), OH2, OW2, mp


def rate_encode(key, x, num_steps):
    # spikegen.rate: independent Bernoulli spikes per step with p = intensity.
    p = jnp.clip(x, 0.0, 1.0)
    spikes = jax.random.bernoulli(key, p, shape=(num_steps,) + p.shape)
    return spikes.astype(jnp.float32)


def init_params(key, num_classes):
    # PyTorch-style uniform(-1/sqrt(fan_in), +) init, torch layouts.
    def uinit(k, shape, fan_in):
        bound = 1.0 / jnp.sqrt(jnp.float32(fan_in))
        return jax.random.uniform(k, shape, jnp.float32, -bound, bound)

    ks = jax.random.split(key, 12)
    w1 = uinit(ks[0], (3, 3, 1, 16), 3 * 3 * 1)
    b1 = uinit(ks[1], (16,), 3 * 3 * 1)
    w2 = uinit(ks[2], (5, 5, 16, 32), 5 * 5 * 16)
    b2 = uinit(ks[3], (32,), 5 * 5 * 16)
    w3 = uinit(ks[4], (3, 3, 32, 64), 3 * 3 * 32)
    b3 = uinit(ks[5], (64,), 3 * 3 * 32)
    wf1 = uinit(ks[6], (64 * 6, 512), 64 * 6)    # rows in torch NCHW-flatten order
    bf1 = uinit(ks[7], (512,), 64 * 6)
    wf2 = uinit(ks[8], (512, 128), 512)
    bf2 = uinit(ks[9], (128,), 512)
    wf3 = uinit(ks[10], (128, num_classes), 128)
    bf3 = uinit(ks[11], (num_classes,), 128)
    return (w1, b1, w2, b2, w3, b3, wf1, bf1, wf2, bf2, wf3, bf3)


def prepare_params(params, num_classes):
    # One-time prep: conv weights -> matmul form, MXU operands -> bf16 (spikes
    # are {0,1} so the input side is exact), biases -> f32 rows/columns,
    # fc1 rows permuted to NHWC flatten order, fc3 padded to 128 lanes.
    (w1, b1, w2, b2, w3, b3, wf1, bf1, wf2, bf2, wf3, bf3) = params
    nc_pad = ((num_classes + 127) // 128) * 128

    def brow(b):
        return b.reshape(1, -1).astype(jnp.float32)

    # conv1 in (Cout, K) transposed form: kernel computes W1 @ cols^T (lane-dense).
    w1m = w1.reshape(3 * 3 * 1, 16).T.astype(jnp.bfloat16)        # (16, 9)
    b1c = b1.reshape(16, 1).astype(jnp.float32)
    w2m = w2.reshape(5 * 5 * 16, 32).astype(jnp.bfloat16)         # (400, 32)
    w3m = w3.reshape(3 * 3 * 32, 64).astype(jnp.bfloat16)         # (288, 64)

    # fc1: permute rows once from torch NCHW-flatten order (c*HW + s) to the
    # NHWC order (s*C + c) the conv3 kernel emits -> no per-step transpose.
    c_dim = 64
    hw = wf1.shape[0] // c_dim
    wf1p = wf1.reshape(c_dim, hw, -1).transpose(1, 0, 2).reshape(wf1.shape[0], -1)

    # fc3 padded to a lane-dense 128-wide output; padded lanes have zero weight
    # and bias so they never spike (and are sliced off outside anyway).
    wf3p = jnp.zeros((wf3.shape[0], nc_pad), jnp.float32).at[:, :num_classes].set(wf3)
    bf3p = jnp.zeros((nc_pad,), jnp.float32).at[:num_classes].set(bf3)

    return (w1m, b1c, w2m, brow(b2), w3m, brow(b3),
            wf1p.astype(jnp.bfloat16), brow(bf1),
            wf2.astype(jnp.bfloat16), brow(bf2),
            wf3p.astype(jnp.bfloat16), brow(bf3p))


# ---------------------------------------------------------------------------
# Forward pass (matches SNNConvNet.forward over already-encoded spikes)
# ---------------------------------------------------------------------------
def forward(spikes, prep):
    # spikes: (T, B, H, W, 1) f32 {0,1}; returns (T, B, nc_pad) binary spikes.
    (w1, b1, w2, b2, w3, b3, wf1, bf1, wf2, bf2, wf3, bf3) = prep
    T, B, H, W, _ = spikes.shape
    x = spikes.reshape(T, B, H, W).astype(jnp.bfloat16)

    # conv1 + LIF1 (grid over T, mem1 in VMEM scratch)
    cols1T, H1, W1 = _im2col_cin1_T(x, 3, 3, 2, 1)              # (T, 9, M1)
    spk1 = conv1_lif_all(cols1T, w1, b1)                        # (T, 16, M1) bf16
    spk1 = spk1.reshape(T, 16, B, H1, W1).transpose(0, 2, 3, 4, 1)

    # conv2 + maxpool2 + LIF2
    cols2, H2, W2, mp2 = _im2col_pool4(spk1, 5, 5, 2, 1)        # (T, 4*mp2p, 400)
    spk2 = conv_pool_lif_all(cols2, w2, b2)                     # (T, mp2p, 32)
    spk2 = spk2[:, :mp2].reshape(T, B, H2, W2, 32)

    # conv3 + maxpool2 + LIF3
    cols3, H3, W3, mp3 = _im2col_pool4(spk2, 3, 3, 2, 1)        # (T, 4*mp3p, 288)
    spk3 = conv_pool_lif_all(cols3, w3, b3)                     # (T, mp3p, 64)
    spk3 = spk3[:, :mp3]                                        # (T, B*H3*W3, 64)

    # fc1 expects 64*6 features (hard assumption of the torch module).
    assert 64 * H3 * W3 == wf1.shape[0], (
        f"input geometry gives flatten=64*{H3 * W3}, fc1 expects {wf1.shape[0]}")

    # NHWC flatten; wf1 rows were pre-permuted, so no transpose here.
    flat = spk3.reshape(T, B, H3 * W3 * 64)

    # fc1+LIF4 + fc2+LIF5 + fc3+LIF6 (one kernel, grid over T)
    spk6 = fc_stack_all(flat, wf1, bf1, wf2, bf2, wf3, bf3)     # (T, B, nc_pad)
    return spk6


# ---------------------------------------------------------------------------
if __name__ == "__main__":
    key = jax.random.PRNGKey(0)
    k_params, k_x, k_rate = jax.random.split(key, 3)

    # Input geometry chosen so that flatten == 64*6 = 384 (matches fc1):
    # PyTorch (B, 1, 64, 101) NCHW  ->  (B, 64, 101, 1) NHWC here.
    B, H, W = 2, 64, 101
    num_steps = 5          # module default is 35; kept small for the demo
    num_classes = 12       # stand-in for len(class_to_idx)

    params = init_params(k_params, num_classes)
    prep = prepare_params(params, num_classes)

    x = jax.random.uniform(k_x, (B, H, W, 1), jnp.float32)     # intensities in [0,1]
    spikes = rate_encode(k_rate, x, num_steps)                 # (T, B, H, W, 1)

    fwd = jax.jit(lambda s, p: forward(s, p)[..., :num_classes])
    out = jax.block_until_ready(fwd(spikes, prep))

    assert out.shape == (num_steps, B, num_classes), out.shape
    assert out.dtype == jnp.float32
    # spikes are binary
    assert bool(jnp.all((out == 0.0) | (out == 1.0)))

    print("KERNEL_OK")
</pallas_src>

<mosaic_0001>
module attributes {stable_mosaic.version = 11 : i64} {
  func.func @_conv1_lif_kernel(%arg0: i32, %arg1: memref<1x9x3264xbf16, #tpu.memory_space<vmem>>, %arg2: memref<16x9xbf16, #tpu.memory_space<vmem>>, %arg3: memref<16x1xf32, #tpu.memory_space<vmem>>, %arg4: memref<1x16x3264xbf16, #tpu.memory_space<vmem>>, %arg5: memref<16x3264xf32, #tpu.memory_space<vmem>>) attributes {dimension_semantics = [#tpu.dimension_semantics<arbitrary>], iteration_bounds = array<i64: 5>, scalar_prefetch = 0 : i64, scratch_operands = 1 : i64, tpu.core_type = #tpu.core_type<tc>, window_params = [{transform_indices = @transform_0, window_bounds = array<i64: 1, 9, 3264>}, {pipeline_mode = #tpu.pipeline_mode<synchronous>, transform_indices = @transform_1, window_bounds = array<i64: 16, 9>}, {pipeline_mode = #tpu.pipeline_mode<synchronous>, transform_indices = @transform_2, window_bounds = array<i64: 16, 1>}, {transform_indices = @transform_3, window_bounds = array<i64: 1, 16, 3264>}]} {
    %c0_i32 = arith.constant 0 : i32
    %0 = arith.cmpi eq, %arg0, %c0_i32 : i32
    %1 = arith.extui %0 : i1 to i32
    %c0_i32_0 = arith.constant 0 : i32
    %2 = arith.cmpi ne, %1, %c0_i32_0 : i32
    scf.if %2 {
      %cst_18 = arith.constant 0.000000e+00 : f32
      %30 = vector.broadcast %cst_18 : f32 to vector<16x3264xf32>
      %c0_19 = arith.constant 0 : index
      %c0_20 = arith.constant 0 : index
      %31 = vector.load %arg5[%c0_19, %c0_20] : memref<16x3264xf32, #tpu.memory_space<vmem>>, vector<16x3264xf32>
      tpu.vector_store %arg5[%c0_19, %c0_20], %30 {strides = array<i32>} : memref<16x3264xf32, #tpu.memory_space<vmem>>, vector<16x3264xf32>,
    } else {
    }
    %c0 = arith.constant 0 : index
    %c0_1 = arith.constant 0 : index
    %3 = vector.load %arg2[%c0, %c0_1] : memref<16x9xbf16, #tpu.memory_space<vmem>>, vector<16x9xbf16>
    %c0_2 = arith.constant 0 : index
    %c0_3 = arith.constant 0 : index
    %c0_4 = arith.constant 0 : index
    %4 = vector.load %arg1[%c0_2, %c0_3, %c0_4] : memref<1x9x3264xbf16, #tpu.memory_space<vmem>>, vector<1x9x3264xbf16>
    %5 = vector.shape_cast %4 : vector<1x9x3264xbf16> to vector<9x3264xbf16>
    %cst = arith.constant dense<0.000000e+00> : vector<16x3264xf32>
    %6 = tpu.matmul %3, %5, %cst {dimension_numbers = #tpu.dot_dimension_numbers<[1], [0], [0], [1], [0, 0, 1, 1], [], []>} : vector<16x9xbf16>, vector<9x3264xbf16>, vector<16x3264xf32> -> vector<16x3264xf32>
    %c0_5 = arith.constant 0 : index
    %c0_6 = arith.constant 0 : index
    %7 = vector.load %arg3[%c0_5, %c0_6] : memref<16x1xf32, #tpu.memory_space<vmem>>, vector<16x1xf32>
    %8 = vector.broadcast %7 : vector<16x1xf32> to vector<16x3264xf32>
    %9 = arith.addf %6, %8 : vector<16x3264xf32>
    %c0_7 = arith.constant 0 : index
    %c0_8 = arith.constant 0 : index
    %10 = vector.load %arg5[%c0_7, %c0_8] : memref<16x3264xf32, #tpu.memory_space<vmem>>, vector<16x3264xf32>
    %cst_9 = arith.constant 1.000000e+00 : f32
    %11 = vector.broadcast %cst_9 : f32 to vector<16x3264xf32>
    %12 = arith.cmpf ogt, %10, %11 : vector<16x3264xf32>
    %13 = arith.extui %12 : vector<16x3264xi1> to vector<16x3264xi32>
    %14 = arith.sitofp %13 : vector<16x3264xi32> to vector<16x3264xf32>
    %cst_10 = arith.constant 0.949999988 : f32
    %15 = vector.broadcast %cst_10 : f32 to vector<16x3264xf32>
    %16 = arith.mulf %15, %10 : vector<16x3264xf32>
    %17 = arith.addf %16, %9 : vector<16x3264xf32>
    %cst_11 = arith.constant 1.000000e+00 : f32
    %18 = vector.broadcast %cst_11 : f32 to vector<16x3264xf32>
    %19 = arith.mulf %14, %18 : vector<16x3264xf32>
    %20 = arith.subf %17, %19 : vector<16x3264xf32>
    %cst_12 = arith.constant 1.000000e+00 : f32
    %21 = vector.broadcast %cst_12 : f32 to vector<16x3264xf32>
    %22 = arith.cmpf ogt, %20, %21 : vector<16x3264xf32>
    %23 = arith.extui %22 : vector<16x3264xi1> to vector<16x3264xi32>
    %24 = arith.sitofp %23 : vector<16x3264xi32> to vector<16x3264xf32>
    %c0_13 = arith.constant 0 : index
    %c0_14 = arith.constant 0 : index
    %25 = vector.load %arg5[%c0_13, %c0_14] : memref<16x3264xf32, #tpu.memory_space<vmem>>, vector<16x3264xf32>
    tpu.vector_store %arg5[%c0_13, %c0_14], %20 {strides = array<i32>} : memref<16x3264xf32, #tpu.memory_space<vmem>>, vector<16x3264xf32>,
    %26 = arith.truncf %24 : vector<16x3264xf32> to vector<16x3264xbf16>
    %c0_15 = arith.constant 0 : index
    %c0_16 = arith.constant 0 : index
    %c0_17 = arith.constant 0 : index
    %27 = vector.load %arg4[%c0_15, %c0_16, %c0_17] : memref<1x16x3264xbf16, #tpu.memory_space<vmem>>, vector<1x16x3264xbf16>
    %28 = vector.shape_cast %27 : vector<1x16x3264xbf16> to vector<16x3264xbf16>
    %29 = vector.shape_cast %26 : vector<16x3264xbf16> to vector<1x16x3264xbf16>
    tpu.vector_store %arg4[%c0_15, %c0_16, %c0_17], %29 {strides = array<i32>} : memref<1x16x3264xbf16, #tpu.memory_space<vmem>>, vector<1x16x3264xbf16>,
    return
  }
  func.func @transform_0(%arg0: i32) -> (i32, i32, i32) {
    %c0_i32 = arith.constant 0 : i32
    %c0_i32_0 = arith.constant 0 : i32
    %c0_i32_1 = arith.constant 0 : i32
    return %arg0, %c0_i32, %c0_i32_0 : i32, i32, i32
  }
  func.func @transform_1(%arg0: i32) -> (i32, i32) {
    %c0_i32 = arith.constant 0 : i32
    %c0_i32_0 = arith.constant 0 : i32
    %c0_i32_1 = arith.constant 0 : i32
    return %c0_i32, %c0_i32_0 : i32, i32
  }
  func.func @transform_2(%arg0: i32) -> (i32, i32) {
    %c0_i32 = arith.constant 0 : i32
    %c0_i32_0 = arith.constant 0 : i32
    %c0_i32_1 = arith.constant 0 : i32
    return %c0_i32, %c0_i32_0 : i32, i32
  }
  func.func @transform_3(%arg0: i32) -> (i32, i32, i32) {
    %c0_i32 = arith.constant 0 : i32
    %c0_i32_0 = arith.constant 0 : i32
    %c0_i32_1 = arith.constant 0 : i32
    return %arg0, %c0_i32, %c0_i32_0 : i32, i32, i32
  }
}

module attributes {stable_mosaic.version = 11 : i64} {
  func.func @_conv_pool_lif_kernel(%arg0: i32, %arg1: memref<1x672x400xbf16, #tpu.memory_space<vmem>>, %arg2: memref<400x32xbf16, #tpu.memory_space<vmem>>, %arg3: memref<1x32xf32, #tpu.memory_space<vmem>>, %arg4: memref<1x168x32xbf16, #tpu.memory_space<vmem>>, %arg5: memref<168x32xf32, #tpu.memory_space<vmem>>) attributes {dimension_semantics = [#tpu.dimension_semantics<arbitrary>], iteration_bounds = array<i64: 5>, scalar_prefetch = 0 : i64, scratch_operands = 1 : i64, tpu.core_type = #tpu.core_type<tc>, window_params = [{transform_indices = @transform_0, window_bounds = array<i64: 1, 672, 400>}, {pipeline_mode = #tpu.pipeline_mode<synchronous>, transform_indices = @transform_1, window_bounds = array<i64: 400, 32>}, {pipeline_mode = #tpu.pipeline_mode<synchronous>, transform_indices = @transform_2, window_bounds = array<i64: 1, 32>}, {transform_indices = @transform_3, window_bounds = array<i64: 1, 168, 32>}]} {
    %c0_i32 = arith.constant 0 : i32
    %0 = arith.cmpi eq, %arg0, %c0_i32 : i32
    %1 = arith.extui %0 : i1 to i32
    %c0_i32_0 = arith.constant 0 : i32
    %2 = arith.cmpi ne, %1, %c0_i32_0 : i32
    scf.if %2 {
      %cst_18 = arith.constant 0.000000e+00 : f32
      %37 = vector.broadcast %cst_18 : f32 to vector<168x32xf32>
      %c0_19 = arith.constant 0 : index
      %c0_20 = arith.constant 0 : index
      %38 = vector.load %arg5[%c0_19, %c0_20] : memref<168x32xf32, #tpu.memory_space<vmem>>, vector<168x32xf32>
      tpu.vector_store %arg5[%c0_19, %c0_20], %37 {strides = array<i32>} : memref<168x32xf32, #tpu.memory_space<vmem>>, vector<168x32xf32>,
    } else {
    }
    %c0 = arith.constant 0 : index
    %c0_1 = arith.constant 0 : index
    %c0_2 = arith.constant 0 : index
    %3 = vector.load %arg1[%c0, %c0_1, %c0_2] : memref<1x672x400xbf16, #tpu.memory_space<vmem>>, vector<1x672x400xbf16>
    %4 = vector.shape_cast %3 : vector<1x672x400xbf16> to vector<672x400xbf16>
    %c0_3 = arith.constant 0 : index
    %c0_4 = arith.constant 0 : index
    %5 = vector.load %arg2[%c0_3, %c0_4] : memref<400x32xbf16, #tpu.memory_space<vmem>>, vector<400x32xbf16>
    %cst = arith.constant dense<0.000000e+00> : vector<672x32xf32>
    %6 = tpu.matmul %4, %5, %cst {dimension_numbers = #tpu.dot_dimension_numbers<[1], [0], [0], [1], [0, 0, 1, 1], [], []>} : vector<672x400xbf16>, vector<400x32xbf16>, vector<672x32xf32> -> vector<672x32xf32>
    %7 = vector.extract_strided_slice %6 {offsets = [0, 0], sizes = [168, 32], strides = [1, 1]} : vector<672x32xf32> to vector<168x32xf32>
    %8 = vector.extract_strided_slice %6 {offsets = [168, 0], sizes = [168, 32], strides = [1, 1]} : vector<672x32xf32> to vector<168x32xf32>
    %9 = arith.maximumf %7, %8 : vector<168x32xf32>
    %10 = vector.extract_strided_slice %6 {offsets = [336, 0], sizes = [168, 32], strides = [1, 1]} : vector<672x32xf32> to vector<168x32xf32>
    %11 = vector.extract_strided_slice %6 {offsets = [504, 0], sizes = [168, 32], strides = [1, 1]} : vector<672x32xf32> to vector<168x32xf32>
    %12 = arith.maximumf %10, %11 : vector<168x32xf32>
    %13 = arith.maximumf %9, %12 : vector<168x32xf32>
    %c0_5 = arith.constant 0 : index
    %c0_6 = arith.constant 0 : index
    %14 = vector.load %arg3[%c0_5, %c0_6] : memref<1x32xf32, #tpu.memory_space<vmem>>, vector<1x32xf32>
    %15 = vector.broadcast %14 : vector<1x32xf32> to vector<168x32xf32>
    %16 = arith.addf %13, %15 : vector<168x32xf32>
    %c0_7 = arith.constant 0 : index
    %c0_8 = arith.constant 0 : index
    %17 = vector.load %arg5[%c0_7, %c0_8] : memref<168x32xf32, #tpu.memory_space<vmem>>, vector<168x32xf32>
    %cst_9 = arith.constant 1.000000e+00 : f32
    %18 = vector.broadcast %cst_9 : f32 to vector<168x32xf32>
    %19 = arith.cmpf ogt, %17, %18 : vector<168x32xf32>
    %20 = arith.extui %19 : vector<168x32xi1> to vector<168x32xi32>
    %21 = arith.sitofp %20 : vector<168x32xi32> to vector<168x32xf32>
    %cst_10 = arith.constant 0.949999988 : f32
    %22 = vector.broadcast %cst_10 : f32 to vector<168x32xf32>
    %23 = arith.mulf %22, %17 : vector<168x32xf32>
    %24 = arith.addf %23, %16 : vector<168x32xf32>
    %cst_11 = arith.constant 1.000000e+00 : f32
    %25 = vector.broadcast %cst_11 : f32 to vector<168x32xf32>
    %26 = arith.mulf %21, %25 : vector<168x32xf32>
    %27 = arith.subf %24, %26 : vector<168x32xf32>
    %cst_12 = arith.constant 1.000000e+00 : f32
    %28 = vector.broadcast %cst_12 : f32 to vector<168x32xf32>
    %29 = arith.cmpf ogt, %27, %28 : vector<168x32xf32>
    %30 = arith.extui %29 : vector<168x32xi1> to vector<168x32xi32>
    %31 = arith.sitofp %30 : vector<168x32xi32> to vector<168x32xf32>
    %c0_13 = arith.constant 0 : index
    %c0_14 = arith.constant 0 : index
    %32 = vector.load %arg5[%c0_13, %c0_14] : memref<168x32xf32, #tpu.memory_space<vmem>>, vector<168x32xf32>
    tpu.vector_store %arg5[%c0_13, %c0_14], %27 {strides = array<i32>} : memref<168x32xf32, #tpu.memory_space<vmem>>, vector<168x32xf32>,
    %33 = arith.truncf %31 : vector<168x32xf32> to vector<168x32xbf16>
    %c0_15 = arith.constant 0 : index
    %c0_16 = arith.constant 0 : index
    %c0_17 = arith.constant 0 : index
    %34 = vector.load %arg4[%c0_15, %c0_16, %c0_17] : memref<1x168x32xbf16, #tpu.memory_space<vmem>>, vector<1x168x32xbf16>
    %35 = vector.shape_cast %34 : vector<1x168x32xbf16> to vector<168x32xbf16>
    %36 = vector.shape_cast %33 : vector<168x32xbf16> to vector<1x168x32xbf16>
    tpu.vector_store %arg4[%c0_15, %c0_16, %c0_17], %36 {strides = array<i32>} : memref<1x168x32xbf16, #tpu.memory_space<vmem>>, vector<1x168x32xbf16>,
    return
  }
  func.func @transform_0(%arg0: i32) -> (i32, i32, i32) {
    %c0_i32 = arith.constant 0 : i32
    %c0_i32_0 = arith.constant 0 : i32
    %c0_i32_1 = arith.constant 0 : i32
    return %arg0, %c0_i32, %c0_i32_0 : i32, i32, i32
  }
  func.func @transform_1(%arg0: i32) -> (i32, i32) {
    %c0_i32 = arith.constant 0 : i32
    %c0_i32_0 = arith.constant 0 : i32
    %c0_i32_1 = arith.constant 0 : i32
    return %c0_i32, %c0_i32_0 : i32, i32
  }
  func.func @transform_2(%arg0: i32) -> (i32, i32) {
    %c0_i32 = arith.constant 0 : i32
    %c0_i32_0 = arith.constant 0 : i32
    %c0_i32_1 = arith.constant 0 : i32
    return %c0_i32, %c0_i32_0 : i32, i32
  }
  func.func @transform_3(%arg0: i32) -> (i32, i32, i32) {
    %c0_i32 = arith.constant 0 : i32
    %c0_i32_0 = arith.constant 0 : i32
    %c0_i32_1 = arith.constant 0 : i32
    return %arg0, %c0_i32, %c0_i32_0 : i32, i32, i32
  }
}

module attributes {stable_mosaic.version = 11 : i64} {
  func.func @_conv_pool_lif_kernel(%arg0: i32, %arg1: memref<1x64x288xbf16, #tpu.memory_space<vmem>>, %arg2: memref<288x64xbf16, #tpu.memory_space<vmem>>, %arg3: memref<1x64xf32, #tpu.memory_space<vmem>>, %arg4: memref<1x16x64xbf16, #tpu.memory_space<vmem>>, %arg5: memref<16x64xf32, #tpu.memory_space<vmem>>) attributes {dimension_semantics = [#tpu.dimension_semantics<arbitrary>], iteration_bounds = array<i64: 5>, scalar_prefetch = 0 : i64, scratch_operands = 1 : i64, tpu.core_type = #tpu.core_type<tc>, window_params = [{transform_indices = @transform_0, window_bounds = array<i64: 1, 64, 288>}, {pipeline_mode = #tpu.pipeline_mode<synchronous>, transform_indices = @transform_1, window_bounds = array<i64: 288, 64>}, {pipeline_mode = #tpu.pipeline_mode<synchronous>, transform_indices = @transform_2, window_bounds = array<i64: 1, 64>}, {transform_indices = @transform_3, window_bounds = array<i64: 1, 16, 64>}]} {
    %c0_i32 = arith.constant 0 : i32
    %0 = arith.cmpi eq, %arg0, %c0_i32 : i32
    %1 = arith.extui %0 : i1 to i32
    %c0_i32_0 = arith.constant 0 : i32
    %2 = arith.cmpi ne, %1, %c0_i32_0 : i32
    scf.if %2 {
      %cst_18 = arith.constant 0.000000e+00 : f32
      %37 = vector.broadcast %cst_18 : f32 to vector<16x64xf32>
      %c0_19 = arith.constant 0 : index
      %c0_20 = arith.constant 0 : index
      %38 = vector.load %arg5[%c0_19, %c0_20] : memref<16x64xf32, #tpu.memory_space<vmem>>, vector<16x64xf32>
      tpu.vector_store %arg5[%c0_19, %c0_20], %37 {strides = array<i32>} : memref<16x64xf32, #tpu.memory_space<vmem>>, vector<16x64xf32>,
    } else {
    }
    %c0 = arith.constant 0 : index
    %c0_1 = arith.constant 0 : index
    %c0_2 = arith.constant 0 : index
    %3 = vector.load %arg1[%c0, %c0_1, %c0_2] : memref<1x64x288xbf16, #tpu.memory_space<vmem>>, vector<1x64x288xbf16>
    %4 = vector.shape_cast %3 : vector<1x64x288xbf16> to vector<64x288xbf16>
    %c0_3 = arith.constant 0 : index
    %c0_4 = arith.constant 0 : index
    %5 = vector.load %arg2[%c0_3, %c0_4] : memref<288x64xbf16, #tpu.memory_space<vmem>>, vector<288x64xbf16>
    %cst = arith.constant dense<0.000000e+00> : vector<64x64xf32>
    %6 = tpu.matmul %4, %5, %cst {dimension_numbers = #tpu.dot_dimension_numbers<[1], [0], [0], [1], [0, 0, 1, 1], [], []>} : vector<64x288xbf16>, vector<288x64xbf16>, vector<64x64xf32> -> vector<64x64xf32>
    %7 = vector.extract_strided_slice %6 {offsets = [0, 0], sizes = [16, 64], strides = [1, 1]} : vector<64x64xf32> to vector<16x64xf32>
    %8 = vector.extract_strided_slice %6 {offsets = [16, 0], sizes = [16, 64], strides = [1, 1]} : vector<64x64xf32> to vector<16x64xf32>
    %9 = arith.maximumf %7, %8 : vector<16x64xf32>
    %10 = vector.extract_strided_slice %6 {offsets = [32, 0], sizes = [16, 64], strides = [1, 1]} : vector<64x64xf32> to vector<16x64xf32>
    %11 = vector.extract_strided_slice %6 {offsets = [48, 0], sizes = [16, 64], strides = [1, 1]} : vector<64x64xf32> to vector<16x64xf32>
    %12 = arith.maximumf %10, %11 : vector<16x64xf32>
    %13 = arith.maximumf %9, %12 : vector<16x64xf32>
    %c0_5 = arith.constant 0 : index
    %c0_6 = arith.constant 0 : index
    %14 = vector.load %arg3[%c0_5, %c0_6] : memref<1x64xf32, #tpu.memory_space<vmem>>, vector<1x64xf32>
    %15 = vector.broadcast %14 : vector<1x64xf32> to vector<16x64xf32>
    %16 = arith.addf %13, %15 : vector<16x64xf32>
    %c0_7 = arith.constant 0 : index
    %c0_8 = arith.constant 0 : index
    %17 = vector.load %arg5[%c0_7, %c0_8] : memref<16x64xf32, #tpu.memory_space<vmem>>, vector<16x64xf32>
    %cst_9 = arith.constant 1.000000e+00 : f32
    %18 = vector.broadcast %cst_9 : f32 to vector<16x64xf32>
    %19 = arith.cmpf ogt, %17, %18 : vector<16x64xf32>
    %20 = arith.extui %19 : vector<16x64xi1> to vector<16x64xi32>
    %21 = arith.sitofp %20 : vector<16x64xi32> to vector<16x64xf32>
    %cst_10 = arith.constant 0.949999988 : f32
    %22 = vector.broadcast %cst_10 : f32 to vector<16x64xf32>
    %23 = arith.mulf %22, %17 : vector<16x64xf32>
    %24 = arith.addf %23, %16 : vector<16x64xf32>
    %cst_11 = arith.constant 1.000000e+00 : f32
    %25 = vector.broadcast %cst_11 : f32 to vector<16x64xf32>
    %26 = arith.mulf %21, %25 : vector<16x64xf32>
    %27 = arith.subf %24, %26 : vector<16x64xf32>
    %cst_12 = arith.constant 1.000000e+00 : f32
    %28 = vector.broadcast %cst_12 : f32 to vector<16x64xf32>
    %29 = arith.cmpf ogt, %27, %28 : vector<16x64xf32>
    %30 = arith.extui %29 : vector<16x64xi1> to vector<16x64xi32>
    %31 = arith.sitofp %30 : vector<16x64xi32> to vector<16x64xf32>
    %c0_13 = arith.constant 0 : index
    %c0_14 = arith.constant 0 : index
    %32 = vector.load %arg5[%c0_13, %c0_14] : memref<16x64xf32, #tpu.memory_space<vmem>>, vector<16x64xf32>
    tpu.vector_store %arg5[%c0_13, %c0_14], %27 {strides = array<i32>} : memref<16x64xf32, #tpu.memory_space<vmem>>, vector<16x64xf32>,
    %33 = arith.truncf %31 : vector<16x64xf32> to vector<16x64xbf16>
    %c0_15 = arith.constant 0 : index
    %c0_16 = arith.constant 0 : index
    %c0_17 = arith.constant 0 : index
    %34 = vector.load %arg4[%c0_15, %c0_16, %c0_17] : memref<1x16x64xbf16, #tpu.memory_space<vmem>>, vector<1x16x64xbf16>
    %35 = vector.shape_cast %34 : vector<1x16x64xbf16> to vector<16x64xbf16>
    %36 = vector.shape_cast %33 : vector<16x64xbf16> to vector<1x16x64xbf16>
    tpu.vector_store %arg4[%c0_15, %c0_16, %c0_17], %36 {strides = array<i32>} : memref<1x16x64xbf16, #tpu.memory_space<vmem>>, vector<1x16x64xbf16>,
    return
  }
  func.func @transform_0(%arg0: i32) -> (i32, i32, i32) {
    %c0_i32 = arith.constant 0 : i32
    %c0_i32_0 = arith.constant 0 : i32
    %c0_i32_1 = arith.constant 0 : i32
    return %arg0, %c0_i32, %c0_i32_0 : i32, i32, i32
  }
  func.func @transform_1(%arg0: i32) -> (i32, i32) {
    %c0_i32 = arith.constant 0 : i32
    %c0_i32_0 = arith.constant 0 : i32
    %c0_i32_1 = arith.constant 0 : i32
    return %c0_i32, %c0_i32_0 : i32, i32
  }
  func.func @transform_2(%arg0: i32) -> (i32, i32) {
    %c0_i32 = arith.constant 0 : i32
    %c0_i32_0 = arith.constant 0 : i32
    %c0_i32_1 = arith.constant 0 : i32
    return %c0_i32, %c0_i32_0 : i32, i32
  }
  func.func @transform_3(%arg0: i32) -> (i32, i32, i32) {
    %c0_i32 = arith.constant 0 : i32
    %c0_i32_0 = arith.constant 0 : i32
    %c0_i32_1 = arith.constant 0 : i32
    return %arg0, %c0_i32, %c0_i32_0 : i32, i32, i32
  }
}

module attributes {stable_mosaic.version = 11 : i64} {
  func.func @_fc_stack_kernel(%arg0: i32, %arg1: memref<1x2x384xbf16, #tpu.memory_space<vmem>>, %arg2: memref<384x512xbf16, #tpu.memory_space<vmem>>, %arg3: memref<1x512xf32, #tpu.memory_space<vmem>>, %arg4: memref<512x128xbf16, #tpu.memory_space<vmem>>, %arg5: memref<1x128xf32, #tpu.memory_space<vmem>>, %arg6: memref<128x128xbf16, #tpu.memory_space<vmem>>, %arg7: memref<1x128xf32, #tpu.memory_space<vmem>>, %arg8: memref<1x2x128xf32, #tpu.memory_space<vmem>>, %arg9: memref<2x512xf32, #tpu.memory_space<vmem>>, %arg10: memref<2x128xf32, #tpu.memory_space<vmem>>, %arg11: memref<2x128xf32, #tpu.memory_space<vmem>>) attributes {dimension_semantics = [#tpu.dimension_semantics<arbitrary>], iteration_bounds = array<i64: 5>, scalar_prefetch = 0 : i64, scratch_operands = 3 : i64, tpu.core_type = #tpu.core_type<tc>, window_params = [{transform_indices = @transform_0, window_bounds = array<i64: 1, 2, 384>}, {pipeline_mode = #tpu.pipeline_mode<synchronous>, transform_indices = @transform_1, window_bounds = array<i64: 384, 512>}, {pipeline_mode = #tpu.pipeline_mode<synchronous>, transform_indices = @transform_2, window_bounds = array<i64: 1, 512>}, {pipeline_mode = #tpu.pipeline_mode<synchronous>, transform_indices = @transform_3, window_bounds = array<i64: 512, 128>}, {pipeline_mode = #tpu.pipeline_mode<synchronous>, transform_indices = @transform_4, window_bounds = array<i64: 1, 128>}, {pipeline_mode = #tpu.pipeline_mode<synchronous>, transform_indices = @transform_5, window_bounds = array<i64: 128, 128>}, {pipeline_mode = #tpu.pipeline_mode<synchronous>, transform_indices = @transform_6, window_bounds = array<i64: 1, 128>}, {transform_indices = @transform_7, window_bounds = array<i64: 1, 2, 128>}]} {
    %c0_i32 = arith.constant 0 : i32
    %0 = arith.cmpi eq, %arg0, %c0_i32 : i32
    %1 = arith.extui %0 : i1 to i32
    %c0_i32_0 = arith.constant 0 : i32
    %2 = arith.cmpi ne, %1, %c0_i32_0 : i32
    scf.if %2 {
      %cst_44 = arith.constant 0.000000e+00 : f32
      %73 = vector.broadcast %cst_44 : f32 to vector<2x512xf32>
      %c0_45 = arith.constant 0 : index
      %c0_46 = arith.constant 0 : index
      %74 = vector.load %arg9[%c0_45, %c0_46] : memref<2x512xf32, #tpu.memory_space<vmem>>, vector<2x512xf32>
      tpu.vector_store %arg9[%c0_45, %c0_46], %73 {strides = array<i32>} : memref<2x512xf32, #tpu.memory_space<vmem>>, vector<2x512xf32>,
      %cst_47 = arith.constant 0.000000e+00 : f32
      %75 = vector.broadcast %cst_47 : f32 to vector<2x128xf32>
      %c0_48 = arith.constant 0 : index
      %c0_49 = arith.constant 0 : index
      %76 = vector.load %arg10[%c0_48, %c0_49] : memref<2x128xf32, #tpu.memory_space<vmem>>, vector<2x128xf32>
      tpu.vector_store %arg10[%c0_48, %c0_49], %75 {strides = array<i32>} : memref<2x128xf32, #tpu.memory_space<vmem>>, vector<2x128xf32>,
      %cst_50 = arith.constant 0.000000e+00 : f32
      %77 = vector.broadcast %cst_50 : f32 to vector<2x128xf32>
      %c0_51 = arith.constant 0 : index
      %c0_52 = arith.constant 0 : index
      %78 = vector.load %arg11[%c0_51, %c0_52] : memref<2x128xf32, #tpu.memory_space<vmem>>, vector<2x128xf32>
      tpu.vector_store %arg11[%c0_51, %c0_52], %77 {strides = array<i32>} : memref<2x128xf32, #tpu.memory_space<vmem>>, vector<2x128xf32>,
    } else {
    }
    %c0 = arith.constant 0 : index
    %c0_1 = arith.constant 0 : index
    %c0_2 = arith.constant 0 : index
    %3 = vector.load %arg1[%c0, %c0_1, %c0_2] : memref<1x2x384xbf16, #tpu.memory_space<vmem>>, vector<1x2x384xbf16>
    %4 = vector.shape_cast %3 : vector<1x2x384xbf16> to vector<2x384xbf16>
    %c0_3 = arith.constant 0 : index
    %c0_4 = arith.constant 0 : index
    %5 = vector.load %arg2[%c0_3, %c0_4] : memref<384x512xbf16, #tpu.memory_space<vmem>>, vector<384x512xbf16>
    %cst = arith.constant dense<0.000000e+00> : vector<2x512xf32>
    %6 = tpu.matmul %4, %5, %cst {dimension_numbers = #tpu.dot_dimension_numbers<[1], [0], [0], [1], [0, 0, 1, 1], [], []>} : vector<2x384xbf16>, vector<384x512xbf16>, vector<2x512xf32> -> vector<2x512xf32>
    %c0_5 = arith.constant 0 : index
    %c0_6 = arith.constant 0 : index
    %7 = vector.load %arg3[%c0_5, %c0_6] : memref<1x512xf32, #tpu.memory_space<vmem>>, vector<1x512xf32>
    %8 = vector.broadcast %7 : vector<1x512xf32> to vector<2x512xf32>
    %9 = arith.addf %6, %8 : vector<2x512xf32>
    %c0_7 = arith.constant 0 : index
    %c0_8 = arith.constant 0 : index
    %10 = vector.load %arg9[%c0_7, %c0_8] : memref<2x512xf32, #tpu.memory_space<vmem>>, vector<2x512xf32>
    %cst_9 = arith.constant 1.000000e+00 : f32
    %11 = vector.broadcast %cst_9 : f32 to vector<2x512xf32>
    %12 = arith.cmpf ogt, %10, %11 : vector<2x512xf32>
    %13 = arith.extui %12 : vector<2x512xi1> to vector<2x512xi32>
    %14 = arith.sitofp %13 : vector<2x512xi32> to vector<2x512xf32>
    %cst_10 = arith.constant 0.949999988 : f32
    %15 = vector.broadcast %cst_10 : f32 to vector<2x512xf32>
    %16 = arith.mulf %15, %10 : vector<2x512xf32>
    %17 = arith.addf %16, %9 : vector<2x512xf32>
    %cst_11 = arith.constant 1.000000e+00 : f32
    %18 = vector.broadcast %cst_11 : f32 to vector<2x512xf32>
    %19 = arith.mulf %14, %18 : vector<2x512xf32>
    %20 = arith.subf %17, %19 : vector<2x512xf32>
    %cst_12 = arith.constant 1.000000e+00 : f32
    %21 = vector.broadcast %cst_12 : f32 to vector<2x512xf32>
    %22 = arith.cmpf ogt, %20, %21 : vector<2x512xf32>
    %23 = arith.extui %22 : vector<2x512xi1> to vector<2x512xi32>
    %24 = arith.sitofp %23 : vector<2x512xi32> to vector<2x512xf32>
    %c0_13 = arith.constant 0 : index
    %c0_14 = arith.constant 0 : index
    %25 = vector.load %arg9[%c0_13, %c0_14] : memref<2x512xf32, #tpu.memory_space<vmem>>, vector<2x512xf32>
    tpu.vector_store %arg9[%c0_13, %c0_14], %20 {strides = array<i32>} : memref<2x512xf32, #tpu.memory_space<vmem>>, vector<2x512xf32>,
    %26 = arith.truncf %24 : vector<2x512xf32> to vector<2x512xbf16>
    %c0_15 = arith.constant 0 : index
    %c0_16 = arith.constant 0 : index
    %27 = vector.load %arg4[%c0_15, %c0_16] : memref<512x128xbf16, #tpu.memory_space<vmem>>, vector<512x128xbf16>
    %cst_17 = arith.constant dense<0.000000e+00> : vector<2x128xf32>
    %28 = tpu.matmul %26, %27, %cst_17 {dimension_numbers = #tpu.dot_dimension_numbers<[1], [0], [0], [1], [0, 0, 1, 1], [], []>} : vector<2x512xbf16>, vector<512x128xbf16>, vector<2x128xf32> -> vector<2x128xf32>
    %c0_18 = arith.constant 0 : index
    %c0_19 = arith.constant 0 : index
    %29 = vector.load %arg5[%c0_18, %c0_19] : memref<1x128xf32, #tpu.memory_space<vmem>>, vector<1x128xf32>
    %30 = vector.broadcast %29 : vector<1x128xf32> to vector<2x128xf32>
    %31 = arith.addf %28, %30 : vector<2x128xf32>
    %c0_20 = arith.constant 0 : index
    %c0_21 = arith.constant 0 : index
    %32 = vector.load %arg10[%c0_20, %c0_21] : memref<2x128xf32, #tpu.memory_space<vmem>>, vector<2x128xf32>
    %cst_22 = arith.constant 1.000000e+00 : f32
    %33 = vector.broadcast %cst_22 : f32 to vector<2x128xf32>
    %34 = arith.cmpf ogt, %32, %33 : vector<2x128xf32>
    %35 = arith.extui %34 : vector<2x128xi1> to vector<2x128xi32>
    %36 = arith.sitofp %35 : vector<2x128xi32> to vector<2x128xf32>
    %cst_23 = arith.constant 0.949999988 : f32
    %37 = vector.broadcast %cst_23 : f32 to vector<2x128xf32>
    %38 = arith.mulf %37, %32 : vector<2x128xf32>
    %39 = arith.addf %38, %31 : vector<2x128xf32>
    %cst_24 = arith.constant 1.000000e+00 : f32
    %40 = vector.broadcast %cst_24 : f32 to vector<2x128xf32>
    %41 = arith.mulf %36, %40 : vector<2x128xf32>
    %42 = arith.subf %39, %41 : vector<2x128xf32>
    %cst_25 = arith.constant 1.000000e+00 : f32
    %43 = vector.broadcast %cst_25 : f32 to vector<2x128xf32>
    %44 = arith.cmpf ogt, %42, %43 : vector<2x128xf32>
    %45 = arith.extui %44 : vector<2x128xi1> to vector<2x128xi32>
    %46 = arith.sitofp %45 : vector<2x128xi32> to vector<2x128xf32>
    %c0_26 = arith.constant 0 : index
    %c0_27 = arith.constant 0 : index
    %47 = vector.load %arg10[%c0_26, %c0_27] : memref<2x128xf32, #tpu.memory_space<vmem>>, vector<2x128xf32>
    tpu.vector_store %arg10[%c0_26, %c0_27], %42 {strides = array<i32>} : memref<2x128xf32, #tpu.memory_space<vmem>>, vector<2x128xf32>,
    %48 = arith.truncf %46 : vector<2x128xf32> to vector<2x128xbf16>
    %c0_28 = arith.constant 0 : index
    %c0_29 = arith.constant 0 : index
    %49 = vector.load %arg6[%c0_28, %c0_29] : memref<128x128xbf16, #tpu.memory_space<vmem>>, vector<128x128xbf16>
    %cst_30 = arith.constant dense<0.000000e+00> : vector<2x128xf32>
    %50 = tpu.matmul %48, %49, %cst_30 {dimension_numbers = #tpu.dot_dimension_numbers<[1], [0], [0], [1], [0, 0, 1, 1], [], []>} : vector<2x128xbf16>, vector<128x128xbf16>, vector<2x128xf32> -> vector<2x128xf32>
    %c0_31 = arith.constant 0 : index
    %c0_32 = arith.constant 0 : index
    %51 = vector.load %arg7[%c0_31, %c0_32] : memref<1x128xf32, #tpu.memory_space<vmem>>, vector<1x128xf32>
    %52 = vector.broadcast %51 : vector<1x128xf32> to vector<2x128xf32>
    %53 = arith.addf %50, %52 : vector<2x128xf32>
    %c0_33 = arith.constant 0 : index
    %c0_34 = arith.constant 0 : index
    %54 = vector.load %arg11[%c0_33, %c0_34] : memref<2x128xf32, #tpu.memory_space<vmem>>, vector<2x128xf32>
    %cst_35 = arith.constant 1.000000e+00 : f32
    %55 = vector.broadcast %cst_35 : f32 to vector<2x128xf32>
    %56 = arith.cmpf ogt, %54, %55 : vector<2x128xf32>
    %57 = arith.extui %56 : vector<2x128xi1> to vector<2x128xi32>
    %58 = arith.sitofp %57 : vector<2x128xi32> to vector<2x128xf32>
    %cst_36 = arith.constant 0.949999988 : f32
    %59 = vector.broadcast %cst_36 : f32 to vector<2x128xf32>
    %60 = arith.mulf %59, %54 : vector<2x128xf32>
    %61 = arith.addf %60, %53 : vector<2x128xf32>
    %cst_37 = arith.constant 1.000000e+00 : f32
    %62 = vector.broadcast %cst_37 : f32 to vector<2x128xf32>
    %63 = arith.mulf %58, %62 : vector<2x128xf32>
    %64 = arith.subf %61, %63 : vector<2x128xf32>
    %cst_38 = arith.constant 1.000000e+00 : f32
    %65 = vector.broadcast %cst_38 : f32 to vector<2x128xf32>
    %66 = arith.cmpf ogt, %64, %65 : vector<2x128xf32>
    %67 = arith.extui %66 : vector<2x128xi1> to vector<2x128xi32>
    %68 = arith.sitofp %67 : vector<2x128xi32> to vector<2x128xf32>
    %c0_39 = arith.constant 0 : index
    %c0_40 = arith.constant 0 : index
    %69 = vector.load %arg11[%c0_39, %c0_40] : memref<2x128xf32, #tpu.memory_space<vmem>>, vector<2x128xf32>
    tpu.vector_store %arg11[%c0_39, %c0_40], %64 {strides = array<i32>} : memref<2x128xf32, #tpu.memory_space<vmem>>, vector<2x128xf32>,
    %c0_41 = arith.constant 0 : index
    %c0_42 = arith.constant 0 : index
    %c0_43 = arith.constant 0 : index
    %70 = vector.load %arg8[%c0_41, %c0_42, %c0_43] : memref<1x2x128xf32, #tpu.memory_space<vmem>>, vector<1x2x128xf32>
    %71 = vector.shape_cast %70 : vector<1x2x128xf32> to vector<2x128xf32>
    %72 = vector.shape_cast %68 : vector<2x128xf32> to vector<1x2x128xf32>
    tpu.vector_store %arg8[%c0_41, %c0_42, %c0_43], %72 {strides = array<i32>} : memref<1x2x128xf32, #tpu.memory_space<vmem>>, vector<1x2x128xf32>,
    return
  }
  func.func @transform_0(%arg0: i32) -> (i32, i32, i32) {
    %c0_i32 = arith.constant 0 : i32
    %c0_i32_0 = arith.constant 0 : i32
    %c0_i32_1 = arith.constant 0 : i32
    return %arg0, %c0_i32, %c0_i32_0 : i32, i32, i32
  }
  func.func @transform_1(%arg0: i32) -> (i32, i32) {
    %c0_i32 = arith.constant 0 : i32
    %c0_i32_0 = arith.constant 0 : i32
    %c0_i32_1 = arith.constant 0 : i32
    return %c0_i32, %c0_i32_0 : i32, i32
  }
  func.func @transform_2(%arg0: i32) -> (i32, i32) {
    %c0_i32 = arith.constant 0 : i32
    %c0_i32_0 = arith.constant 0 : i32
    %c0_i32_1 = arith.constant 0 : i32
    return %c0_i32, %c0_i32_0 : i32, i32
  }
  func.func @transform_3(%arg0: i32) -> (i32, i32) {
    %c0_i32 = arith.constant 0 : i32
    %c0_i32_0 = arith.constant 0 : i32
    %c0_i32_1 = arith.constant 0 : i32
    return %c0_i32, %c0_i32_0 : i32, i32
  }
  func.func @transform_4(%arg0: i32) -> (i32, i32) {
    %c0_i32 = arith.constant 0 : i32
    %c0_i32_0 = arith.constant 0 : i32
    %c0_i32_1 = arith.constant 0 : i32
    return %c0_i32, %c0_i32_0 : i32, i32
  }
  func.func @transform_5(%arg0: i32) -> (i32, i32) {
    %c0_i32 = arith.constant 0 : i32
    %c0_i32_0 = arith.constant 0 : i32
    %c0_i32_1 = arith.constant 0 : i32
    return %c0_i32, %c0_i32_0 : i32, i32
  }
  func.func @transform_6(%arg0: i32) -> (i32, i32) {
    %c0_i32 = arith.constant 0 : i32
    %c0_i32_0 = arith.constant 0 : i32
    %c0_i32_1 = arith.constant 0 : i32
    return %c0_i32, %c0_i32_0 : i32, i32
  }
  func.func @transform_7(%arg0: i32) -> (i32, i32, i32) {
    %c0_i32 = arith.constant 0 : i32
    %c0_i32_0 = arith.constant 0 : i32
    %c0_i32_1 = arith.constant 0 : i32
    return %arg0, %c0_i32, %c0_i32_0 : i32, i32, i32
  }
}

</mosaic_0001>

<bundles_post_ra>
// kernel: _lambda_.4
= control target key start
LH: loop header
LB: loop body
LE: loop exit
PB: predicated region body
PF: predicated region fallthrough
CT: control target
= control target key end

     0   :  { %s2127_s12 = smov 0   ;;  %s2834_s0 = inlined_call_operand.vmem [shape: bf16[5,9,3264], index: 0, kind: input, shape index: {}]   ;;  %s2835_s1 = inlined_call_operand.vmem [shape: bf16[16,9], index: 1, kind: input, shape index: {}]   ;;  %s2836_s2 = inlined_call_operand.vmem [shape: f32[16,1], index: 2, kind: input, shape index: {}]   ;;  %s2837_s3 = inlined_call_operand.vmem [shape: bf16[5,16,3264], index: 3, kind: output, shape index: {}]  }
   0x1 LB: > { %s1835_s13 = sadd.s32 4294967295, %s2101_s12   ;;  %p1839_p0 = scmp.ge.s32.totalorder %s2101_s12, 1  ;;  %s2101_s12 = sphi %s2127_s12, %s13_s12  }
   0x2   : > { %p137_p1 = scmp.lt.s32.totalorder %s2101_s12, 6 }
   0x4   : > { %p138_p2 = pnand %p1839_p0, %p137_p1 }
   0x6   : > { %141 = sbr.rel (%p138_p2) target bundleno = 344 (0x158), region = 32 }
   0xd   : > { %p161_p3 = scmp.lt.s32.totalorder %s1835_s13, 4  ;;  %p1842_p4 = scmp.ne.s32.totalorder %s1835_s13, 0 }
   0xe   : > { %vm201_vm0 = vcmask (!%p1842_p4), 523264   ;;  %v2103_v0 = vmov (!%p1842_p4), 0.0  }
   0xf   : > { %s162_s14 = scalar_select %p161_p3, %s1835_s13, 4 }
  0x10   : > { %175 = sbr.rel (%p1842_p4) target bundleno = 42 (0x2a), region = 36  ;;  %176 = vst [vmem:[#allocation2] sm:$0xff] (!%p1842_p4), %v2103_v0  ;;  %177 = vst [vmem:[#allocation2 + $0x8] sm:$0xff] (!%p1842_p4), %v2103_v0 }
  0x11   : > { %s2041_s15 = smul.u32 208, %s162_s14  ;;  %178 = vst [vmem:[#allocation2 + $0x10] sm:$0xff] (!%p1842_p4), %v2103_v0  ;;  %179 = vst [vmem:[#allocation2 + $0x18] sm:$0xff] (!%p1842_p4), %v2103_v0 }
  0x12   : > { %180 = vst [vmem:[#allocation2 + $0x20] sm:$0xff] (!%p1842_p4), %v2103_v0  ;;  %181 = vst [vmem:[#allocation2 + $0x28] sm:$0xff] (!%p1842_p4), %v2103_v0 }
  0x13   : > { %s2138_s18 = scalar_lea.vmem %s2834_s0, %s2041_s15  ;;  %s2143_s21 = scalar_lea.vmem %s2837_s3, %s2041_s15  ;;  %182 = vst [vmem:[#allocation2 + $0x30] sm:$0xff] (!%p1842_p4), %v2103_v0  ;;  %183 = vst [vmem:[#allocation2 + $0x38] sm:$0xff] (!%p1842_p4), %v2103_v0 }
  0x14   : > { %184 = vst [vmem:[#allocation2 + $0x40] sm:$0xff] (!%p1842_p4), %v2103_v0  ;;  %185 = vst [vmem:[#allocation2 + $0x48] sm:$0xff] (!%p1842_p4), %v2103_v0 }
  0x15   : > { %186 = vst [vmem:[#allocation2 + $0x50] sm:$0xff] (!%p1842_p4), %v2103_v0  ;;  %187 = vst [vmem:[#allocation2 + $0x58] sm:$0xff] (!%p1842_p4), %v2103_v0 }
  0x16   : > { %188 = vst [vmem:[#allocation2 + $0x60] sm:$0xff] (!%p1842_p4), %v2103_v0  ;;  %189 = vst [vmem:[#allocation2 + $0x68] sm:$0xff] (!%p1842_p4), %v2103_v0 }
  0x17   : > { %190 = vst [vmem:[#allocation2 + $0x70] sm:$0xff] %v2103_v0  ;;  %191 = vst [vmem:[#allocation2 + $0x78] sm:$0xff] %v2103_v0 }
  0x18   : > { %192 = vst [vmem:[#allocation2 + $0x80] sm:$0xff] %v2103_v0  ;;  %193 = vst [vmem:[#allocation2 + $0x88] sm:$0xff] %v2103_v0 }
  0x19   : > { %194 = vst [vmem:[#allocation2 + $0x90] sm:$0xff] %v2103_v0  ;;  %195 = vst [vmem:[#allocation2 + $0x98] sm:$0xff] %v2103_v0 }
  0x1a   : > { %196 = vst [vmem:[#allocation2 + $0xa0] sm:$0xff] %v2103_v0  ;;  %197 = vst [vmem:[#allocation2 + $0xa8] sm:$0xff] %v2103_v0 }
  0x1b   : > { %198 = vst [vmem:[#allocation2 + $0xb0] sm:$0xff] %v2103_v0  ;;  %199 = vst [vmem:[#allocation2 + $0xb8] sm:$0xff] %v2103_v0 }
  0x1c   : > { %200 = vst [vmem:[#allocation2 + $0xc0] sm:$0xff] %v2103_v0  ;;  %203 = vst [vmem:[#allocation2 + $0xd0] sm:$0xff] %v2103_v0 }
  0x1d   : > { %204 = vst [vmem:[#allocation2 + $0xd8] sm:$0xff] %v2103_v0  ;;  %205 = vst [vmem:[#allocation2 + $0xe0] sm:$0xff] %v2103_v0 }
  0x1e   : > { %206 = vst [vmem:[#allocation2 + $0xe8] sm:$0xff] %v2103_v0  ;;  %207 = vst [vmem:[#allocation2 + $0xf0] sm:$0xff] %v2103_v0 }
  0x1f   : > { %208 = vst [vmem:[#allocation2 + $0xf8] sm:$0xff] %v2103_v0  ;;  %209 = vst [vmem:[#allocation2 + $0x100] sm:$0xff] %v2103_v0 }
  0x20   : > { %210 = vst [vmem:[#allocation2 + $0x108] sm:$0xff] %v2103_v0  ;;  %211 = vst [vmem:[#allocation2 + $0x110] sm:$0xff] %v2103_v0 }
  0x21   : > { %212 = vst [vmem:[#allocation2 + $0x118] sm:$0xff] %v2103_v0  ;;  %213 = vst [vmem:[#allocation2 + $0x120] sm:$0xff] %v2103_v0 }
  0x22   : > { %214 = vst [vmem:[#allocation2 + $0x128] sm:$0xff] %v2103_v0  ;;  %215 = vst [vmem:[#allocation2 + $0x130] sm:$0xff] %v2103_v0 }
  0x23   : > { %216 = vst [vmem:[#allocation2 + $0x138] sm:$0xff] %v2103_v0  ;;  %217 = vst [vmem:[#allocation2 + $0x140] sm:$0xff] %v2103_v0 }
  0x24   : > { %218 = vst [vmem:[#allocation2 + $0x148] sm:$0xff] %v2103_v0  ;;  %219 = vst [vmem:[#allocation2 + $0x150] sm:$0xff] %v2103_v0 }
  0x25   : > { %220 = vst [vmem:[#allocation2 + $0x158] sm:$0xff] %v2103_v0  ;;  %221 = vst [vmem:[#allocation2 + $0x160] sm:$0xff] %v2103_v0 }
  0x26   : > { %222 = vst [vmem:[#allocation2 + $0x168] sm:$0xff] %v2103_v0  ;;  %223 = vst [vmem:[#allocation2 + $0x170] sm:$0xff] %v2103_v0 }
  0x27   : > { %224 = vst [vmem:[#allocation2 + $0x178] sm:$0xff] %v2103_v0  ;;  %225 = vst [vmem:[#allocation2 + $0x180] sm:$0xff] %v2103_v0 }
  0x28   : > { %226 = vst [vmem:[#allocation2 + $0x188] sm:$0xff] %v2103_v0  ;;  %227 = vst [vmem:[#allocation2 + $0x190] sm:$0xff] %v2103_v0 }
  0x29   : > { %202 = vst.msk [vmem:[#allocation2 + $0xc8] sm:$0xff] %vm201_vm0, %v2103_v0  ;;  %228 = vst.msk [vmem:[#allocation2 + $0x198] sm:$0xff] %vm201_vm0, %v2103_v0 }
  0x2a PF: > { %v2055_v1 = vld [vmem:[%s2138_s18 + $0x4] ss:$104 sps:$4 sm:$0x1f]   ;;  %vm382_vm1 = vcmask 1043456   ;;  %vm383_vm2 = vcmask 1044480   ;;  %v2104_v3 = vmov 65535  }
  0x2b   : > { %v2057_v2 = vld [vmem:[%s2138_s18] ss:$104 sps:$4 sm:$0x1f]   ;;  %v384_v4 = vsel %vm382_vm1, 4294967295, %v2104_v3  ;;  %v2105_v6 = vmov 0   ;;  %vm378_vm3 = vcmask 72704  }
  0x2c   : > { %v2150_v5 = vsel %vm383_vm2, %v384_v4, 0  ;;  %496 = vmatprep.mubr.bf16.mxu0 %v2105_v6  ;;  %539 = vmatprep.mubr.bf16.mxu1 %v2105_v6  ;;  %v2159_v9 = vld [vmem:[%s2835_s1] sm:$0xff]   ;;  %v2059_v10 = vld [vmem:[%s2138_s18 + $0x10] ss:$104 sps:$4 sm:$0x1f]   ;;  %v258_v41 = vld [vmem:[%s2836_s2 + $0x8] sm:$0xff] }
  0x2d   : > { %v390_v7 = vand.u32 %v2055_v1, %v2150_v5  ;;  %v387_v8 = vand.u32 %v2057_v2, %v2150_v5  ;;  %v2061_v11 = vld [vmem:[%s2138_s18 + $0x14] ss:$104 sps:$4 sm:$0x1f]   ;;  %2054 = vset.pattern.permute.xlu0 %v2105_v6  ;;  %v2064_v14 = vld [vmem:[%s2138_s18 + $0x8] ss:$104 sps:$4 sm:$0x1f]   ;;  %v399_v16 = vand.u32 %v2059_v10, %v2150_v5 }
  0x2e   : > { %v2062_v12 = vld [vmem:[%s2138_s18 + $0xc] ss:$104 sps:$4 sm:$0x1f]   ;;  %v402_v13 = vand.u32 %v2061_v11, %v2150_v5  ;;  %v2065_v17 = vld [vmem:[%s2138_s18 + $0x18] ss:$104 sps:$4 sm:$0x1f]   ;;  %v393_v19 = vand.u32 %v2064_v14, %v2150_v5 }
  0x2f   : > { %464 = vmatprep.subr.bf16.mxu0 %v390_v7  ;;  %v396_v15 = vand.u32 %v2062_v12, %v2150_v5  ;;  %v2067_v18 = vld [vmem:[%s2138_s18 + $0x1c] ss:$104 sps:$4 sm:$0x1f]   ;;  %v405_v22 = vand.u32 %v2065_v17, %v2150_v5  ;;  %v2073_v23 = vld [vmem:[%s2138_s18 + $0x2c] ss:$104 sps:$4 sm:$0x1f]  }
  0x30   : > { %465 = vmatpush1.bf16.msra.mxu0 %v387_v8  ;;  %v408_v20 = vand.u32 %v2067_v18, %v2150_v5  ;;  %v2070_v21 = vld [vmem:[%s2138_s18 + $0x24] ss:$104 sps:$4 sm:$0x1f]   ;;  %v2068_v24 = vld [vmem:[%s2138_s18 + $0x20] ss:$104 sps:$4 sm:$0x1f]   ;;  %v420_v26 = vand.u32 %v2073_v23, %v2150_v5 }
  0x31   : > { %550 = vmatprep.subr.bf16.mxu0 %v402_v13  ;;  %507 = vmatprep.subr.bf16.mxu1 %v396_v15  ;;  %v414_v25 = vand.u32 %v2070_v21, %v2150_v5  ;;  %v2076_v27 = vld [vmem:[%s2138_s18 + $0x34] ss:$104 sps:$4 sm:$0x1f]   ;;  %v2071_v28 = vld [vmem:[%s2138_s18 + $0x28] ss:$104 sps:$4 sm:$0x1f]   ;;  %v411_v29 = vand.u32 %v2068_v24, %v2150_v5 }
  0x32   : > { %508 = vmatpush1.bf16.msra.mxu1 %v393_v19  ;;  %v2079_v30 = vld [vmem:[%s2138_s18 + $0x3c] ss:$104 sps:$4 sm:$0x1f]   ;;  %v426_v31 = vand.u32 %v2076_v27, %v2150_v5  ;;  %v417_v32 = vand.u32 %v2071_v28, %v2150_v5  ;;  %v2074_v33 = vld [vmem:[%s2138_s18 + $0x30] ss:$104 sps:$4 sm:$0x1f]  }
  0x33   : > { %1870 = vmatmul.mubr.msk.bf16.vlgmr.msra.gmra.mrb[0].mxu0 %vm378_vm3, %v2159_v9  ;;  %593 = vmatprep.subr.bf16.mxu1 %v408_v20  ;;  %v432_v34 = vand.u32 %v2079_v30, %v2150_v5  ;;  %v2082_v35 = vld [vmem:[%s2138_s18 + $0x44] ss:$104 sps:$4 sm:$0x1f]   ;;  %v2077_v37 = vld [vmem:[%s2138_s18 + $0x38] ss:$104 sps:$4 sm:$0x1f]   ;;  %v423_v38 = vand.u32 %v2074_v33, %v2150_v5 }
  0x34   : > { %551 = vmatpush1.bf16.msra.mxu0 %v399_v16  ;;  %582 = vmatprep.mubr.bf16.mxu0 %v2105_v6  ;;  %v257_v36 = vld [vmem:[%s2836_s2] sm:$0xff]  ;;  %v2085_v39 = vld [vmem:[%s2138_s18 + $0x4c] ss:$104 sps:$4 sm:$0x1f]   ;;  %v438_v40 = vand.u32 %v2082_v35, %v2150_v5  ;;  %v429_v42 = vand.u32 %v2077_v37, %v2150_v5  ;;  %v1050_v63 = vld [vmem:[#allocation2 + $0xd8] sm:$0xff]  ;;  %v2106_v4 = vmov 0.0  }
  0x35   : > { %1871 = vmatmul.mubr.msk.bf16.vlgmr.msra.gmra.mrb[0].mxu1 %vm378_vm3, %v2159_v9  ;;  %636 = vmatprep.subr.bf16.mxu0 %v414_v25  ;;  %v2080_v43 = vld [vmem:[%s2138_s18 + $0x40] ss:$104 sps:$4 sm:$0x1f]   ;;  %v444_v44 = vand.u32 %v2085_v39, %v2150_v5  ;;  %v2088_v45 = vld [vmem:[%s2138_s18 + $0x54] ss:$104 sps:$4 sm:$0x1f]  }
  0x36   : > { %594 = vmatpush1.bf16.msra.mxu1 %v405_v22  ;;  %625 = vmatprep.mubr.bf16.mxu1 %v2105_v6  ;;  %v2083_v46 = vld [vmem:[%s2138_s18 + $0x48] ss:$104 sps:$4 sm:$0x1f]   ;;  %v435_v47 = vand.u32 %v2080_v43, %v2150_v5  ;;  %v2091_v48 = vld [vmem:[%s2138_s18 + $0x5c] ss:$104 sps:$4 sm:$0x1f]   ;;  %v450_v49 = vand.u32 %v2088_v45, %v2150_v5 }
  0x37   : > { %679 = vmatprep.subr.bf16.mxu1 %v420_v26  ;;  %261 = vperm.xlu0 %2054, %v257_v36   ;;  %v441_v50 = vand.u32 %v2083_v46, %v2150_v5  ;;  %v2086_v51 = vld [vmem:[%s2138_s18 + $0x50] ss:$104 sps:$4 sm:$0x1f]   ;;  %v456_v52 = vand.u32 %v2091_v48, %v2150_v5  ;;  %v2094_v53 = vld [vmem:[%s2138_s18 + $0x64] ss:$104 sps:$4 sm:$0x1f]  }
  0x38   : > { %v2089_v54 = vld [vmem:[%s2138_s18 + $0x58] ss:$104 sps:$4 sm:$0x1f]   ;;  %v447_v55 = vand.u32 %v2086_v51, %v2150_v5  ;;  %v462_v56 = vand.u32 %v2094_v53, %v2150_v5  ;;  %v1024_v61 = vld [vmem:[#allocation2 + $0x8] sm:$0xff]  ;;  %v1049_v62 = vld [vmem:[#allocation2 + $0xd0] sm:$0xff]  ;;  %vm1102_vm7 = vcmp.gt.f32.partialorder %v1050_v63, 1.0 }
  0x39   : > { %v453_v57 = vand.u32 %v2089_v54, %v2150_v5  ;;  %v2092_v58 = vld [vmem:[%s2138_s18 + $0x60] ss:$104 sps:$4 sm:$0x1f]   ;;  %vm1076_vm5 = vcmp.gt.f32.partialorder %v1024_v61, 1.0  ;;  %vm1101_vm6 = vcmp.gt.f32.partialorder %v1049_v62, 1.0  ;;  %v1025_v2 = vld [vmem:[#allocation2 + $0x10] sm:$0xff] }
  0x3a   : > { %v459_v59 = vand.u32 %v2092_v58, %v2150_v5  ;;  %v1023_v60 = vld [vmem:[#allocation2] sm:$0xff]  ;;  %v2255_v1 = vmul.f32 0.95, %v1024_v61  ;;  %v1026_v3 = vld [vmem:[#allocation2 + $0x18] sm:$0xff]  ;;  %vm1077_vm8 = vcmp.gt.f32.partialorder %v1025_v2, 1.0  ;;  %v2263_v8 = vsel %vm1076_vm5, 1.0, %v2106_v4 }
  0x3b   : > { %1872 = vmatmul.mubr.msk.bf16.vlgmr.msra.gmra.mrb[4].mxu0 %vm378_vm3, %v2159_v9  ;;  %266 = vperm.xlu0 %2054, %v258_v41   ;;  %vm1075_vm4 = vcmp.gt.f32.partialorder %v1023_v60, 1.0  ;;  %v2253_v0 = vmul.f32 0.95, %v1023_v60  ;;  %v1051_v7 = vld [vmem:[#allocation2 + $0xe0] sm:$0xff]  ;;  %v2268_v10 = vmul.f32 0.95, %v1050_v63 }
  0x3c   : > { %637 = vmatpush1.bf16.msra.mxu0 %v411_v29  ;;  %668 = vmatprep.mubr.bf16.mxu0 %v2105_v6  ;;  %v2258_v5 = vsel %vm1075_vm4, 1.0, %v2106_v4  ;;  %vm1078_vm9 = vcmp.gt.f32.partialorder %v1026_v3, 1.0  ;;  %v1027_v11 = vld [vmem:[#allocation2 + $0x20] sm:$0xff]  ;;  %v2270_v12 = vmul.f32 0.95, %v1025_v2  ;;  %vm1103_vm10 = vcmp.gt.f32.partialorder %v1051_v7, 1.0 }
  0x3d   : > { %722 = vmatprep.subr.bf16.mxu0 %v426_v31  ;;  %1873 = vmatmul.mubr.msk.bf16.vlgmr.msra.gmra.mrb[4].mxu1 %vm378_vm3, %v2159_v9  ;;  %v2272_v13 = vmul.f32 0.95, %v1026_v3  ;;  %v1052_v14 = vld [vmem:[#allocation2 + $0xe8] sm:$0xff]  ;;  %v2275_v15 = vsel %vm1102_vm7, 1.0, %v2106_v4  ;;  %v2278_v16 = vsel %vm1077_vm8, 1.0, %v2106_v4  ;;  %v1053_v19 = vld [vmem:[#allocation2 + $0xf0] sm:$0xff] }
  0x3e   : > { %680 = vmatpush1.bf16.msra.mxu1 %v417_v32  ;;  %711 = vmatprep.mubr.bf16.mxu1 %v2105_v6  ;;  %v2280_v17 = vmul.f32 0.95, %v1051_v7  ;;  %v1028_v18 = vld [vmem:[#allocation2 + $0x28] sm:$0xff]  ;;  %v2283_v20 = vsel %vm1078_vm9, 1.0, %v2106_v4  ;;  %vm1079_vm11 = vcmp.gt.f32.partialorder %v1027_v11, 1.0  ;;  %vm1104_vm12 = vcmp.gt.f32.partialorder %v1052_v14, 1.0 }
  0x3f   : > { %765 = vmatprep.subr.bf16.mxu1 %v432_v34  ;;  %v2285_v21 = vmul.f32 0.95, %v1027_v11  ;;  %v1054_v22 = vld [vmem:[#allocation2 + $0xf8] sm:$0xff]  ;;  %v2288_v23 = vsel %vm1103_vm10, 1.0, %v2106_v4  ;;  %v2290_v24 = vmul.f32 0.95, %v1052_v14 }
  0x40   : > { %vm1080_vm13 = vcmp.gt.f32.partialorder %v1028_v18, 1.0  ;;  %vm1105_vm14 = vcmp.gt.f32.partialorder %v1053_v19, 1.0  ;;  %v1029_v25 = vld [vmem:[#allocation2 + $0x30] sm:$0xff]  ;;  %v2292_v26 = vmul.f32 0.95, %v1028_v18  ;;  %v1030_v28 = vld [vmem:[#allocation2 + $0x38] sm:$0xff] }
  0x41   : > { %v2294_v27 = vmul.f32 0.95, %v1053_v19  ;;  %v1055_v29 = vld [vmem:[#allocation2 + $0x100] sm:$0xff]  ;;  %v2297_v30 = vsel %vm1079_vm11, 1.0, %v2106_v4  ;;  %v2300_v31 = vsel %vm1104_vm12, 1.0, %v2106_v4  ;;  %vm1106_vm15 = vcmp.gt.f32.partialorder %v1054_v22, 1.0 }
  0x42   : > { %v2302_v32 = vmul.f32 0.95, %v1054_v22  ;;  %v1031_v33 = vld [vmem:[#allocation2 + $0x40] sm:$0xff]  ;;  %v2305_v34 = vsel %vm1080_vm13, 1.0, %v2106_v4  ;;  %v2308_v35 = vsel %vm1105_vm14, 1.0, %v2106_v4  ;;  %vm1081_vm0 = vcmp.gt.f32.partialorder %v1029_v25, 1.0 }
  0x43   : > { %1874 = vmatmul.mubr.msk.bf16.vlgmr.msra.gmra.mrb[8].mxu0 %vm378_vm3, %v2159_v9  ;;  %v2310_v36 = vmul.f32 0.95, %v1029_v25  ;;  %v1056_v37 = vld [vmem:[#allocation2 + $0x108] sm:$0xff]  ;;  %vm1082_vm2 = vcmp.gt.f32.partialorder %v1030_v28, 1.0  ;;  %v2314_v39 = vmul.f32 0.95, %v1055_v29 }
  0x44   : > { %723 = vmatpush1.bf16.msra.mxu0 %v423_v38  ;;  %754 = vmatprep.mubr.bf16.mxu0 %v2105_v6  ;;  %v2312_v38 = vmul.f32 0.95, %v1030_v28  ;;  %v2317_v41 = vsel %vm1106_vm15, 1.0, %v2106_v4  ;;  %vm1083_vm4 = vcmp.gt.f32.partialorder %v1031_v33, 1.0  ;;  %v1057_v43 = vld [vmem:[#allocation2 + $0x110] sm:$0xff]  ;;  %vm1108_vm5 = vcmp.gt.f32.partialorder %v1056_v37, 1.0 }
  0x45   : > { %808 = vmatprep.subr.bf16.mxu0 %v438_v40  ;;  %1875 = vmatmul.mubr.msk.bf16.vlgmr.msra.gmra.mrb[8].mxu1 %vm378_vm3, %v2159_v9  ;;  %v1032_v40 = vld [vmem:[#allocation2 + $0x48] sm:$0xff]  ;;  %v2324_v45 = vmul.f32 0.95, %v1056_v37  ;;  %v1058_v46 = vld [vmem:[#allocation2 + $0x118] sm:$0xff]  ;;  %vm1109_vm7 = vcmp.gt.f32.partialorder %v1057_v43, 1.0  ;;  %v2335_v51 = vsel %vm1083_vm4, 1.0, %v2106_v4 }
  0x46   : > { %766 = vmatpush1.bf16.msra.mxu1 %v429_v42  ;;  %797 = vmatprep.mubr.bf16.mxu1 %v2105_v6  ;;  %v2319_v42 = vmul.f32 0.95, %v1031_v33  ;;  %v2329_v48 = vmul.f32 0.95, %v1032_v40  ;;  %vm1110_vm8 = vcmp.gt.f32.partialorder %v1058_v46, 1.0  ;;  %v1034_v53 = vld [vmem:[#allocation2 + $0x58] sm:$0xff] }
  0x47   : > { %851 = vmatprep.subr.bf16.mxu1 %v444_v44  ;;  %v2322_v44 = vsel %vm1081_vm0, 1.0, %v2106_v4  ;;  %v1059_v54 = vld [vmem:[#allocation2 + $0x120] sm:$0xff]  ;;  %v2351_v60 = vsel %vm1110_vm8, 1.0, %v2106_v4  ;;  %vm1086_vm10 = vcmp.gt.f32.partialorder %v1034_v53, 1.0  ;;  %v1060_v2 = vld [vmem:[#allocation2 + $0x128] sm:$0xff]  ;;  %v1061_v14 = vld [vmem:[#allocation2 + $0x130] sm:$0xff] }
  0x48   : > { %v1035_v58 = vld [vmem:[#allocation2 + $0x60] sm:$0xff]  ;;  %v2357_v63 = vmul.f32 0.95, %v1059_v54  ;;  %v1036_v3 = vld [vmem:[#allocation2 + $0x68] sm:$0xff]  ;;  %vm1111_vm11 = vcmp.gt.f32.partialorder %v1059_v54, 1.0  ;;  %v2365_v18 = vsel %vm1086_vm10, 1.0, %v2106_v4 }
  0x49   : > { %vm1087_vm12 = vcmp.gt.f32.partialorder %v1035_v58, 1.0  ;;  %v2362_v11 = vmul.f32 0.95, %v1035_v58  ;;  %vm1112_vm13 = vcmp.gt.f32.partialorder %v1060_v2, 1.0  ;;  %vm1088_vm14 = vcmp.gt.f32.partialorder %v1036_v3, 1.0  ;;  %v1062_v19 = vld [vmem:[#allocation2 + $0x138] sm:$0xff] }
  0x4a   : > { %vm1113_vm15 = vcmp.gt.f32.partialorder %v1061_v14, 1.0  ;;  %v2367_v22 = vmul.f32 0.95, %v1060_v2  ;;  %v2369_v25 = vmul.f32 0.95, %v1036_v3  ;;  %vm1114_vm0 = vcmp.gt.f32.partialorder %v1062_v19, 1.0 }
  0x4b   : > { %1876 = vmatmul.mubr.msk.bf16.vlgmr.msra.gmra.mrb[12].mxu0 %vm378_vm3, %v2159_v9  ;;  %2838 = vst [vmem:[#allocation3_spill] sm:$0xff] %v2362_v11  ;;  %v1037_v28 = vld [vmem:[#allocation2 + $0x70] sm:$0xff]  ;;  %v2375_v33 = vsel %vm1087_vm12, 1.0, %v2106_v4  ;;  %v2377_v37 = vmul.f32 0.95, %v1061_v14  ;;  %v1039_v58 = vld [vmem:[#allocation2 + $0x80] sm:$0xff] }
  0x4c   : > { %809 = vmatpush1.bf16.msra.mxu0 %v435_v47  ;;  %840 = vmatprep.mubr.bf16.mxu0 %v2105_v6  ;;  %v2327_v47 = vsel %vm1082_vm2, 1.0, %v2106_v4  ;;  %2839 = vst [vmem:[#allocation4_spill] sm:$0xff] %v2367_v22  ;;  %2840 = vst [vmem:[#allocation5_spill] sm:$0xff] %v2369_v25  ;;  %v2388_v54 = vmul.f32 0.95, %v1062_v19  ;;  %v2391_v2 = vsel %vm1114_vm0, 1.0, %v2106_v4 }
  0x4d   : > { %894 = vmatprep.subr.bf16.mxu0 %v450_v49  ;;  %1877 = vmatmul.mubr.msk.bf16.vlgmr.msra.gmra.mrb[12].mxu1 %vm378_vm3, %v2159_v9  ;;  %v1033_v49 = vld [vmem:[#allocation2 + $0x50] sm:$0xff]  ;;  %2842 = vst [vmem:[#allocation7_spill] sm:$0xff] %v2375_v33  ;;  %2843 = vst [vmem:[#allocation8_spill] sm:$0xff] %v2377_v37  ;;  %vm1089_vm2 = vcmp.gt.f32.partialorder %v1037_v28, 1.0  ;;  %v2393_v3 = vmul.f32 0.95, %v1037_v28 }
  0x4e   : > { %852 = vmatpush1.bf16.msra.mxu1 %v441_v50  ;;  %883 = vmatprep.mubr.bf16.mxu1 %v2105_v6  ;;  %vm1085_vm9 = vcmp.gt.f32.partialorder %v1033_v49, 1.0  ;;  %v2353_v61 = vmul.f32 0.95, %v1033_v49  ;;  %v2383_v49 = vsel %vm1088_vm14, 1.0, %v2106_v4  ;;  %2847 = vst [vmem:[#allocation12_spill] sm:$0xff] %v2388_v54  ;;  %2848 = vst [vmem:[#allocation13_spill] sm:$0xff] %v2391_v2 }
  0x4f   : > { %937 = vmatprep.subr.bf16.mxu1 %v456_v52  ;;  %v2337_v52 = vmul.f32 0.95, %v1057_v43  ;;  %v2360_v7 = vsel %vm1085_vm9, 1.0, %v2106_v4  ;;  %v1063_v43 = vld [vmem:[#allocation2 + $0x140] sm:$0xff]  ;;  %2845 = vst [vmem:[#allocation10_spill] sm:$0xff] %v2383_v49  ;;  %2849 = vst [vmem:[#allocation14_spill] sm:$0xff] %v2393_v3 }
  0x50   : > { %v2397_v33 = vmul.f32 0.95, %v1063_v43  ;;  %v1040_v37 = vld [vmem:[#allocation2 + $0x88] sm:$0xff]  ;;  %vm1115_vm4 = vcmp.gt.f32.partialorder %v1063_v43, 1.0  ;;  %v2399_v49 = vmul.f32 0.95, %v1039_v58 }
  0x51   : > { %v1065_v19 = vld [vmem:[#allocation2 + $0x150] sm:$0xff]  ;;  %v1066_v28 = vld [vmem:[#allocation2 + $0x158] sm:$0xff]  ;;  %v1068_v54 = vld [vmem:[#allocation2 + $0x168] sm:$0xff] }
  0x52   : > { %2851 = vst [vmem:[#allocation16_spill] sm:$0xff] %v2397_v33  ;;  %2852 = vst [vmem:[#allocation17_spill] sm:$0xff] %v2399_v49  ;;  %vm1117_vm8 = vcmp.gt.f32.partialorder %v1065_v19, 1.0  ;;  %v2409_v33 = vmul.f32 0.95, %v1040_v37  ;;  %v1042_v43 = vld [vmem:[#allocation2 + $0x98] sm:$0xff] }
  0x53   : > { %1878 = vmatmul.mubr.msk.bf16.vlgmr.msra.gmra.mrb[16].mxu0 %vm378_vm3, %v2159_v9  ;;  %vm1118_vm9 = vcmp.gt.f32.partialorder %v1066_v28, 1.0  ;;  %vm1120_vm14 = vcmp.gt.f32.partialorder %v1068_v54, 1.0 }
  0x54   : > { %895 = vmatpush1.bf16.msra.mxu0 %v447_v55  ;;  %926 = vmatprep.mubr.bf16.mxu0 %v2105_v6  ;;  %v2340_v55 = vsel %vm1108_vm5, 1.0, %v2106_v4  ;;  %vm1091_vm5 = vcmp.gt.f32.partialorder %v1039_v58, 1.0  ;;  %2856 = vst [vmem:[#allocation21_spill] sm:$0xff] %v2409_v33  ;;  %v2412_v58 = vsel %vm1115_vm4, 1.0, %v2106_v4  ;;  %v2428_v33 = vmul.f32 0.95, %v1066_v28 }
  0x55   : > { %980 = vmatprep.subr.bf16.mxu0 %v462_v56  ;;  %1879 = vmatmul.mubr.msk.bf16.vlgmr.msra.gmra.mrb[16].mxu1 %vm378_vm3, %v2159_v9  ;;  %2857 = vst [vmem:[#allocation22_spill] sm:$0xff] %v2412_v58  ;;  %v2415_v49 = vsel %vm1091_vm5, 1.0, %v2106_v4  ;;  %v2432_v58 = vmul.f32 0.95, %v1042_v43  ;;  %v2441_v28 = vmul.f32 0.95, %v1068_v54 }
  0x56   : > { %938 = vmatpush1.bf16.msra.mxu1 %v453_v57  ;;  %969 = vmatprep.mubr.bf16.mxu1 %v2105_v6  ;;  %v2345_v57 = vmul.f32 0.95, %v1058_v46  ;;  %v2380_v46 = vsel %vm1112_vm13, 1.0, %v2106_v4  ;;  %2858 = vst [vmem:[#allocation23_spill] sm:$0xff] %v2415_v49  ;;  %2863 = vst [vmem:[#allocation28_spill] sm:$0xff] %v2428_v33  ;;  %v1043_v49 = vld [vmem:[#allocation2 + $0xa0] sm:$0xff] }
  0x57   : > { %2844 = vst [vmem:[#allocation9_spill] sm:$0xff] %v2380_v46  ;;  %v1064_v46 = vld [vmem:[#allocation2 + $0x148] sm:$0xff]  ;;  %2865 = vst [vmem:[#allocation30_spill] sm:$0xff] %v2432_v58  ;;  %vm1095_vm13 = vcmp.gt.f32.partialorder %v1043_v49, 1.0  ;;  %v1070_v58 = vld [vmem:[#allocation2 + $0x178] sm:$0xff]  ;;  %v2460_v54 = vsel %vm1120_vm14, 1.0, %v2106_v4 }
  0x58   : > { %2869 = vst [vmem:[#allocation34_spill] sm:$0xff] %v2441_v28  ;;  %2875 = vst [vmem:[#allocation40_spill] sm:$0xff] %v2460_v54 }
  0x5b   : > { %1880 = vmatmul.mubr.msk.bf16.vlgmr.msra.gmra.mrb[20].mxu0 %vm378_vm3, %v2159_v9 }
  0x5c   : > { %981 = vmatpush1.bf16.msra.mxu0 %v459_v59  ;;  %1012 = vmatprep.mubr.bf16.mxu0 %v2105_v6  ;;  %v2260_v6 = vmul.f32 0.95, %v1049_v62  ;;  %v2348_v59 = vsel %vm1109_vm7, 1.0, %v2106_v4  ;;  %v2355_v62 = vmul.f32 0.95, %v1034_v53  ;;  %v2386_v53 = vsel %vm1113_vm15, 1.0, %v2106_v4 }
  0x5d   : > { %1881 = vmatmul.mubr.msk.bf16.vlgmr.msra.gmra.mrb[20].mxu1 %vm378_vm3, %v2159_v9  ;;  %2846 = vst [vmem:[#allocation11_spill] sm:$0xff] %v2386_v53  ;;  %v2402_v53 = vsel %vm1089_vm2, 1.0, %v2106_v4  ;;  %vm1092_vm7 = vcmp.gt.f32.partialorder %v1040_v37, 1.0  ;;  %v2426_v37 = vmul.f32 0.95, %v1065_v19  ;;  %vm1122_vm2 = vcmp.gt.f32.partialorder %v1070_v58, 1.0 }
  0x5e   : > { %2853 = vst [vmem:[#allocation18_spill] sm:$0xff] %v2402_v53  ;;  %v2421_v3 = vsel %vm1092_vm7, 1.0, %v2106_v4  ;;  %v2439_v19 = vmul.f32 0.95, %v1043_v49  ;;  %v2457_v49 = vsel %vm1095_vm13, 1.0, %v2106_v4 }
  0x5f   : > { %2860 = vst [vmem:[#allocation25_spill] sm:$0xff] %v2421_v3  ;;  %2862 = vst [vmem:[#allocation27_spill] sm:$0xff] %v2426_v37  ;;  %v1044_v3 = vld [vmem:[#allocation2 + $0xa8] sm:$0xff] }
  0x60   : > { %vm1096_vm15 = vcmp.gt.f32.partialorder %v1044_v3, 1.0  ;;  %2868 = vst [vmem:[#allocation33_spill] sm:$0xff] %v2439_v19  ;;  %2874 = vst [vmem:[#allocation39_spill] sm:$0xff] %v2457_v49  ;;  %v1045_v19 = vld [vmem:[#allocation2 + $0xb0] sm:$0xff] }
  0x61   : > { %v2463_v28 = vsel %vm1096_vm15, 1.0, %v2106_v4  ;;  %v2472_v49 = vmul.f32 0.95, %v1045_v19 }
  0x62   : > { %2876 = vst [vmem:[#allocation41_spill] sm:$0xff] %v2463_v28  ;;  %v1047_v28 = vld [vmem:[#allocation2 + $0xc0] sm:$0xff] }
  0x63   : > { %1882 = vmatmul.mubr.msk.bf16.vlgmr.msra.gmra.mrb[24].mxu0 %vm378_vm3, %v2159_v9  ;;  %v2266_v9 = vsel %vm1101_vm6, 1.0, %v2106_v4  ;;  %vm1107_vm3 = vcmp.gt.f32.partialorder %v1055_v29, 1.0  ;;  %vm1084_vm6 = vcmp.gt.f32.partialorder %v1032_v40, 1.0  ;;  %v2372_v29 = vsel %vm1111_vm11, 1.0, %v2106_v4  ;;  %v1038_v40 = vld [vmem:[#allocation2 + $0x78] sm:$0xff]  ;;  %2880 = vst [vmem:[#allocation45_spill] sm:$0xff] %v2472_v49 }
  0x64   : > { %v2332_v50 = vsel %vm1107_vm3, 1.0, %v2106_v4  ;;  %v2343_v56 = vsel %vm1084_vm6, 1.0, %v2106_v4  ;;  %2841 = vst [vmem:[#allocation6_spill] sm:$0xff] %v2372_v29  ;;  %vm1090_vm3 = vcmp.gt.f32.partialorder %v1038_v40, 1.0  ;;  %v2395_v14 = vmul.f32 0.95, %v1038_v40 }
  0x65   : > { %vm1116_vm6 = vcmp.gt.f32.partialorder %v1064_v46, 1.0  ;;  %v2405_v2 = vsel %vm1090_vm3, 1.0, %v2106_v4  ;;  %v2407_v40 = vmul.f32 0.95, %v1064_v46  ;;  %v2424_v46 = vsel %vm1117_vm8, 1.0, %v2106_v4 }
  0x66   : > { %2850 = vst [vmem:[#allocation15_spill] sm:$0xff] %v2395_v14  ;;  %2854 = vst [vmem:[#allocation19_spill] sm:$0xff] %v2405_v2  ;;  %v1041_v14 = vld [vmem:[#allocation2 + $0x90] sm:$0xff]  ;;  %v2418_v53 = vsel %vm1116_vm6, 1.0, %v2106_v4  ;;  %v1067_v2 = vld [vmem:[#allocation2 + $0x160] sm:$0xff]  ;;  %vm1094_vm11 = vcmp.gt.f32.partialorder %v1042_v43, 1.0 }
  0x67   : > { %2855 = vst [vmem:[#allocation20_spill] sm:$0xff] %v2407_v40  ;;  %2859 = vst [vmem:[#allocation24_spill] sm:$0xff] %v2418_v53  ;;  %v2430_v40 = vmul.f32 0.95, %v1041_v14  ;;  %v2435_v53 = vsel %vm1118_vm9, 1.0, %v2106_v4  ;;  %vm1093_vm10 = vcmp.gt.f32.partialorder %v1041_v14, 1.0 }
  0x68   : > { %2861 = vst [vmem:[#allocation26_spill] sm:$0xff] %v2424_v46  ;;  %2866 = vst [vmem:[#allocation31_spill] sm:$0xff] %v2435_v53  ;;  %v2437_v25 = vmul.f32 0.95, %v1067_v2  ;;  %vm1119_vm12 = vcmp.gt.f32.partialorder %v1067_v2, 1.0  ;;  %v2446_v46 = vsel %vm1093_vm10, 1.0, %v2106_v4 }
  0x69   : > { %2864 = vst [vmem:[#allocation29_spill] sm:$0xff] %v2430_v40  ;;  %v1069_v40 = vld [vmem:[#allocation2 + $0x170] sm:$0xff]  ;;  %2870 = vst [vmem:[#allocation35_spill] sm:$0xff] %v2446_v46  ;;  %v2449_v14 = vsel %vm1094_vm11, 1.0, %v2106_v4  ;;  %v2451_v43 = vmul.f32 0.95, %v1044_v3 }
  0x6a   : > { %2867 = vst [vmem:[#allocation32_spill] sm:$0xff] %v2437_v25  ;;  %2871 = vst [vmem:[#allocation36_spill] sm:$0xff] %v2449_v14  ;;  %vm1121_vm0 = vcmp.gt.f32.partialorder %v1069_v40, 1.0  ;;  %v2454_v2 = vsel %vm1119_vm12, 1.0, %v2106_v4  ;;  %v1046_v25 = vld [vmem:[#allocation2 + $0xb8] sm:$0xff]  ;;  %vm1097_vm3 = vcmp.gt.f32.partialorder %v1045_v19, 1.0 }
  0x6b   : > { %2872 = vst [vmem:[#allocation37_spill] sm:$0xff] %v2451_v43  ;;  %2873 = vst [vmem:[#allocation38_spill] sm:$0xff] %v2454_v2  ;;  %v2465_v46 = vmul.f32 0.95, %v1069_v40  ;;  %v2467_v3 = vmul.f32 0.95, %v1070_v58 }
  0x6c   : > { %v1071_v43 = vld [vmem:[#allocation2 + $0x180] sm:$0xff]  ;;  %v2470_v14 = vsel %vm1121_vm0, 1.0, %v2106_v4  ;;  %vm1098_vm4 = vcmp.gt.f32.partialorder %v1046_v25, 1.0  ;;  %v2474_v54 = vmul.f32 0.95, %v1046_v25  ;;  %v1072_v2 = vld [vmem:[#allocation2 + $0x188] sm:$0xff] }
  0x6d   : > { %2877 = vst [vmem:[#allocation42_spill] sm:$0xff] %v2465_v46  ;;  %2878 = vst [vmem:[#allocation43_spill] sm:$0xff] %v2467_v3  ;;  %vm1123_vm5 = vcmp.gt.f32.partialorder %v1071_v43, 1.0  ;;  %v2477_v53 = vsel %vm1122_vm2, 1.0, %v2106_v4  ;;  %v2479_v40 = vmul.f32 0.95, %v1071_v43 }
  0x6e   : > { %2879 = vst [vmem:[#allocation44_spill] sm:$0xff] %v2470_v14  ;;  %2881 = vst [vmem:[#allocation46_spill] sm:$0xff] %v2474_v54  ;;  %vm1124_vm6 = vcmp.gt.f32.partialorder %v1072_v2, 1.0  ;;  %vm1099_vm7 = vcmp.gt.f32.partialorder %v1047_v28, 1.0  ;;  %v1048_v58 = vld [vmem:[#allocation2 + $0xc8] sm:$0xff]  ;;  %v2484_v14 = vsel %vm1097_vm3, 1.0, %v2106_v4 }
  0x6f   : > { %2882 = vst [vmem:[#allocation47_spill] sm:$0xff] %v2477_v53  ;;  %2883 = vst [vmem:[#allocation48_spill] sm:$0xff] %v2479_v40  ;;  %v2487_v19 = vsel %vm1098_vm4, 1.0, %v2106_v4  ;;  %v2490_v25 = vsel %vm1123_vm5, 1.0, %v2106_v4  ;;  %vm1100_vm8 = vcmp.gt.f32.partialorder %v1048_v58, 1.0  ;;  %v1073_v54 = vld [vmem:[#allocation2 + $0x190] sm:$0xff] }
  0x70   : > { %2884 = vst [vmem:[#allocation49_spill] sm:$0xff] %v2484_v14  ;;  %2885 = vst [vmem:[#allocation50_spill] sm:$0xff] %v2487_v19  ;;  %v2493_v49 = vmul.f32 0.95, %v1072_v2  ;;  %v2495_v53 = vmul.f32 0.95, %v1047_v28 }
  0x71   : > { %2886 = vst [vmem:[#allocation51_spill] sm:$0xff] %v2490_v25  ;;  %vm1125_vm9 = vcmp.gt.f32.partialorder %v1073_v54, 1.0  ;;  %v2500_v14 = vsel %vm1124_vm6, 1.0, %v2106_v4  ;;  %v2504_v25 = vsel %vm1099_vm7, 1.0, %v2106_v4  ;;  %v2506_v19 = vmul.f32 0.95, %v1048_v58 }
  0x72   : > { %2887 = vst [vmem:[#allocation52_spill] sm:$0xff] %v2493_v49  ;;  %2888 = vst [vmem:[#allocation53_spill] sm:$0xff] %v2495_v53  ;;  %v2516_v2 = vmul.f32 0.95, %v1073_v54 }
  0x73   : > { %2889 = vst [vmem:[#allocation54_spill] sm:$0xff] %v2500_v14  ;;  %2890 = vst [vmem:[#allocation55_spill] sm:$0xff] %v2504_v25 }
  0x74   : > { %2891 = vst [vmem:[#allocation56_spill] sm:$0xff] %v2506_v19  ;;  %2893 = vst [vmem:[#allocation58_spill] sm:$0xff] %v2516_v2 }
  0xb6   : > { %v2443_v33 = vpop.permute.xlu0 %261 }
  0xba   : > { %v2481_v46 = vpop.permute.xlu0 %266 }
 0x106   : > { %v498_v3 = vpop.f32.mrb[0].mxu0 }
 0x107   : > { %v499_v43 = vadd.f32 %v498_v3, %v2443_v33  ;;  %v500_v40 = vpop.f32.mrb[1].mxu0  ;;  %v2508_v3 = vld [vmem:[#allocation2 + $0x198] sm:$0xff] }
 0x108   : > { %v501_v37 = vadd.f32 %v500_v40, %v2443_v33  ;;  %v502_v22 = vpop.f32.mrb[2].mxu0  ;;  %v541_v29 = vpop.f32.mrb[0].mxu1  ;;  %v2514_v40 = vsel %vm1100_vm8, 1.0, %v2106_v4  ;;  %v2529_v2 = vmul.f32 0.95, %v2508_v3 }
 0x109   : > { %v1283_v49 = vadd.f32 %v2253_v0, %v499_v43  ;;  %v503_v53 = vadd.f32 %v502_v22, %v2481_v46  ;;  %v504_v11 = vpop.f32.mrb[3].mxu0  ;;  %2892 = vst [vmem:[#allocation57_spill] sm:$0xff] %v2514_v40  ;;  %v542_v19 = vadd.f32 %v541_v29, %v2443_v33  ;;  %v543_v14 = vpop.f32.mrb[1].mxu1  ;;  %v2523_v0 = vsel %vm1125_vm9, 1.0, %v2106_v4 }
 0x10a   : > { %v1284_v28 = vadd.f32 %v2255_v1, %v501_v37  ;;  %v505_v25 = vadd.f32 %v504_v11, %v2481_v46  ;;  %v544_v58 = vadd.f32 %v543_v14, %v2443_v33  ;;  %v545_v40 = vpop.f32.mrb[2].mxu1 }
 0x10b   : > { %v1335_v22 = vsub.f32 %v1283_v49, %v2258_v5  ;;  %v1309_v43 = vadd.f32 %v2260_v6, %v503_v53  ;;  %v1285_v29 = vadd.f32 %v2270_v12, %v542_v19  ;;  %v546_v37 = vadd.f32 %v545_v40, %v2481_v46  ;;  %v547_v54 = vpop.f32.mrb[3].mxu1 }
 0x10c   : > { %v1336_v1 = vsub.f32 %v1284_v28, %v2263_v8  ;;  %v1310_v11 = vadd.f32 %v2268_v10, %v505_v25  ;;  %v1286_v6 = vadd.f32 %v2272_v13, %v544_v58  ;;  %v548_v53 = vadd.f32 %v547_v54, %v2481_v46 }
 0x10d   : > { %vm1387_vm10 = vcmp.gt.f32.partialorder %v1335_v22, 1.0  ;;  %1439 = vst [vmem:[#allocation2] sm:$0xff] %v1335_v22  ;;  %v1361_v5 = vsub.f32 %v1309_v43, %v2266_v9  ;;  %v1337_v10 = vsub.f32 %v1285_v29, %v2278_v16  ;;  %v1311_v9 = vadd.f32 %v2280_v17, %v546_v37 }
 0x10e   : > { %v1935_v14 = vsel %vm1387_vm10, 1.0, %v2106_v4  ;;  %vm1388_vm11 = vcmp.gt.f32.partialorder %v1336_v1, 1.0  ;;  %1440 = vst [vmem:[#allocation2 + $0x8] sm:$0xff] %v1336_v1  ;;  %v1362_v8 = vsub.f32 %v1310_v11, %v2275_v15  ;;  %v584_v12 = vpop.f32.mrb[4].mxu0  ;;  %v1338_v19 = vsub.f32 %v1286_v6, %v2283_v20 }
 0x10f   : > { %v1936_v49 = vsel %vm1388_vm11, 1.0, %v2106_v4  ;;  %vm1413_vm12 = vcmp.gt.f32.partialorder %v1361_v5, 1.0  ;;  %1466 = vst [vmem:[#allocation2 + $0xd0] sm:$0xff] %v1361_v5  ;;  %v586_v13 = vpop.f32.mrb[5].mxu0  ;;  %vm1389_vm14 = vcmp.gt.f32.partialorder %v1337_v10, 1.0  ;;  %1441 = vst [vmem:[#allocation2 + $0x10] sm:$0xff] %v1337_v10  ;;  %v1363_v20 = vsub.f32 %v1311_v9, %v2288_v23 }
 0x110   : > { %v2015_v25 = vpack.c.bf16 %v1936_v49, %v1935_v14  ;;  %v1961_v40 = vsel %vm1413_vm12, 1.0, %v2106_v4  ;;  %vm1414_vm13 = vcmp.gt.f32.partialorder %v1362_v8, 1.0  ;;  %1467 = vst [vmem:[#allocation2 + $0xd8] sm:$0xff] %v1362_v8  ;;  %v588_v15 = vpop.f32.mrb[6].mxu0  ;;  %v1937_v28 = vsel %vm1389_vm14, 1.0, %v2106_v4  ;;  %1442 = vst [vmem:[#allocation2 + $0x18] sm:$0xff] %v1338_v19 }
 0x111   : > { %v1962_v16 = vsel %vm1414_vm13, 1.0, %v2106_v4  ;;  %vm1390_vm15 = vcmp.gt.f32.partialorder %v1338_v19, 1.0  ;;  %v590_v17 = vpop.f32.mrb[7].mxu0  ;;  %v627_v22 = vpop.f32.mrb[4].mxu1  ;;  %v585_v1 = vadd.f32 %v584_v12, %v2443_v33  ;;  %v1312_v11 = vadd.f32 %v2290_v24, %v548_v53  ;;  %1468 = vst [vmem:[#allocation2 + $0xe0] sm:$0xff] %v1363_v20 }
 0x112   : > { %1752 = vst [vmem:[%s2143_s21] sm:$0xff] %v2015_v25  ;;  %v2028_v43 = vpack.c.bf16 %v1962_v16, %v1961_v40  ;;  %v1938_v58 = vsel %vm1390_vm15, 1.0, %v2106_v4  ;;  %v629_v29 = vpop.f32.mrb[5].mxu1  ;;  %vm1415_vm0 = vcmp.gt.f32.partialorder %v1363_v20, 1.0  ;;  %v587_v54 = vadd.f32 %v586_v13, %v2443_v33 }
 0x113   : > { %v2016_v37 = vpack.c.bf16 %v1938_v58, %v1937_v28  ;;  %v589_v5 = vadd.f32 %v588_v15, %v2481_v46  ;;  %v631_v23 = vpop.f32.mrb[6].mxu1  ;;  %v1963_v6 = vsel %vm1415_vm0, 1.0, %v2106_v4  ;;  %v1287_v14 = vadd.f32 %v2285_v21, %v585_v1 }
 0x114   : > { %1767 = vst [vmem:[%s2143_s21 + $0x68] sm:$0xff] %v2028_v43  ;;  %v1364_v8 = vsub.f32 %v1312_v11, %v2300_v31  ;;  %v591_v10 = vadd.f32 %v590_v17, %v2481_v46  ;;  %v633_v12 = vpop.f32.mrb[7].mxu1  ;;  %v1288_v24 = vadd.f32 %v2292_v26, %v587_v54  ;;  %v628_v49 = vadd.f32 %v627_v22, %v2443_v33 }
 0x115   : > { %1753 = vst [vmem:[%s2143_s21 + $0x8] sm:$0xff] %v2016_v37  ;;  %v1313_v53 = vadd.f32 %v2294_v27, %v589_v5  ;;  %v630_v19 = vadd.f32 %v629_v29, %v2443_v33  ;;  %v1339_v9 = vsub.f32 %v1287_v14, %v2297_v30  ;;  %v632_v31 = vadd.f32 %v631_v23, %v2481_v46 }
 0x116   : > { %vm1416_vm2 = vcmp.gt.f32.partialorder %v1364_v8, 1.0  ;;  %1469 = vst [vmem:[#allocation2 + $0xe8] sm:$0xff] %v1364_v8  ;;  %v1314_v21 = vadd.f32 %v2302_v32, %v591_v10  ;;  %v670_v13 = vpop.f32.mrb[8].mxu0  ;;  %v1340_v40 = vsub.f32 %v1288_v24, %v2305_v34  ;;  %v1289_v27 = vadd.f32 %v2310_v36, %v628_v49 }
 0x117   : > { %v1964_v25 = vsel %vm1416_vm2, 1.0, %v2106_v4  ;;  %v1365_v26 = vsub.f32 %v1313_v53, %v2308_v35  ;;  %v672_v15 = vpop.f32.mrb[9].mxu0  ;;  %vm1391_vm3 = vcmp.gt.f32.partialorder %v1339_v9, 1.0  ;;  %1443 = vst [vmem:[#allocation2 + $0x20] sm:$0xff] %v1339_v9  ;;  %v1290_v32 = vadd.f32 %v2312_v38, %v630_v19 }
 0x118   : > { %v2029_v30 = vpack.c.bf16 %v1964_v25, %v1963_v6  ;;  %v1366_v16 = vsub.f32 %v1314_v21, %v2317_v41  ;;  %v674_v28 = vpop.f32.mrb[10].mxu0  ;;  %v1939_v20 = vsel %vm1391_vm3, 1.0, %v2106_v4  ;;  %vm1392_vm4 = vcmp.gt.f32.partialorder %v1340_v40, 1.0  ;;  %1444 = vst [vmem:[#allocation2 + $0x28] sm:$0xff] %v1340_v40  ;;  %v713_v36 = vpop.f32.mrb[8].mxu1 }
 0x119   : > { %vm1417_vm5 = vcmp.gt.f32.partialorder %v1365_v26, 1.0  ;;  %1470 = vst [vmem:[#allocation2 + $0xf0] sm:$0xff] %v1365_v26  ;;  %v1341_v34 = vsub.f32 %v1289_v27, %v2322_v44  ;;  %v676_v35 = vpop.f32.mrb[11].mxu0  ;;  %v1940_v17 = vsel %vm1392_vm4, 1.0, %v2106_v4  ;;  %v1342_v38 = vsub.f32 %v1290_v32, %v2327_v47  ;;  %v715_v41 = vpop.f32.mrb[9].mxu1 }
 0x11a   : > { %1768 = vst [vmem:[%s2143_s21 + $0x70] sm:$0xff] %v2029_v30  ;;  %v1965_v22 = vsel %vm1417_vm5, 1.0, %v2106_v4  ;;  %vm1418_vm6 = vcmp.gt.f32.partialorder %v1366_v16, 1.0  ;;  %1471 = vst [vmem:[#allocation2 + $0xf8] sm:$0xff] %v1366_v16  ;;  %v2017_v43 = vpack.c.bf16 %v1940_v17, %v1939_v20  ;;  %v1315_v44 = vadd.f32 %v2314_v39, %v632_v31  ;;  %v717_v1 = vpop.f32.mrb[10].mxu1 }
 0x11b   : > { %v1966_v58 = vsel %vm1418_vm6, 1.0, %v2106_v4  ;;  %vm1393_vm7 = vcmp.gt.f32.partialorder %v1341_v34, 1.0  ;;  %1445 = vst [vmem:[#allocation2 + $0x30] sm:$0xff] %v1341_v34  ;;  %vm1394_vm8 = vcmp.gt.f32.partialorder %v1342_v38, 1.0  ;;  %1446 = vst [vmem:[#allocation2 + $0x38] sm:$0xff] %v1342_v38  ;;  %v671_v37 = vadd.f32 %v670_v13, %v2443_v33  ;;  %v2583_v54 = vpop.f32.mrb[11].mxu1 }
 0x11c   : > { %v2030_v11 = vpack.c.bf16 %v1966_v58, %v1965_v22  ;;  %v1941_v29 = vsel %vm1393_vm7, 1.0, %v2106_v4  ;;  %1754 = vst [vmem:[%s2143_s21 + $0x10] sm:$0xff] %v2017_v43  ;;  %v1942_v47 = vsel %vm1394_vm8, 1.0, %v2106_v4  ;;  %v1367_v5 = vsub.f32 %v1315_v44, %v2332_v50  ;;  %v2894_v43 = vld [vmem:[#allocation6_spill] sm:$0xff] }
 0x11d   : > { %v634_v23 = vadd.f32 %v633_v12, %v2481_v46  ;;  %v673_v39 = vadd.f32 %v672_v15, %v2443_v33  ;;  %v2018_v6 = vpack.c.bf16 %v1942_v47, %v1941_v29  ;;  %v1291_v14 = vadd.f32 %v2319_v42, %v671_v37  ;;  %v2896_v37 = vld [vmem:[#allocation4_spill] sm:$0xff] }
 0x11e   : > { %1769 = vst [vmem:[%s2143_s21 + $0x78] sm:$0xff] %v2030_v11  ;;  %v675_v8 = vadd.f32 %v674_v28, %v2481_v46  ;;  %v677_v10 = vadd.f32 %v676_v35, %v2481_v46  ;;  %v756_v24 = vpop.f32.mrb[12].mxu0  ;;  %vm1419_vm9 = vcmp.gt.f32.partialorder %v1367_v5, 1.0  ;;  %1472 = vst [vmem:[#allocation2 + $0x100] sm:$0xff] %v1367_v5  ;;  %v714_v50 = vadd.f32 %v713_v36, %v2443_v33  ;;  %v2895_v11 = vld [vmem:[#allocation3_spill] sm:$0xff]  ;;  %v2897_v5 = vld [vmem:[#allocation5_spill] sm:$0xff] }
 0x11f   : > { %v1316_v53 = vadd.f32 %v2324_v45, %v634_v23  ;;  %v1292_v49 = vadd.f32 %v2329_v48, %v673_v39  ;;  %v758_v12 = vpop.f32.mrb[13].mxu0  ;;  %1755 = vst [vmem:[%s2143_s21 + $0x18] sm:$0xff] %v2018_v6  ;;  %v1967_v19 = vsel %vm1419_vm9, 1.0, %v2106_v4  ;;  %v1343_v9 = vsub.f32 %v1291_v14, %v2335_v51 }
 0x120   : > { %v1317_v42 = vadd.f32 %v2337_v52, %v675_v8  ;;  %v1318_v21 = vadd.f32 %v2345_v57, %v677_v10  ;;  %v760_v31 = vpop.f32.mrb[14].mxu0  ;;  %v1293_v45 = vadd.f32 %v2353_v61, %v714_v50  ;;  %v716_v48 = vadd.f32 %v715_v41, %v2443_v33  ;;  %v799_v26 = vpop.f32.mrb[12].mxu1  ;;  %v2899_v8 = vld [vmem:[#allocation12_spill] sm:$0xff]  ;;  %v2900_v50 = vld [vmem:[#allocation7_spill] sm:$0xff] }
 0x121   : > { %v1368_v13 = vsub.f32 %v1316_v53, %v2340_v55  ;;  %v1344_v25 = vsub.f32 %v1292_v49, %v2343_v56  ;;  %v762_v40 = vpop.f32.mrb[15].mxu0  ;;  %vm1395_vm10 = vcmp.gt.f32.partialorder %v1343_v9, 1.0  ;;  %1447 = vst [vmem:[#allocation2 + $0x40] sm:$0xff] %v1343_v9  ;;  %v718_v52 = vadd.f32 %v717_v1, %v2481_v46  ;;  %v2609_v57 = vpop.f32.mrb[13].mxu1 }
 0x122   : > { %v1369_v27 = vsub.f32 %v1317_v42, %v2348_v59  ;;  %v1370_v51 = vsub.f32 %v1318_v21, %v2351_v60  ;;  %v1943_v55 = vsel %vm1395_vm10, 1.0, %v2106_v4  ;;  %v1345_v56 = vsub.f32 %v1293_v45, %v2360_v7  ;;  %v2613_v61 = vpop.f32.mrb[14].mxu1 }
 0x123   : > { %vm1420_vm11 = vcmp.gt.f32.partialorder %v1368_v13, 1.0  ;;  %1473 = vst [vmem:[#allocation2 + $0x108] sm:$0xff] %v1368_v13  ;;  %vm1396_vm12 = vcmp.gt.f32.partialorder %v1344_v25, 1.0  ;;  %1448 = vst [vmem:[#allocation2 + $0x48] sm:$0xff] %v1344_v25  ;;  %v2617_v60 = vpop.f32.mrb[15].mxu1  ;;  %v1294_v20 = vadd.f32 %v2355_v62, %v716_v48  ;;  %v1319_v34 = vadd.f32 %v2357_v63, %v718_v52  ;;  %v2903_v25 = vld [vmem:[#allocation11_spill] sm:$0xff] }
 0x124   : > { %v1968_v15 = vsel %vm1420_vm11, 1.0, %v2106_v4  ;;  %v1944_v59 = vsel %vm1396_vm12, 1.0, %v2106_v4  ;;  %vm1421_vm13 = vcmp.gt.f32.partialorder %v1369_v27, 1.0  ;;  %1474 = vst [vmem:[#allocation2 + $0x110] sm:$0xff] %v1369_v27  ;;  %vm1422_vm14 = vcmp.gt.f32.partialorder %v1370_v51, 1.0  ;;  %1475 = vst [vmem:[#allocation2 + $0x118] sm:$0xff] %v1370_v51 }
 0x125   : > { %v2031_v30 = vpack.c.bf16 %v1968_v15, %v1967_v19  ;;  %v2019_v16 = vpack.c.bf16 %v1944_v59, %v1943_v55  ;;  %v1969_v32 = vsel %vm1421_vm13, 1.0, %v2106_v4  ;;  %v1970_v7 = vsel %vm1422_vm14, 1.0, %v2106_v4  ;;  %1449 = vst [vmem:[#allocation2 + $0x50] sm:$0xff] %v1345_v56  ;;  %v2901_v19 = vld [vmem:[#allocation9_spill] sm:$0xff]  ;;  %v2905_v27 = vld [vmem:[#allocation14_spill] sm:$0xff] }
 0x126   : > { %v2032_v28 = vpack.c.bf16 %v1970_v7, %v1969_v32  ;;  %vm1397_vm15 = vcmp.gt.f32.partialorder %v1345_v56, 1.0  ;;  %v2623_v35 = vpop.f32.mrb[16].mxu0  ;;  %v757_v17 = vadd.f32 %v756_v24, %v2443_v33  ;;  %v720_v22 = vadd.f32 %v2583_v54, %v2481_v46  ;;  %v2904_v48 = vld [vmem:[#allocation13_spill] sm:$0xff] }
 0x127   : > { %1770 = vst [vmem:[%s2143_s21 + $0x80] sm:$0xff] %v2031_v30  ;;  %1756 = vst [vmem:[%s2143_s21 + $0x20] sm:$0xff] %v2019_v16  ;;  %v1945_v36 = vsel %vm1397_vm15, 1.0, %v2106_v4  ;;  %v759_v38 = vadd.f32 %v758_v12, %v2443_v33  ;;  %v2632_v41 = vpop.f32.mrb[17].mxu0  ;;  %v1346_v62 = vsub.f32 %v1294_v20, %v2365_v18  ;;  %v1371_v63 = vsub.f32 %v1319_v34, %v2894_v43  ;;  %v2898_v18 = vld [vmem:[#allocation8_spill] sm:$0xff]  ;;  %v2907_v34 = vld [vmem:[#allocation15_spill] sm:$0xff] }
 0x128   : > { %1771 = vst [vmem:[%s2143_s21 + $0x88] sm:$0xff] %v2032_v28  ;;  %v761_v58 = vadd.f32 %v760_v31, %v2481_v46  ;;  %v763_v44 = vadd.f32 %v762_v40, %v2481_v46  ;;  %v846_v1 = vpop.f32.mrb[18].mxu0  ;;  %v1295_v29 = vadd.f32 %v2895_v11, %v757_v17  ;;  %v1320_v47 = vadd.f32 %v2896_v37, %v720_v22  ;;  %v2645_v6 = vpop.f32.mrb[16].mxu1  ;;  %v2902_v31 = vld [vmem:[#allocation10_spill] sm:$0xff] }
 0x129   : > { %v1296_v54 = vadd.f32 %v2897_v5, %v759_v38  ;;  %v800_v23 = vadd.f32 %v799_v26, %v2443_v33  ;;  %v2643_v39 = vpop.f32.mrb[19].mxu0  ;;  %vm1398_vm0 = vcmp.gt.f32.partialorder %v1346_v62, 1.0  ;;  %1450 = vst [vmem:[#allocation2 + $0x58] sm:$0xff] %v1346_v62  ;;  %vm1423_vm2 = vcmp.gt.f32.partialorder %v1371_v63, 1.0  ;;  %1476 = vst [vmem:[#allocation2 + $0x120] sm:$0xff] %v1371_v63  ;;  %v2649_v24 = vpop.f32.mrb[17].mxu1 }
 0x12a   : > { %v1321_v14 = vadd.f32 %v2898_v18, %v761_v58  ;;  %v1322_v10 = vadd.f32 %v2899_v8, %v763_v44  ;;  %v1946_v53 = vsel %vm1398_vm0, 1.0, %v2106_v4  ;;  %v1971_v49 = vsel %vm1423_vm2, 1.0, %v2106_v4  ;;  %v2655_v42 = vpop.f32.mrb[18].mxu1  ;;  %v2906_v28 = vld [vmem:[#allocation18_spill] sm:$0xff]  ;;  %v2908_v44 = vld [vmem:[#allocation19_spill] sm:$0xff]  ;;  %v2910_v5 = vld [vmem:[#allocation17_spill] sm:$0xff] }
 0x12b   : > { %v1347_v12 = vsub.f32 %v1295_v29, %v2900_v50  ;;  %v1372_v9 = vsub.f32 %v1320_v47, %v2901_v19  ;;  %v2020_v21 = vpack.c.bf16 %v1946_v53, %v1945_v36  ;;  %v1348_v13 = vsub.f32 %v1296_v54, %v2902_v31  ;;  %v2660_v26 = vpop.f32.mrb[19].mxu1  ;;  %v2912_v8 = vld [vmem:[#allocation21_spill] sm:$0xff]  ;;  %v2916_v31 = vld [vmem:[#allocation24_spill] sm:$0xff] }
 0x12c   : > { %v1373_v45 = vsub.f32 %v1321_v14, %v2903_v25  ;;  %v1374_v40 = vsub.f32 %v1322_v10, %v2904_v48  ;;  %v1297_v51 = vadd.f32 %v2905_v27, %v800_v23  ;;  %v802_v52 = vadd.f32 %v2609_v57, %v2443_v33  ;;  %v2911_v23 = vld [vmem:[#allocation20_spill] sm:$0xff] }
 0x12d   : > { %vm1399_vm3 = vcmp.gt.f32.partialorder %v1347_v12, 1.0  ;;  %1451 = vst [vmem:[#allocation2 + $0x60] sm:$0xff] %v1347_v12  ;;  %vm1424_vm4 = vcmp.gt.f32.partialorder %v1372_v9, 1.0  ;;  %1477 = vst [vmem:[#allocation2 + $0x128] sm:$0xff] %v1372_v9  ;;  %vm1400_vm5 = vcmp.gt.f32.partialorder %v1348_v13, 1.0  ;;  %v804_v38 = vadd.f32 %v2613_v61, %v2481_v46  ;;  %v2914_v12 = vld [vmem:[#allocation22_spill] sm:$0xff] }
 0x12e   : > { %1757 = vst [vmem:[%s2143_s21 + $0x28] sm:$0xff] %v2020_v21  ;;  %v1947_v55 = vsel %vm1399_vm3, 1.0, %v2106_v4  ;;  %v1972_v56 = vsel %vm1424_vm4, 1.0, %v2106_v4  ;;  %1452 = vst [vmem:[#allocation2 + $0x68] sm:$0xff] %v1348_v13  ;;  %vm1425_vm6 = vcmp.gt.f32.partialorder %v1373_v45, 1.0  ;;  %v2668_v15 = vpop.f32.mrb[20].mxu0  ;;  %v1349_v20 = vsub.f32 %v1297_v51, %v2906_v28 }
 0x12f   : > { %1478 = vst [vmem:[#allocation2 + $0x130] sm:$0xff] %v1373_v45  ;;  %1479 = vst [vmem:[#allocation2 + $0x138] sm:$0xff] %v1374_v40  ;;  %v2033_v59 = vpack.c.bf16 %v1972_v56, %v1971_v49  ;;  %v1948_v30 = vsel %vm1400_vm5, 1.0, %v2106_v4  ;;  %v1973_v16 = vsel %vm1425_vm6, 1.0, %v2106_v4  ;;  %vm1426_vm7 = vcmp.gt.f32.partialorder %v1374_v40, 1.0  ;;  %v2672_v57 = vpop.f32.mrb[21].mxu0 }
 0x130   : > { %v2021_v32 = vpack.c.bf16 %v1948_v30, %v1947_v55  ;;  %v1974_v7 = vsel %vm1426_vm7, 1.0, %v2106_v4  ;;  %v1298_v36 = vadd.f32 %v2907_v34, %v802_v52  ;;  %v2677_v17 = vpop.f32.mrb[22].mxu0  ;;  %v843_v62 = vadd.f32 %v2623_v35, %v2443_v33  ;;  %v2688_v58 = vpop.f32.mrb[20].mxu1  ;;  %1453 = vst [vmem:[#allocation2 + $0x70] sm:$0xff] %v1349_v20  ;;  %v2915_v9 = vld [vmem:[#allocation23_spill] sm:$0xff]  ;;  %v2917_v45 = vld [vmem:[#allocation25_spill] sm:$0xff] }
 0x131   : > { %1772 = vst [vmem:[%s2143_s21 + $0x90] sm:$0xff] %v2033_v59  ;;  %v2034_v22 = vpack.c.bf16 %v1974_v7, %v1973_v16  ;;  %v806_v43 = vadd.f32 %v2617_v60, %v2481_v46  ;;  %v2686_v63 = vpop.f32.mrb[23].mxu0  ;;  %vm1401_vm8 = vcmp.gt.f32.partialorder %v1349_v20, 1.0  ;;  %v845_v29 = vadd.f32 %v2632_v41, %v2443_v33  ;;  %v2695_v37 = vpop.f32.mrb[21].mxu1  ;;  %v2909_v60 = vld [vmem:[#allocation16_spill] sm:$0xff]  ;;  %v2913_v41 = vld [vmem:[#allocation27_spill] sm:$0xff] }
 0x132   : > { %1758 = vst [vmem:[%s2143_s21 + $0x30] sm:$0xff] %v2021_v32  ;;  %v1350_v11 = vsub.f32 %v1298_v36, %v2908_v44  ;;  %v847_v61 = vadd.f32 %v846_v1, %v2481_v46  ;;  %v1949_v35 = vsel %vm1401_vm8, 1.0, %v2106_v4  ;;  %v1323_v47 = vadd.f32 %v2909_v60, %v804_v38  ;;  %v2702_v14 = vpop.f32.mrb[22].mxu1  ;;  %v2918_v40 = vld [vmem:[#allocation26_spill] sm:$0xff]  ;;  %v2919_v51 = vld [vmem:[#allocation28_spill] sm:$0xff]  ;;  %v2921_v38 = vld [vmem:[#allocation29_spill] sm:$0xff] }
 0x133   : > { %1773 = vst [vmem:[%s2143_s21 + $0x98] sm:$0xff] %v2034_v22  ;;  %v1299_v54 = vadd.f32 %v2910_v5, %v843_v62  ;;  %v1324_v18 = vadd.f32 %v2911_v23, %v806_v43  ;;  %v1300_v10 = vadd.f32 %v2912_v8, %v845_v29  ;;  %v849_v1 = vadd.f32 %v2643_v39, %v2481_v46  ;;  %v2708_v49 = vpop.f32.mrb[23].mxu1  ;;  %v2924_v23 = vld [vmem:[#allocation32_spill] sm:$0xff] }
 0x134   : > { %vm1402_vm9 = vcmp.gt.f32.partialorder %v1350_v11, 1.0  ;;  %1454 = vst [vmem:[#allocation2 + $0x78] sm:$0xff] %v1350_v11  ;;  %v1325_v53 = vadd.f32 %v2913_v41, %v847_v61  ;;  %v1375_v19 = vsub.f32 %v1323_v47, %v2914_v12  ;;  %v886_v39 = vadd.f32 %v2645_v6, %v2443_v33  ;;  %v2920_v6 = vld [vmem:[#allocation31_spill] sm:$0xff]  ;;  %v2923_v47 = vld [vmem:[#allocation30_spill] sm:$0xff] }
 0x135   : > { %v1950_v50 = vsel %vm1402_vm9, 1.0, %v2106_v4  ;;  %v1351_v21 = vsub.f32 %v1299_v54, %v2915_v9  ;;  %v1376_v13 = vsub.f32 %v1324_v18, %v2916_v31  ;;  %v1352_v48 = vsub.f32 %v1300_v10, %v2917_v45  ;;  %v2925_v18 = vld [vmem:[#allocation33_spill] sm:$0xff]  ;;  %v2930_v9 = vld [vmem:[#allocation39_spill] sm:$0xff]  ;;  %v2931_v31 = vld [vmem:[#allocation40_spill] sm:$0xff] }
 0x136   : > { %v2022_v25 = vpack.c.bf16 %v1950_v50, %v1949_v35  ;;  %v1377_v27 = vsub.f32 %v1325_v53, %v2918_v40  ;;  %v1326_v52 = vadd.f32 %v2919_v51, %v849_v1  ;;  %v2717_v55 = vpop.f32.mrb[24].mxu0  ;;  %vm1427_vm10 = vcmp.gt.f32.partialorder %v1375_v19, 1.0  ;;  %1480 = vst [vmem:[#allocation2 + $0x140] sm:$0xff] %v1375_v19  ;;  %v2922_v35 = vld [vmem:[#allocation35_spill] sm:$0xff]  ;;  %v2928_v53 = vld [vmem:[#allocation37_spill] sm:$0xff] }
 0x137   : > { %vm1403_vm11 = vcmp.gt.f32.partialorder %v1351_v21, 1.0  ;;  %1455 = vst [vmem:[#allocation2 + $0x80] sm:$0xff] %v1351_v21  ;;  %vm1428_vm12 = vcmp.gt.f32.partialorder %v1376_v13, 1.0  ;;  %1481 = vst [vmem:[#allocation2 + $0x148] sm:$0xff] %v1376_v13  ;;  %v2721_v56 = vpop.f32.mrb[25].mxu0  ;;  %v1975_v59 = vsel %vm1427_vm10, 1.0, %v2106_v4  ;;  %v1301_v62 = vadd.f32 %v2921_v38, %v886_v39 }
 0x138   : > { %1759 = vst [vmem:[%s2143_s21 + $0x38] sm:$0xff] %v2022_v25  ;;  %v1951_v30 = vsel %vm1403_vm11, 1.0, %v2106_v4  ;;  %v1976_v16 = vsel %vm1428_vm12, 1.0, %v2106_v4  ;;  %vm1404_vm13 = vcmp.gt.f32.partialorder %v1352_v48, 1.0  ;;  %1456 = vst [vmem:[#allocation2 + $0x88] sm:$0xff] %v1352_v48  ;;  %v2727_v32 = vpop.f32.mrb[26].mxu0  ;;  %v1378_v20 = vsub.f32 %v1326_v52, %v2920_v6 }
 0x139   : > { %1482 = vst [vmem:[#allocation2 + $0x150] sm:$0xff] %v1377_v27  ;;  %v2035_v7 = vpack.c.bf16 %v1976_v16, %v1975_v59  ;;  %v1952_v28 = vsel %vm1404_vm13, 1.0, %v2106_v4  ;;  %vm1429_vm14 = vcmp.gt.f32.partialorder %v1377_v27, 1.0  ;;  %v2731_v34 = vpop.f32.mrb[27].mxu0  ;;  %v888_v43 = vadd.f32 %v2649_v24, %v2443_v33  ;;  %v2932_v25 = vld [vmem:[#allocation41_spill] sm:$0xff]  ;;  %v2933_v48 = vld [vmem:[#allocation42_spill] sm:$0xff] }
 0x13a   : > { %v2023_v36 = vpack.c.bf16 %v1952_v28, %v1951_v30  ;;  %v1977_v22 = vsel %vm1429_vm14, 1.0, %v2106_v4  ;;  %vm1430_vm15 = vcmp.gt.f32.partialorder %v1378_v20, 1.0  ;;  %1483 = vst [vmem:[#allocation2 + $0x158] sm:$0xff] %v1378_v20  ;;  %v890_v44 = vadd.f32 %v2655_v42, %v2481_v46 }
 0x13b   : > { %1774 = vst [vmem:[%s2143_s21 + $0xa0] sm:$0xff] %v2035_v7  ;;  %v929_v11 = vadd.f32 %v2668_v15, %v2443_v33  ;;  %v892_v29 = vadd.f32 %v2660_v26, %v2481_v46  ;;  %v1978_v61 = vsel %vm1430_vm15, 1.0, %v2106_v4  ;;  %v1353_v60 = vsub.f32 %v1301_v62, %v2922_v35  ;;  %v2926_v15 = vld [vmem:[#allocation34_spill] sm:$0xff]  ;;  %v2927_v26 = vld [vmem:[#allocation36_spill] sm:$0xff]  ;;  %v2935_v7 = vld [vmem:[#allocation43_spill] sm:$0xff] }
 0x13c   : > { %1760 = vst [vmem:[%s2143_s21 + $0x40] sm:$0xff] %v2023_v36  ;;  %v1302_v24 = vadd.f32 %v2923_v47, %v888_v43  ;;  %v931_v5 = vadd.f32 %v2672_v57, %v2443_v33  ;;  %v2036_v54 = vpack.c.bf16 %v1978_v61, %v1977_v22  ;;  %v1327_v42 = vadd.f32 %v2924_v23, %v890_v44  ;;  %v2929_v57 = vld [vmem:[#allocation38_spill] sm:$0xff]  ;;  %v2936_v62 = vld [vmem:[#allocation47_spill] sm:$0xff] }
 0x13d   : > { %v1303_v8 = vadd.f32 %v2925_v18, %v929_v11  ;;  %v1328_v10 = vadd.f32 %v2926_v15, %v892_v29  ;;  %vm1405_vm0 = vcmp.gt.f32.partialorder %v1353_v60, 1.0  ;;  %1457 = vst [vmem:[#allocation2 + $0x90] sm:$0xff] %v1353_v60  ;;  %v933_v50 = vadd.f32 %v2677_v17, %v2481_v46  ;;  %v2937_v29 = vld [vmem:[#allocation45_spill] sm:$0xff]  ;;  %v2938_v61 = vld [vmem:[#allocation46_spill] sm:$0xff] }
 0x13e   : > { %v1354_v41 = vsub.f32 %v1302_v24, %v2927_v26  ;;  %v1304_v1 = vadd.f32 %v2928_v53, %v931_v5  ;;  %1775 = vst [vmem:[%s2143_s21 + $0xa8] sm:$0xff] %v2036_v54  ;;  %v1953_v12 = vsel %vm1405_vm0, 1.0, %v2106_v4  ;;  %v1379_v19 = vsub.f32 %v1327_v42, %v2929_v57  ;;  %v2941_v54 = vld [vmem:[#allocation49_spill] sm:$0xff]  ;;  %v2942_v42 = vld [vmem:[#allocation50_spill] sm:$0xff] }
 0x13f   : > { %v1355_v21 = vsub.f32 %v1303_v8, %v2930_v9  ;;  %v1380_v13 = vsub.f32 %v1328_v10, %v2931_v31  ;;  %v1329_v40 = vadd.f32 %v2933_v48, %v933_v50  ;;  %v935_v27 = vadd.f32 %v2686_v63, %v2481_v46  ;;  %v2934_v63 = vld [vmem:[#allocation44_spill] sm:$0xff]  ;;  %v2943_v8 = vld [vmem:[#allocation51_spill] sm:$0xff]  ;;  %v2944_v26 = vld [vmem:[#allocation54_spill] sm:$0xff] }
 0x140   : > { %vm1406_vm2 = vcmp.gt.f32.partialorder %v1354_v41, 1.0  ;;  %1458 = vst [vmem:[#allocation2 + $0x98] sm:$0xff] %v1354_v41  ;;  %v1356_v45 = vsub.f32 %v1304_v1, %v2932_v25  ;;  %vm1431_vm3 = vcmp.gt.f32.partialorder %v1379_v19, 1.0  ;;  %1484 = vst [vmem:[#allocation2 + $0x160] sm:$0xff] %v1379_v19  ;;  %vm1464_vm7 = vcmask 523264   ;;  %v2945_v53 = vld [vmem:[#allocation53_spill] sm:$0xff] }
 0x141   : > { %v1954_v17 = vsel %vm1406_vm2, 1.0, %v2106_v4  ;;  %vm1407_vm4 = vcmp.gt.f32.partialorder %v1355_v21, 1.0  ;;  %1459 = vst [vmem:[#allocation2 + $0xa0] sm:$0xff] %v1355_v21  ;;  %vm1432_vm5 = vcmp.gt.f32.partialorder %v1380_v13, 1.0  ;;  %1485 = vst [vmem:[#allocation2 + $0x168] sm:$0xff] %v1380_v13  ;;  %v1979_v52 = vsel %vm1431_vm3, 1.0, %v2106_v4 }
 0x142   : > { %v2024_v51 = vpack.c.bf16 %v1954_v17, %v1953_v12  ;;  %v1955_v39 = vsel %vm1407_vm4, 1.0, %v2106_v4  ;;  %v1980_v59 = vsel %vm1432_vm5, 1.0, %v2106_v4  ;;  %1460 = vst [vmem:[#allocation2 + $0xa8] sm:$0xff] %v1356_v45  ;;  %vm1408_vm6 = vcmp.gt.f32.partialorder %v1356_v45, 1.0  ;;  %v2946_v50 = vld [vmem:[#allocation56_spill] sm:$0xff]  ;;  %v2947_v21 = vld [vmem:[#allocation55_spill] sm:$0xff] }
 0x143   : > { %v2037_v30 = vpack.c.bf16 %v1980_v59, %v1979_v52  ;;  %v1381_v16 = vsub.f32 %v1329_v40, %v2934_v63  ;;  %v1330_v28 = vadd.f32 %v2935_v7, %v935_v27  ;;  %vm1126_vm8 = vcmp.gt.f32.partialorder %v2508_v3, 1.0  ;;  %v2948_v13 = vld [vmem:[#allocation57_spill] sm:$0xff]  ;;  %v2949_v48 = vld [vmem:[#allocation58_spill] sm:$0xff] }
 0x144   : > { %1761 = vst [vmem:[%s2143_s21 + $0x48] sm:$0xff] %v2024_v51  ;;  %v1956_v6 = vsel %vm1408_vm6, 1.0, %v2106_v4  ;;  %v972_v20 = vadd.f32 %v2688_v58, %v2443_v33  ;;  %v974_v36 = vadd.f32 %v2695_v37, %v2443_v33  ;;  %v976_v22 = vadd.f32 %v2702_v14, %v2481_v46  ;;  %v2939_v37 = vld [vmem:[#allocation48_spill] sm:$0xff] }
 0x145   : > { %vm1764_vm9 = vcmask 523268   ;;  %1776 = vst [vmem:[%s2143_s21 + $0xb0] sm:$0xff] %v2037_v30  ;;  %v2025_v38 = vpack.c.bf16 %v1956_v6, %v1955_v39  ;;  %vm1433_vm10 = vcmp.gt.f32.partialorder %v1381_v16, 1.0  ;;  %1486 = vst [vmem:[#allocation2 + $0x170] sm:$0xff] %v1381_v16  ;;  %v1382_v43 = vsub.f32 %v1330_v28, %v2936_v62  ;;  %v2940_v14 = vld [vmem:[#allocation52_spill] sm:$0xff] }
 0x146   : > { %v978_v44 = vadd.f32 %v2708_v49, %v2481_v46  ;;  %v1981_v11 = vsel %vm1433_vm10, 1.0, %v2106_v4  ;;  %v1305_v58 = vadd.f32 %v2937_v29, %v972_v20  ;;  %v1306_v35 = vadd.f32 %v2938_v61, %v974_v36  ;;  %vm1765_vm3 = vmor %vm1764_vm9, %vm382_vm1 }
 0x147   : > { %v1331_v60 = vadd.f32 %v2939_v37, %v976_v22  ;;  %1762 = vst [vmem:[%s2143_s21 + $0x50] sm:$0xff] %v2025_v38  ;;  %vm1434_vm11 = vcmp.gt.f32.partialorder %v1382_v43, 1.0  ;;  %1487 = vst [vmem:[#allocation2 + $0x178] sm:$0xff] %v1382_v43  ;;  %v1015_v24 = vadd.f32 %v2717_v55, %v2443_v33  ;;  %v1017_v5 = vadd.f32 %v2721_v56, %v2443_v33 }
 0x148   : > { %v1332_v47 = vadd.f32 %v2940_v14, %v978_v44  ;;  %v1982_v49 = vsel %vm1434_vm11, 1.0, %v2106_v4  ;;  %v1357_v23 = vsub.f32 %v1305_v58, %v2941_v54  ;;  %v1358_v18 = vsub.f32 %v1306_v35, %v2942_v42 }
 0x149   : > { %v1383_v15 = vsub.f32 %v1331_v60, %v2943_v8  ;;  %v2038_v10 = vpack.c.bf16 %v1982_v49, %v1981_v11  ;;  %v1307_v1 = vadd.f32 %v2945_v53, %v1015_v24  ;;  %v1308_v12 = vadd.f32 %v2946_v50, %v1017_v5 }
 0x14a   : > { %v1384_v41 = vsub.f32 %v1332_v47, %v2944_v26  ;;  %vm1409_vm12 = vcmp.gt.f32.partialorder %v1357_v23, 1.0  ;;  %1461 = vst [vmem:[#allocation2 + $0xb0] sm:$0xff] %v1357_v23  ;;  %vm1410_vm13 = vcmp.gt.f32.partialorder %v1358_v18, 1.0  ;;  %1462 = vst [vmem:[#allocation2 + $0xb8] sm:$0xff] %v1358_v18  ;;  %v1019_v33 = vadd.f32 %v2727_v32, %v2481_v46 }
 0x14b   : > { %vm1435_vm14 = vcmp.gt.f32.partialorder %v1383_v15, 1.0  ;;  %1488 = vst [vmem:[#allocation2 + $0x180] sm:$0xff] %v1383_v15  ;;  %1777 = vst [vmem:[%s2143_s21 + $0xb8] sm:$0xff] %v2038_v10  ;;  %v1957_v55 = vsel %vm1409_vm12, 1.0, %v2106_v4  ;;  %v1958_v56 = vsel %vm1410_vm13, 1.0, %v2106_v4  ;;  %v1359_v31 = vsub.f32 %v1307_v1, %v2947_v21 }
 0x14c   : > { %v1983_v57 = vsel %vm1435_vm14, 1.0, %v2106_v4  ;;  %vm1436_vm15 = vcmp.gt.f32.partialorder %v1384_v41, 1.0  ;;  %1489 = vst [vmem:[#allocation2 + $0x188] sm:$0xff] %v1384_v41  ;;  %v2026_v19 = vpack.c.bf16 %v1958_v56, %v1957_v55  ;;  %v1360_v25 = vsub.f32 %v1308_v12, %v2948_v13 }
 0x14d   : > { %v1984_v9 = vsel %vm1436_vm15, 1.0, %v2106_v4  ;;  %v1333_v32 = vadd.f32 %v2949_v48, %v1019_v33  ;;  %v1021_v40 = vadd.f32 %v2731_v34, %v2481_v46  ;;  %vm1411_vm0 = vcmp.gt.f32.partialorder %v1359_v31, 1.0  ;;  %1463 = vst [vmem:[#allocation2 + $0xc0] sm:$0xff] %v1359_v31 }
 0x14e   : > { %v2039_v45 = vpack.c.bf16 %v1984_v9, %v1983_v57  ;;  %1763 = vst [vmem:[%s2143_s21 + $0x58] sm:$0xff] %v2026_v19  ;;  %vm1412_vm2 = vcmp.gt.f32.partialorder %v1360_v25, 1.0  ;;  %1465 = vst.msk [vmem:[#allocation2 + $0xc8] sm:$0xff] %vm1464_vm7, %v1360_v25  ;;  %v1934_v27 = vsel %vm1126_vm8, 1.0, %v2106_v4  ;;  %v1959_v17 = vsel %vm1411_vm0, 1.0, %v2106_v4 }
 0x14f   : > { %v1960_v51 = vsel %vm1412_vm2, 1.0, %v2106_v4  ;;  %v1385_v46 = vsub.f32 %v1333_v32, %v2523_v0  ;;  %v1334_v34 = vadd.f32 %v2529_v2, %v1021_v40 }
 0x150   : > { %1778 = vst [vmem:[%s2143_s21 + $0xc0] sm:$0xff] %v2039_v45  ;;  %v2027_v52 = vpack.c.bf16 %v1960_v51, %v1959_v17 }
 0x151   : > { %vm1437_vm4 = vcmp.gt.f32.partialorder %v1385_v46, 1.0  ;;  %1490 = vst [vmem:[#allocation2 + $0x190] sm:$0xff] %v1385_v46  ;;  %v1386_v39 = vsub.f32 %v1334_v34, %v1934_v27 }
 0x152   : > { %1766 = vst.msk [vmem:[%s2143_s21 + $0x60] sm:$0xff] %vm1765_vm3, %v2027_v52  ;;  %v1985_v3 = vsel %vm1437_vm4, 1.0, %v2106_v4 }
 0x153   : > { %vm1438_vm5 = vcmp.gt.f32.partialorder %v1386_v39, 1.0  ;;  %1491 = vst.msk [vmem:[#allocation2 + $0x198] sm:$0xff] %vm1464_vm7, %v1386_v39 }
 0x154   : > { %v1986_v59 = vsel %vm1438_vm5, 1.0, %v2106_v4 }
 0x155   : > { %v2040_v30 = vpack.c.bf16 %v1986_v59, %v1985_v3 }
 0x157   : > { %1779 = vst.msk [vmem:[%s2143_s21 + $0xc8] sm:$0xff] %vm1765_vm3, %v2040_v30 }
 0x158 PF: > { %s13_s12 = sadd.s32 1, %s2101_s12  }
 0x159   : > { %p10_p5 = scmp.ge.s32.totalorder %s13_s12, 7  }
 0x15b   :  { %12 = sbr.rel (!%p10_p5) target bundleno = 1 (0x1), region = 66 }

// kernel: _lambda_.5
= control target key start
LH: loop header
LB: loop body
LE: loop exit
PB: predicated region body
PF: predicated region fallthrough
CT: control target
= control target key end

     0   :  { %s3449_s12 = smov 0   ;;  %s4252_s0 = inlined_call_operand.vmem [shape: bf16[5,672,400], index: 0, kind: input, shape index: {}]   ;;  %s4253_s1 = inlined_call_operand.vmem [shape: bf16[400,32], index: 1, kind: input, shape index: {}]   ;;  %s4254_s2 = inlined_call_operand.vmem [shape: f32[1,32], index: 2, kind: input, shape index: {}]   ;;  %s4255_s3 = inlined_call_operand.vmem [shape: bf16[5,168,32], index: 3, kind: output, shape index: {}]  }
   0x1 LB: > { %s2714_s13 = sadd.s32 4294967295, %s3424_s12   ;;  %p2718_p0 = scmp.ge.s32.totalorder %s3424_s12, 1  ;;  %s3424_s12 = sphi %s3449_s12, %s13_s12  }
   0x2   : > { %p137_p1 = scmp.lt.s32.totalorder %s3424_s12, 6 }
   0x4   : > { %p138_p2 = pnand %p2718_p0, %p137_p1 }
   0x6   : > { %141 = sbr.rel (%p138_p2) target bundleno = 651 (0x28b), region = 32 }
   0xd   : > { %p161_p3 = scmp.lt.s32.totalorder %s2714_s13, 4  ;;  %p2721_p4 = scmp.ne.s32.totalorder %s2714_s13, 0 }
   0xe   : > { %vm176_vm0 = vcmask (!%p2721_p4), 261120   ;;  %v3426_v0 = vmov (!%p2721_p4), 0.0  }
   0xf   : > { %s162_s14 = scalar_select %p161_p3, %s2714_s13, 4 }
  0x10   : > { %175 = sbr.rel (%p2721_p4) target bundleno = 27 (0x1b), region = 36  ;;  %177 = vst.msk [vmem:[#allocation2] sm:$0xff] (!%p2721_p4), %vm176_vm0, %v3426_v0  ;;  %178 = vst.msk [vmem:[#allocation2 + $0x8] sm:$0xff] (!%p2721_p4), %vm176_vm0, %v3426_v0 }
  0x11   : > { %s3128_s15 = smul.u32 1344, %s162_s14  ;;  %179 = vst.msk [vmem:[#allocation2 + $0x10] sm:$0xff] (!%p2721_p4), %vm176_vm0, %v3426_v0  ;;  %180 = vst.msk [vmem:[#allocation2 + $0x18] sm:$0xff] (!%p2721_p4), %vm176_vm0, %v3426_v0 }
  0x12   : > { %s3129_s16 = smul.u32 84, %s162_s14  ;;  %181 = vst.msk [vmem:[#allocation2 + $0x20] sm:$0xff] (!%p2721_p4), %vm176_vm0, %v3426_v0  ;;  %182 = vst.msk [vmem:[#allocation2 + $0x28] sm:$0xff] (!%p2721_p4), %vm176_vm0, %v3426_v0 }
  0x13   : > { %s3460_s19 = scalar_lea.vmem %s4252_s0, %s3128_s15  ;;  %183 = vst.msk [vmem:[#allocation2 + $0x30] sm:$0xff] (!%p2721_p4), %vm176_vm0, %v3426_v0  ;;  %184 = vst.msk [vmem:[#allocation2 + $0x38] sm:$0xff] (!%p2721_p4), %vm176_vm0, %v3426_v0 }
  0x14   : > { %s3465_s22 = scalar_lea.vmem %s4255_s3, %s3129_s16  ;;  %185 = vst.msk [vmem:[#allocation2 + $0x40] sm:$0xff] (!%p2721_p4), %vm176_vm0, %v3426_v0  ;;  %186 = vst.msk [vmem:[#allocation2 + $0x48] sm:$0xff] (!%p2721_p4), %vm176_vm0, %v3426_v0 }
  0x15   : > { %187 = vst.msk [vmem:[#allocation2 + $0x50] sm:$0xff] (!%p2721_p4), %vm176_vm0, %v3426_v0  ;;  %188 = vst.msk [vmem:[#allocation2 + $0x58] sm:$0xff] (!%p2721_p4), %vm176_vm0, %v3426_v0 }
  0x16   : > { %189 = vst.msk [vmem:[#allocation2 + $0x60] sm:$0xff] (!%p2721_p4), %vm176_vm0, %v3426_v0  ;;  %190 = vst.msk [vmem:[#allocation2 + $0x68] sm:$0xff] (!%p2721_p4), %vm176_vm0, %v3426_v0 }
  0x17   : > { %191 = vst.msk [vmem:[#allocation2 + $0x70] sm:$0xff] %vm176_vm0, %v3426_v0  ;;  %192 = vst.msk [vmem:[#allocation2 + $0x78] sm:$0xff] %vm176_vm0, %v3426_v0 }
  0x18   : > { %193 = vst.msk [vmem:[#allocation2 + $0x80] sm:$0xff] %vm176_vm0, %v3426_v0  ;;  %194 = vst.msk [vmem:[#allocation2 + $0x88] sm:$0xff] %vm176_vm0, %v3426_v0 }
  0x19   : > { %195 = vst.msk [vmem:[#allocation2 + $0x90] sm:$0xff] %vm176_vm0, %v3426_v0  ;;  %196 = vst.msk [vmem:[#allocation2 + $0x98] sm:$0xff] %vm176_vm0, %v3426_v0 }
  0x1a   : > { %197 = vst.msk [vmem:[#allocation2 + $0xa0] sm:$0xff] %vm176_vm0, %v3426_v0 }
  0x1b PF: > { %v3141_v1 = vld [vmem:[%s4253_s1] sm:$0xff]   ;;  %v3427_v2 = vmov 0   ;;  %v3142_v3 = vld [vmem:[%s4253_s1 + $0x8] sm:$0xff]   ;;  %v3143_v4 = vld [vmem:[%s4253_s1 + $0x10] sm:$0xff]   ;;  %vm1364_vm1 = vcmask 130048   ;;  %vm2488_vm3 = vcmask 261120  }
  0x1c   : > { %1491 = vmatprep.subr.bf16.mxu1 %v3427_v2  ;;  %1860 = vmatprep.subr.bf16.mxu0 %v3427_v2  ;;  %v3148_v5 = vld [vmem:[%s4253_s1 + $0x80] sm:$0xff]   ;;  %v3150_v6 = vld [vmem:[%s4253_s1 + $0x88] sm:$0xff]   ;;  %v3144_v7 = vld [vmem:[%s4253_s1 + $0x18] sm:$0xff]   ;;  %vm2637_vm7 = vcmask 257024  }
  0x1d   : > { %1492 = vmatpush1.bf16.msra.mxu1 %v3141_v1  ;;  %1861 = vmatpush1.bf16.msra.mxu0 %v3148_v5  ;;  %v3152_v8 = vld [vmem:[%s4253_s1 + $0x90] sm:$0xff]   ;;  %v3145_v9 = vld [vmem:[%s4253_s1 + $0x20] sm:$0xff]   ;;  %v3154_v10 = vld [vmem:[%s4253_s1 + $0x98] sm:$0xff]  }
  0x1e   : > { %1493 = vmatprep.subr.bf16.mxu1 %v3427_v2  ;;  %1862 = vmatprep.subr.bf16.mxu0 %v3427_v2  ;;  %v3146_v11 = vld [vmem:[%s4253_s1 + $0x28] sm:$0xff]   ;;  %v3156_v12 = vld [vmem:[%s4253_s1 + $0xa0] sm:$0xff]   ;;  %v3147_v13 = vld [vmem:[%s4253_s1 + $0x30] sm:$0xff]  }
  0x1f   : > { %v3158_v14 = vld [vmem:[%s4253_s1 + $0xa8] sm:$0xff]   ;;  %v3149_v16 = vld [vmem:[%s4253_s1 + $0x38] sm:$0xff]   ;;  %v3171_v17 = vld [vmem:[%s3460_s19 + $0x4] ss:$16 sps:$4 sm:$0xff]  }
  0x20   : > { %v3167_v15 = vld [vmem:[%s3460_s19 + $0xc] ss:$16 sps:$4 sm:$0xff]   ;;  %v3160_v18 = vld [vmem:[%s4253_s1 + $0xb0] sm:$0xff]   ;;  %1523 = vmatprep.mubr.bf16.mxu1 %v3171_v17  ;;  %v3151_v19 = vld [vmem:[%s4253_s1 + $0x40] sm:$0xff]  }
  0x21   : > { %1494 = vmatpush1.bf16.msra.mxu1 %v3142_v3  ;;  %1863 = vmatpush1.bf16.msra.mxu0 %v3150_v6  ;;  %v3162_v20 = vld [vmem:[%s4253_s1 + $0xb8] sm:$0xff]   ;;  %v3153_v21 = vld [vmem:[%s4253_s1 + $0x48] sm:$0xff]   ;;  %v3164_v22 = vld [vmem:[%s4253_s1 + $0xc0] sm:$0xff]  }
  0x22   : > { %1495 = vmatprep.subr.bf16.mxu1 %v3427_v2  ;;  %1864 = vmatprep.subr.bf16.mxu0 %v3427_v2  ;;  %v3155_v23 = vld [vmem:[%s4253_s1 + $0x50] sm:$0xff]   ;;  %v3165_v24 = vld [vmem:[%s3460_s19 + $0x8] ss:$16 sps:$4 sm:$0xff]   ;;  %v3172_v25 = vld [vmem:[%s3460_s19 + $0x2c] ss:$16 sps:$4 sm:$0xff]  }
  0x23   : > { %2915 = vmatprep.mubr.msk.bf16.mxu0 %vm1364_vm1, %v3167_v15  ;;  %v3157_v26 = vld [vmem:[%s4253_s1 + $0x58] sm:$0xff]   ;;  %v3159_v27 = vld [vmem:[%s4253_s1 + $0x60] sm:$0xff]   ;;  %v3161_v30 = vld [vmem:[%s4253_s1 + $0x68] sm:$0xff]  }
  0x24   : > { %v3174_v28 = vld [vmem:[%s3460_s19 + $0x28] ss:$16 sps:$4 sm:$0xff]   ;;  %v3178_v29 = vld [vmem:[%s3460_s19 + $0x4c] ss:$16 sps:$4 sm:$0xff]   ;;  %v3163_v31 = vld [vmem:[%s4253_s1 + $0x70] sm:$0xff]  }
  0x25   : > { %1496 = vmatpush1.bf16.msra.mxu1 %v3143_v4  ;;  %1865 = vmatpush1.bf16.msra.mxu0 %v3152_v8  ;;  %v3180_v32 = vld [vmem:[%s3460_s19 + $0x48] ss:$16 sps:$4 sm:$0xff]   ;;  %v3184_v33 = vld [vmem:[%s3460_s19 + $0x6c] ss:$16 sps:$4 sm:$0xff]   ;;  %v3169_v35 = vld [vmem:[%s3460_s19] ss:$16 sps:$4 sm:$0xff]  }
  0x26   : > { %1497 = vmatprep.subr.bf16.mxu1 %v3427_v2  ;;  %1866 = vmatprep.subr.bf16.mxu0 %v3427_v2  ;;  %v3168_v34 = vld [vmem:[%s4253_s1 + $0x78] sm:$0xff]   ;;  %v3175_v36 = vld [vmem:[%s3460_s19 + $0x24] ss:$16 sps:$4 sm:$0xff]   ;;  %v3177_v39 = vld [vmem:[%s3460_s19 + $0x20] ss:$16 sps:$4 sm:$0xff]  }
  0x27   : > { %v3186_v37 = vld [vmem:[%s3460_s19 + $0x68] ss:$16 sps:$4 sm:$0xff]   ;;  %v3190_v38 = vld [vmem:[%s3460_s19 + $0x8c] ss:$16 sps:$4 sm:$0xff]   ;;  %v3181_v40 = vld [vmem:[%s3460_s19 + $0x44] ss:$16 sps:$4 sm:$0xff]  }
  0x28   : > { %v3192_v41 = vld [vmem:[%s3460_s19 + $0x88] ss:$16 sps:$4 sm:$0xff]   ;;  %v3196_v42 = vld [vmem:[%s3460_s19 + $0xac] ss:$16 sps:$4 sm:$0xff]   ;;  %v3183_v43 = vld [vmem:[%s3460_s19 + $0x40] ss:$16 sps:$4 sm:$0xff]  }
  0x29   : > { %1498 = vmatpush1.bf16.msra.mxu1 %v3144_v7  ;;  %1867 = vmatpush1.bf16.msra.mxu0 %v3154_v10  ;;  %v3187_v44 = vld [vmem:[%s3460_s19 + $0x64] ss:$16 sps:$4 sm:$0xff]   ;;  %v3198_v45 = vld [vmem:[%s3460_s19 + $0xa8] ss:$16 sps:$4 sm:$0xff]   ;;  %v3202_v46 = vld [vmem:[%s3460_s19 + $0xcc] ss:$16 sps:$4 sm:$0xff]  }
  0x2a   : > { %1499 = vmatprep.subr.bf16.mxu1 %v3427_v2  ;;  %1868 = vmatprep.subr.bf16.mxu0 %v3427_v2  ;;  %v3189_v47 = vld [vmem:[%s3460_s19 + $0x60] ss:$16 sps:$4 sm:$0xff]   ;;  %v3193_v48 = vld [vmem:[%s3460_s19 + $0x84] ss:$16 sps:$4 sm:$0xff]   ;;  %v3204_v49 = vld [vmem:[%s3460_s19 + $0xc8] ss:$16 sps:$4 sm:$0xff]  }
  0x2b   : > { %v3208_v50 = vld [vmem:[%s3460_s19 + $0xec] ss:$16 sps:$4 sm:$0xff]   ;;  %v3195_v51 = vld [vmem:[%s3460_s19 + $0x80] ss:$16 sps:$4 sm:$0xff]   ;;  %v3199_v52 = vld [vmem:[%s3460_s19 + $0xa4] ss:$16 sps:$4 sm:$0xff]  }
  0x2c   : > { %v3210_v53 = vld [vmem:[%s3460_s19 + $0xe8] ss:$16 sps:$4 sm:$0xff]   ;;  %v3214_v54 = vld [vmem:[%s3460_s19 + $0x10c] ss:$16 sps:$4 sm:$0xff]   ;;  %v3201_v55 = vld [vmem:[%s3460_s19 + $0xa0] ss:$16 sps:$4 sm:$0xff]  }
  0x2d   : > { %1500 = vmatpush1.bf16.msra.mxu1 %v3145_v9  ;;  %1869 = vmatpush1.bf16.msra.mxu0 %v3156_v12  ;;  %v3205_v56 = vld [vmem:[%s3460_s19 + $0xc4] ss:$16 sps:$4 sm:$0xff]   ;;  %v3216_v57 = vld [vmem:[%s3460_s19 + $0x108] ss:$16 sps:$4 sm:$0xff]   ;;  %v3220_v58 = vld [vmem:[%s3460_s19 + $0x12c] ss:$16 sps:$4 sm:$0xff]  }
  0x2e   : > { %1501 = vmatprep.subr.bf16.mxu1 %v3427_v2  ;;  %1870 = vmatprep.subr.bf16.mxu0 %v3427_v2  ;;  %v3207_v59 = vld [vmem:[%s3460_s19 + $0xc0] ss:$16 sps:$4 sm:$0xff]   ;;  %v3211_v60 = vld [vmem:[%s3460_s19 + $0xe4] ss:$16 sps:$4 sm:$0xff]   ;;  %v3222_v61 = vld [vmem:[%s3460_s19 + $0x128] ss:$16 sps:$4 sm:$0xff]  }
  0x2f   : > { %v3226_v62 = vld [vmem:[%s3460_s19 + $0x14c] ss:$16 sps:$4 sm:$0xff]   ;;  %v3213_v63 = vld [vmem:[%s3460_s19 + $0xe0] ss:$16 sps:$4 sm:$0xff]   ;;  %v3217_v0 = vld [vmem:[%s3460_s19 + $0x104] ss:$16 sps:$4 sm:$0xff]  }
  0x30   : > { %v3228_v1 = vld [vmem:[%s3460_s19 + $0x148] ss:$16 sps:$4 sm:$0xff]   ;;  %v3219_v3 = vld [vmem:[%s3460_s19 + $0x100] ss:$16 sps:$4 sm:$0xff]   ;;  %v3223_v4 = vld [vmem:[%s3460_s19 + $0x124] ss:$16 sps:$4 sm:$0xff]  }
  0x31   : > { %1502 = vmatpush1.bf16.msra.mxu1 %v3146_v11  ;;  %1871 = vmatpush1.bf16.msra.mxu0 %v3158_v14  ;;  %v3234_v5 = vld [vmem:[%s3460_s19 + $0x168] ss:$16 sps:$4 sm:$0xff]   ;;  %v3238_v6 = vld [vmem:[%s3460_s19 + $0x18c] ss:$16 sps:$4 sm:$0xff]   ;;  %v3225_v7 = vld [vmem:[%s3460_s19 + $0x120] ss:$16 sps:$4 sm:$0xff]  }
  0x32   : > { %1503 = vmatprep.subr.bf16.mxu1 %v3427_v2  ;;  %1872 = vmatprep.subr.bf16.mxu0 %v3427_v2  ;;  %v3229_v8 = vld [vmem:[%s3460_s19 + $0x144] ss:$16 sps:$4 sm:$0xff]   ;;  %v3240_v9 = vld [vmem:[%s3460_s19 + $0x188] ss:$16 sps:$4 sm:$0xff]   ;;  %v3244_v10 = vld [vmem:[%s3460_s19 + $0x1ac] ss:$16 sps:$4 sm:$0xff]  }
  0x33   : > { %v3231_v11 = vld [vmem:[%s3460_s19 + $0x140] ss:$16 sps:$4 sm:$0xff]   ;;  %v3235_v12 = vld [vmem:[%s3460_s19 + $0x164] ss:$16 sps:$4 sm:$0xff]   ;;  %v3250_v14 = vld [vmem:[%s3460_s19 + $0x1cc] ss:$16 sps:$4 sm:$0xff]  }
  0x34   : > { %v3237_v15 = vld [vmem:[%s3460_s19 + $0x160] ss:$16 sps:$4 sm:$0xff]   ;;  %v3252_v17 = vld [vmem:[%s3460_s19 + $0x1c8] ss:$16 sps:$4 sm:$0xff]  }
  0x35   : > { %1504 = vmatpush1.bf16.msra.mxu1 %v3147_v13  ;;  %1873 = vmatpush1.bf16.msra.mxu0 %v3160_v18  ;;  %v3246_v13 = vld [vmem:[%s3460_s19 + $0x1a8] ss:$16 sps:$4 sm:$0xff]   ;;  %v3256_v18 = vld [vmem:[%s3460_s19 + $0x1ec] ss:$16 sps:$4 sm:$0xff]  }
  0x36   : > { %1505 = vmatprep.subr.bf16.mxu1 %v3427_v2  ;;  %1874 = vmatprep.subr.bf16.mxu0 %v3427_v2 }
  0x39   : > { %1506 = vmatpush1.bf16.msra.mxu1 %v3149_v16  ;;  %1875 = vmatpush1.bf16.msra.mxu0 %v3162_v20  ;;  %v3241_v16 = vld [vmem:[%s3460_s19 + $0x184] ss:$16 sps:$4 sm:$0xff]  }
  0x3a   : > { %1507 = vmatprep.subr.bf16.mxu1 %v3427_v2  ;;  %1876 = vmatprep.subr.bf16.mxu0 %v3427_v2  ;;  %v3247_v20 = vld [vmem:[%s3460_s19 + $0x1a4] ss:$16 sps:$4 sm:$0xff]  }
  0x3d   : > { %1508 = vmatpush1.bf16.msra.mxu1 %v3151_v19  ;;  %1877 = vmatpush1.bf16.msra.mxu0 %v3164_v22  ;;  %v3243_v19 = vld [vmem:[%s3460_s19 + $0x180] ss:$16 sps:$4 sm:$0xff]   ;;  %v3262_v22 = vld [vmem:[%s3460_s19 + $0x20c] ss:$16 sps:$4 sm:$0xff]  }
  0x3e   : > { %1509 = vmatprep.subr.bf16.mxu1 %v3427_v2 }
  0x40   : > { %1893 = vmatmul.mubr.bf16.vlgmr.msra.gmra.mrb[0].mxu0 %v3165_v24  ;;  %v3253_v24 = vld [vmem:[%s3460_s19 + $0x1c4] ss:$16 sps:$4 sm:$0xff]  }
  0x41   : > { %1510 = vmatpush1.bf16.msra.mxu1 %v3153_v21  ;;  %2916 = vmatprep.mubr.msk.bf16.mxu0 %vm1364_vm1, %v3172_v25  ;;  %v3258_v21 = vld [vmem:[%s3460_s19 + $0x1e8] ss:$16 sps:$4 sm:$0xff]  }
  0x42   : > { %1511 = vmatprep.subr.bf16.mxu1 %v3427_v2  ;;  %v3264_v25 = vld [vmem:[%s3460_s19 + $0x208] ss:$16 sps:$4 sm:$0xff]  }
  0x45   : > { %1512 = vmatpush1.bf16.msra.mxu1 %v3155_v23  ;;  %v3249_v23 = vld [vmem:[%s3460_s19 + $0x1a0] ss:$16 sps:$4 sm:$0xff]  }
  0x46   : > { %1513 = vmatprep.subr.bf16.mxu1 %v3427_v2 }
  0x48   : > { %1901 = vmatmul.mubr.bf16.gmra.mrb[4].mxu0 %v3174_v28  ;;  %v3259_v28 = vld [vmem:[%s3460_s19 + $0x1e4] ss:$16 sps:$4 sm:$0xff]  }
  0x49   : > { %1514 = vmatpush1.bf16.msra.mxu1 %v3157_v26  ;;  %2917 = vmatprep.mubr.msk.bf16.mxu0 %vm1364_vm1, %v3178_v29  ;;  %v3268_v26 = vld [vmem:[%s3460_s19 + $0x22c] ss:$16 sps:$4 sm:$0xff]   ;;  %v3270_v29 = vld [vmem:[%s3460_s19 + $0x228] ss:$16 sps:$4 sm:$0xff]  }
  0x4a   : > { %1515 = vmatprep.subr.bf16.mxu1 %v3427_v2 }
  0x4d   : > { %1516 = vmatpush1.bf16.msra.mxu1 %v3159_v27  ;;  %v3255_v27 = vld [vmem:[%s3460_s19 + $0x1c0] ss:$16 sps:$4 sm:$0xff]  }
  0x4e   : > { %1517 = vmatprep.subr.bf16.mxu1 %v3427_v2 }
  0x50   : > { %1909 = vmatmul.mubr.bf16.gmra.mrb[8].mxu0 %v3180_v32  ;;  %v3265_v32 = vld [vmem:[%s3460_s19 + $0x204] ss:$16 sps:$4 sm:$0xff]  }
  0x51   : > { %1518 = vmatpush1.bf16.msra.mxu1 %v3161_v30  ;;  %2918 = vmatprep.mubr.msk.bf16.mxu0 %vm1364_vm1, %v3184_v33  ;;  %v3274_v30 = vld [vmem:[%s3460_s19 + $0x24c] ss:$16 sps:$4 sm:$0xff]   ;;  %v3276_v33 = vld [vmem:[%s3460_s19 + $0x248] ss:$16 sps:$4 sm:$0xff]  }
  0x52   : > { %1519 = vmatprep.subr.bf16.mxu1 %v3427_v2 }
  0x55   : > { %1520 = vmatpush1.bf16.msra.mxu1 %v3163_v31  ;;  %v3261_v31 = vld [vmem:[%s3460_s19 + $0x1e0] ss:$16 sps:$4 sm:$0xff]  }
  0x56   : > { %1521 = vmatprep.subr.bf16.mxu1 %v3427_v2  ;;  %v3232_v2 = vld [vmem:[%s3460_s19 + $0x16c] ss:$16 sps:$4 sm:$0xff]  }
  0x58   : > { %1917 = vmatmul.mubr.bf16.gmra.mrb[12].mxu0 %v3186_v37  ;;  %v3282_v37 = vld [vmem:[%s3460_s19 + $0x268] ss:$16 sps:$4 sm:$0xff]  }
  0x59   : > { %1522 = vmatpush1.bf16.msra.mxu1 %v3168_v34  ;;  %2919 = vmatprep.mubr.msk.bf16.mxu0 %vm1364_vm1, %v3190_v38  ;;  %v3280_v34 = vld [vmem:[%s3460_s19 + $0x26c] ss:$16 sps:$4 sm:$0xff]  }
  0x5a   : > { %v3286_v38 = vld [vmem:[%s3460_s19 + $0x28c] ss:$16 sps:$4 sm:$0xff]  }
  0x5c   : > { %1524 = vmatmul.mubr.bf16.vlgmr.msra.gmra.mrb[0].mxu1 %v3169_v35  ;;  %v3267_v35 = vld [vmem:[%s3460_s19 + $0x200] ss:$16 sps:$4 sm:$0xff]  }
  0x5d   : > { %1531 = vmatprep.mubr.bf16.mxu1 %v3175_v36  ;;  %v3271_v36 = vld [vmem:[%s3460_s19 + $0x224] ss:$16 sps:$4 sm:$0xff]  }
  0x60   : > { %1925 = vmatmul.mubr.bf16.gmra.mrb[16].mxu0 %v3192_v41  ;;  %v3288_v41 = vld [vmem:[%s3460_s19 + $0x288] ss:$16 sps:$4 sm:$0xff]  }
  0x61   : > { %2920 = vmatprep.mubr.msk.bf16.mxu0 %vm1364_vm1, %v3196_v42  ;;  %v3292_v42 = vld [vmem:[%s3460_s19 + $0x2ac] ss:$16 sps:$4 sm:$0xff]  }
  0x64   : > { %1532 = vmatmul.mubr.bf16.gmra.mrb[4].mxu1 %v3177_v39  ;;  %v3273_v39 = vld [vmem:[%s3460_s19 + $0x220] ss:$16 sps:$4 sm:$0xff]  }
  0x65   : > { %1539 = vmatprep.mubr.bf16.mxu1 %v3181_v40  ;;  %v3277_v40 = vld [vmem:[%s3460_s19 + $0x244] ss:$16 sps:$4 sm:$0xff]  }
  0x68   : > { %1933 = vmatmul.mubr.bf16.gmra.mrb[20].mxu0 %v3198_v45  ;;  %v3294_v45 = vld [vmem:[%s3460_s19 + $0x2a8] ss:$16 sps:$4 sm:$0xff]  }
  0x69   : > { %2921 = vmatprep.mubr.msk.bf16.mxu0 %vm1364_vm1, %v3202_v46  ;;  %v3298_v46 = vld [vmem:[%s3460_s19 + $0x2cc] ss:$16 sps:$4 sm:$0xff]  }
  0x6c   : > { %1540 = vmatmul.mubr.bf16.gmra.mrb[8].mxu1 %v3183_v43  ;;  %v3279_v43 = vld [vmem:[%s3460_s19 + $0x240] ss:$16 sps:$4 sm:$0xff]  }
  0x6d   : > { %1547 = vmatprep.mubr.bf16.mxu1 %v3187_v44  ;;  %v3283_v44 = vld [vmem:[%s3460_s19 + $0x264] ss:$16 sps:$4 sm:$0xff]  }
  0x70   : > { %1941 = vmatmul.mubr.bf16.gmra.mrb[24].mxu0 %v3204_v49  ;;  %v3300_v49 = vld [vmem:[%s3460_s19 + $0x2c8] ss:$16 sps:$4 sm:$0xff]  }
  0x71   : > { %2922 = vmatprep.mubr.msk.bf16.mxu0 %vm1364_vm1, %v3208_v50  ;;  %v3304_v50 = vld [vmem:[%s3460_s19 + $0x2ec] ss:$16 sps:$4 sm:$0xff]  }
  0x74   : > { %1548 = vmatmul.mubr.bf16.gmra.mrb[12].mxu1 %v3189_v47  ;;  %v3285_v47 = vld [vmem:[%s3460_s19 + $0x260] ss:$16 sps:$4 sm:$0xff]  }
  0x75   : > { %1555 = vmatprep.mubr.bf16.mxu1 %v3193_v48  ;;  %v3289_v48 = vld [vmem:[%s3460_s19 + $0x284] ss:$16 sps:$4 sm:$0xff]  }
  0x78   : > { %1949 = vmatmul.mubr.bf16.gmra.mrb[28].mxu0 %v3210_v53  ;;  %v3306_v53 = vld [vmem:[%s3460_s19 + $0x2e8] ss:$16 sps:$4 sm:$0xff]  }
  0x79   : > { %2923 = vmatprep.mubr.msk.bf16.mxu0 %vm1364_vm1, %v3214_v54  ;;  %v3310_v54 = vld [vmem:[%s3460_s19 + $0x30c] ss:$16 sps:$4 sm:$0xff]  }
  0x7c   : > { %1556 = vmatmul.mubr.bf16.gmra.mrb[16].mxu1 %v3195_v51  ;;  %v3291_v51 = vld [vmem:[%s3460_s19 + $0x280] ss:$16 sps:$4 sm:$0xff]  }
  0x7d   : > { %1563 = vmatprep.mubr.bf16.mxu1 %v3199_v52  ;;  %v3295_v52 = vld [vmem:[%s3460_s19 + $0x2a4] ss:$16 sps:$4 sm:$0xff]  }
  0x80   : > { %1957 = vmatmul.mubr.bf16.gmra.mrb[32].mxu0 %v3216_v57  ;;  %v3312_v57 = vld [vmem:[%s3460_s19 + $0x308] ss:$16 sps:$4 sm:$0xff]  }
  0x81   : > { %2924 = vmatprep.mubr.msk.bf16.mxu0 %vm1364_vm1, %v3220_v58  ;;  %v3316_v58 = vld [vmem:[%s3460_s19 + $0x32c] ss:$16 sps:$4 sm:$0xff]  }
  0x84   : > { %1564 = vmatmul.mubr.bf16.gmra.mrb[20].mxu1 %v3201_v55  ;;  %v3297_v55 = vld [vmem:[%s3460_s19 + $0x2a0] ss:$16 sps:$4 sm:$0xff]  }
  0x85   : > { %1571 = vmatprep.mubr.bf16.mxu1 %v3205_v56  ;;  %v3301_v56 = vld [vmem:[%s3460_s19 + $0x2c4] ss:$16 sps:$4 sm:$0xff]  }
  0x88   : > { %1965 = vmatmul.mubr.bf16.gmra.mrb[36].mxu0 %v3222_v61  ;;  %v3318_v61 = vld [vmem:[%s3460_s19 + $0x328] ss:$16 sps:$4 sm:$0xff]  }
  0x89   : > { %2925 = vmatprep.mubr.msk.bf16.mxu0 %vm1364_vm1, %v3226_v62  ;;  %v3322_v62 = vld [vmem:[%s3460_s19 + $0x34c] ss:$16 sps:$4 sm:$0xff]  }
  0x8c   : > { %1572 = vmatmul.mubr.bf16.gmra.mrb[24].mxu1 %v3207_v59  ;;  %v3303_v59 = vld [vmem:[%s3460_s19 + $0x2c0] ss:$16 sps:$4 sm:$0xff]  }
  0x8d   : > { %1579 = vmatprep.mubr.bf16.mxu1 %v3211_v60  ;;  %v3307_v60 = vld [vmem:[%s3460_s19 + $0x2e4] ss:$16 sps:$4 sm:$0xff]  }
  0x90   : > { %1973 = vmatmul.mubr.bf16.gmra.mrb[40].mxu0 %v3228_v1  ;;  %v3324_v1 = vld [vmem:[%s3460_s19 + $0x348] ss:$16 sps:$4 sm:$0xff]  }
  0x91   : > { %2926 = vmatprep.mubr.msk.bf16.mxu0 %vm1364_vm1, %v3232_v2  ;;  %v3328_v2 = vld [vmem:[%s3460_s19 + $0x36c] ss:$16 sps:$4 sm:$0xff]  }
  0x94   : > { %1580 = vmatmul.mubr.bf16.gmra.mrb[28].mxu1 %v3213_v63  ;;  %v3309_v63 = vld [vmem:[%s3460_s19 + $0x2e0] ss:$16 sps:$4 sm:$0xff]  }
  0x95   : > { %1587 = vmatprep.mubr.bf16.mxu1 %v3217_v0  ;;  %v3313_v0 = vld [vmem:[%s3460_s19 + $0x304] ss:$16 sps:$4 sm:$0xff]  }
  0x98   : > { %1981 = vmatmul.mubr.bf16.gmra.mrb[44].mxu0 %v3234_v5 }
  0x99   : > { %2927 = vmatprep.mubr.msk.bf16.mxu0 %vm1364_vm1, %v3238_v6 }
  0x9c   : > { %1588 = vmatmul.mubr.bf16.gmra.mrb[32].mxu1 %v3219_v3  ;;  %v3315_v3 = vld [vmem:[%s3460_s19 + $0x300] ss:$16 sps:$4 sm:$0xff]  }
  0x9d   : > { %1595 = vmatprep.mubr.bf16.mxu1 %v3223_v4  ;;  %v3319_v4 = vld [vmem:[%s3460_s19 + $0x324] ss:$16 sps:$4 sm:$0xff]  }
  0xa0   : > { %1989 = vmatmul.mubr.bf16.gmra.mrb[48].mxu0 %v3240_v9  ;;  %v3334_v9 = vld [vmem:[%s3460_s19 + $0x38c] ss:$16 sps:$4 sm:$0xff]  }
  0xa1   : > { %2928 = vmatprep.mubr.msk.bf16.mxu0 %vm1364_vm1, %v3244_v10 }
  0xa4   : > { %1596 = vmatmul.mubr.bf16.gmra.mrb[36].mxu1 %v3225_v7  ;;  %v3330_v7 = vld [vmem:[%s3460_s19 + $0x368] ss:$16 sps:$4 sm:$0xff]  }
  0xa5   : > { %1603 = vmatprep.mubr.bf16.mxu1 %v3229_v8 }
  0xa8   : > { %1997 = vmatmul.mubr.bf16.gmra.mrb[52].mxu0 %v3246_v13 }
  0xa9   : > { %2929 = vmatprep.mubr.msk.bf16.mxu0 %vm1364_vm1, %v3250_v14 }
  0xac   : > { %1604 = vmatmul.mubr.bf16.gmra.mrb[40].mxu1 %v3231_v11  ;;  %v3321_v11 = vld [vmem:[%s3460_s19 + $0x320] ss:$16 sps:$4 sm:$0xff]  }
  0xad   : > { %1611 = vmatprep.mubr.bf16.mxu1 %v3235_v12  ;;  %v3325_v12 = vld [vmem:[%s3460_s19 + $0x344] ss:$16 sps:$4 sm:$0xff]  }
  0xb0   : > { %2005 = vmatmul.mubr.bf16.gmra.mrb[56].mxu0 %v3252_v17  ;;  %v3340_v17 = vld [vmem:[%s3460_s19 + $0x3ac] ss:$16 sps:$4 sm:$0xff]  }
  0xb1   : > { %2930 = vmatprep.mubr.msk.bf16.mxu0 %vm1364_vm1, %v3256_v18 }
  0xb4   : > { %1612 = vmatmul.mubr.bf16.gmra.mrb[44].mxu1 %v3237_v15  ;;  %v3336_v15 = vld [vmem:[%s3460_s19 + $0x388] ss:$16 sps:$4 sm:$0xff]  }
  0xb5   : > { %1619 = vmatprep.mubr.bf16.mxu1 %v3241_v16 }
  0xb8   : > { %2013 = vmatmul.mubr.bf16.gmra.mrb[60].mxu0 %v3258_v21 }
  0xb9   : > { %2931 = vmatprep.mubr.msk.bf16.mxu0 %vm1364_vm1, %v3262_v22 }
  0xbc   : > { %1620 = vmatmul.mubr.bf16.gmra.mrb[48].mxu1 %v3243_v19  ;;  %v3327_v19 = vld [vmem:[%s3460_s19 + $0x340] ss:$16 sps:$4 sm:$0xff]  }
  0xbd   : > { %1627 = vmatprep.mubr.bf16.mxu1 %v3247_v20  ;;  %v3331_v20 = vld [vmem:[%s3460_s19 + $0x364] ss:$16 sps:$4 sm:$0xff]  }
  0xc0   : > { %2021 = vmatmul.mubr.bf16.gmra.mrb[64].mxu0 %v3264_v25  ;;  %v3346_v25 = vld [vmem:[%s3460_s19 + $0x3cc] ss:$16 sps:$4 sm:$0xff]  }
  0xc1   : > { %2932 = vmatprep.mubr.msk.bf16.mxu0 %vm1364_vm1, %v3268_v26 }
  0xc4   : > { %1628 = vmatmul.mubr.bf16.gmra.mrb[52].mxu1 %v3249_v23  ;;  %v3342_v23 = vld [vmem:[%s3460_s19 + $0x3a8] ss:$16 sps:$4 sm:$0xff]  }
  0xc5   : > { %1635 = vmatprep.mubr.bf16.mxu1 %v3253_v24 }
  0xc8   : > { %2029 = vmatmul.mubr.bf16.gmra.mrb[68].mxu0 %v3270_v29 }
  0xc9   : > { %2933 = vmatprep.mubr.msk.bf16.mxu0 %vm1364_vm1, %v3274_v30  ;;  %v3333_v30 = vld [vmem:[%s3460_s19 + $0x360] ss:$16 sps:$4 sm:$0xff]  }
  0xcc   : > { %1636 = vmatmul.mubr.bf16.gmra.mrb[56].mxu1 %v3255_v27 }
  0xcd   : > { %1643 = vmatprep.mubr.bf16.mxu1 %v3259_v28 }
  0xd0   : > { %2037 = vmatmul.mubr.bf16.gmra.mrb[72].mxu0 %v3276_v33 }
  0xd1   : > { %2934 = vmatprep.mubr.msk.bf16.mxu0 %vm1364_vm1, %v3280_v34 }
  0xd4   : > { %1644 = vmatmul.mubr.bf16.gmra.mrb[60].mxu1 %v3261_v31 }
  0xd5   : > { %1651 = vmatprep.mubr.bf16.mxu1 %v3265_v32  ;;  %v3337_v32 = vld [vmem:[%s3460_s19 + $0x384] ss:$16 sps:$4 sm:$0xff]  }
  0xd8   : > { %2045 = vmatmul.mubr.bf16.gmra.mrb[76].mxu0 %v3282_v37  ;;  %v3348_v37 = vld [vmem:[%s3460_s19 + $0x3c8] ss:$16 sps:$4 sm:$0xff]  }
  0xd9   : > { %2935 = vmatprep.mubr.msk.bf16.mxu0 %vm1364_vm1, %v3286_v38 }
  0xdc   : > { %1652 = vmatmul.mubr.bf16.gmra.mrb[64].mxu1 %v3267_v35 }
  0xdd   : > { %1659 = vmatprep.mubr.bf16.mxu1 %v3271_v36 }
  0xe0   : > { %2053 = vmatmul.mubr.bf16.gmra.mrb[80].mxu0 %v3288_v41 }
  0xe1   : > { %2936 = vmatprep.mubr.msk.bf16.mxu0 %vm1364_vm1, %v3292_v42 }
  0xe4   : > { %1660 = vmatmul.mubr.bf16.gmra.mrb[68].mxu1 %v3273_v39  ;;  %v3352_v39 = vld [vmem:[%s3460_s19 + $0x3ec] ss:$16 sps:$4 sm:$0xff]  }
  0xe5   : > { %1667 = vmatprep.mubr.bf16.mxu1 %v3277_v40 }
  0xe8   : > { %2061 = vmatmul.mubr.bf16.gmra.mrb[84].mxu0 %v3294_v45 }
  0xe9   : > { %2937 = vmatprep.mubr.msk.bf16.mxu0 %vm1364_vm1, %v3298_v46  ;;  %v3343_v46 = vld [vmem:[%s3460_s19 + $0x3a4] ss:$16 sps:$4 sm:$0xff]  }
  0xec   : > { %1668 = vmatmul.mubr.bf16.gmra.mrb[72].mxu1 %v3279_v43 }
  0xed   : > { %1675 = vmatprep.mubr.bf16.mxu1 %v3283_v44  ;;  %v3339_v44 = vld [vmem:[%s3460_s19 + $0x380] ss:$16 sps:$4 sm:$0xff]  }
  0xf0   : > { %2069 = vmatmul.mubr.bf16.gmra.mrb[88].mxu0 %v3300_v49 }
  0xf1   : > { %2938 = vmatprep.mubr.msk.bf16.mxu0 %vm1364_vm1, %v3304_v50 }
  0xf4   : > { %1676 = vmatmul.mubr.bf16.gmra.mrb[76].mxu1 %v3285_v47 }
  0xf5   : > { %1683 = vmatprep.mubr.bf16.mxu1 %v3289_v48 }
  0xf8   : > { %2077 = vmatmul.mubr.bf16.gmra.mrb[92].mxu0 %v3306_v53  ;;  %v3358_v53 = vld [vmem:[%s3460_s19 + $0x40c] ss:$16 sps:$4 sm:$0xff]  }
  0xf9   : > { %2939 = vmatprep.mubr.msk.bf16.mxu0 %vm1364_vm1, %v3310_v54 }
  0xfc   : > { %1684 = vmatmul.mubr.bf16.gmra.mrb[80].mxu1 %v3291_v51  ;;  %v3354_v51 = vld [vmem:[%s3460_s19 + $0x3e8] ss:$16 sps:$4 sm:$0xff]  }
  0xfd   : > { %1691 = vmatprep.mubr.bf16.mxu1 %v3295_v52 }
 0x100   : > { %2085 = vmatmul.mubr.bf16.gmra.mrb[96].mxu0 %v3312_v57 }
 0x101   : > { %2940 = vmatprep.mubr.msk.bf16.mxu0 %vm1364_vm1, %v3316_v58  ;;  %v3345_v58 = vld [vmem:[%s3460_s19 + $0x3a0] ss:$16 sps:$4 sm:$0xff]  }
 0x104   : > { %1692 = vmatmul.mubr.bf16.gmra.mrb[84].mxu1 %v3297_v55 }
 0x105   : > { %1699 = vmatprep.mubr.bf16.mxu1 %v3301_v56 }
 0x108   : > { %2093 = vmatmul.mubr.bf16.gmra.mrb[100].mxu0 %v3318_v61 }
 0x109   : > { %2941 = vmatprep.mubr.msk.bf16.mxu0 %vm1364_vm1, %v3322_v62 }
 0x10c   : > { %1700 = vmatmul.mubr.bf16.gmra.mrb[88].mxu1 %v3303_v59 }
 0x10d   : > { %1707 = vmatprep.mubr.bf16.mxu1 %v3307_v60  ;;  %v3349_v60 = vld [vmem:[%s3460_s19 + $0x3c4] ss:$16 sps:$4 sm:$0xff]  }
 0x110   : > { %2101 = vmatmul.mubr.bf16.gmra.mrb[104].mxu0 %v3324_v1  ;;  %v3360_v1 = vld [vmem:[%s3460_s19 + $0x408] ss:$16 sps:$4 sm:$0xff]  }
 0x111   : > { %2942 = vmatprep.mubr.msk.bf16.mxu0 %vm1364_vm1, %v3328_v2 }
 0x113   : > { %v1894_v5 = vpop.f32.mrb[0].mxu0 }
 0x114   : > { %1708 = vmatmul.mubr.bf16.gmra.mrb[92].mxu1 %v3309_v63  ;;  %v1896_v6 = vpop.f32.mrb[1].mxu0 }
 0x115   : > { %1715 = vmatprep.mubr.bf16.mxu1 %v3313_v0  ;;  %v1897_v8 = vpop.f32.mrb[2].mxu0 }
 0x116   : > { %v1899_v10 = vpop.f32.mrb[3].mxu0 }
 0x117   : > { %v3355_v10 = vld [vmem:[%s3460_s19 + $0x3e4] ss:$16 sps:$4 sm:$0xff]  }
 0x118   : > { %2109 = vmatmul.mubr.bf16.gmra.mrb[108].mxu0 %v3330_v7 }
 0x119   : > { %2943 = vmatprep.mubr.msk.bf16.mxu0 %vm1364_vm1, %v3334_v9 }
 0x11b   : > { %v1902_v13 = vpop.f32.mrb[4].mxu0 }
 0x11c   : > { %1716 = vmatmul.mubr.bf16.gmra.mrb[96].mxu1 %v3315_v3  ;;  %v1904_v14 = vpop.f32.mrb[5].mxu0  ;;  %v3364_v3 = vld [vmem:[%s3460_s19 + $0x42c] ss:$16 sps:$4 sm:$0xff]  }
 0x11d   : > { %1723 = vmatprep.mubr.bf16.mxu1 %v3319_v4  ;;  %v1905_v16 = vpop.f32.mrb[6].mxu0 }
 0x11e   : > { %v1907_v18 = vpop.f32.mrb[7].mxu0 }
 0x120   : > { %2117 = vmatmul.mubr.bf16.gmra.mrb[112].mxu0 %v3336_v15  ;;  %v3366_v15 = vld [vmem:[%s3460_s19 + $0x428] ss:$16 sps:$4 sm:$0xff]  }
 0x121   : > { %2944 = vmatprep.mubr.msk.bf16.mxu0 %vm1364_vm1, %v3340_v17  ;;  %v3370_v17 = vld [vmem:[%s3460_s19 + $0x44c] ss:$16 sps:$4 sm:$0xff]  }
 0x123   : > { %v1910_v21 = vpop.f32.mrb[8].mxu0 }
 0x124   : > { %1724 = vmatmul.mubr.bf16.gmra.mrb[100].mxu1 %v3321_v11  ;;  %v1912_v22 = vpop.f32.mrb[9].mxu0 }
 0x125   : > { %1731 = vmatprep.mubr.bf16.mxu1 %v3325_v12  ;;  %v1913_v24 = vpop.f32.mrb[10].mxu0  ;;  %v3357_v22 = vld [vmem:[%s3460_s19 + $0x3e0] ss:$16 sps:$4 sm:$0xff]  }
 0x126   : > { %v1915_v26 = vpop.f32.mrb[11].mxu0 }
 0x128   : > { %2125 = vmatmul.mubr.bf16.gmra.mrb[116].mxu0 %v3342_v23 }
 0x129   : > { %2945 = vmatprep.mubr.msk.bf16.mxu0 %vm1364_vm1, %v3346_v25 }
 0x12b   : > { %v1918_v35 = vpop.f32.mrb[12].mxu0 }
 0x12c   : > { %1732 = vmatmul.mubr.bf16.gmra.mrb[104].mxu1 %v3327_v19  ;;  %v1920_v36 = vpop.f32.mrb[13].mxu0 }
 0x12d   : > { %1739 = vmatprep.mubr.bf16.mxu1 %v3331_v20  ;;  %v1921_v38 = vpop.f32.mrb[14].mxu0 }
 0x12e   : > { %v1923_v40 = vpop.f32.mrb[15].mxu0 }
 0x12f   : > { %v1525_v27 = vpop.f32.mrb[0].mxu1  ;;  %v3367_v40 = vld [vmem:[%s3460_s19 + $0x424] ss:$16 sps:$4 sm:$0xff]  }
 0x130   : > { %v3734_v28 = vadd.f32 %v1894_v5, %v1525_v27  ;;  %v1527_v29 = vpop.f32.mrb[1].mxu1  ;;  %2133 = vmatmul.mubr.bf16.gmra.mrb[120].mxu0 %v3348_v37 }
 0x131   : > { %v1528_v31 = vpop.f32.mrb[2].mxu1  ;;  %2946 = vmatprep.mubr.msk.bf16.mxu0 %vm1364_vm1, %v3352_v39 }
 0x132   : > { %v3739_v33 = vadd.f32 %v1897_v8, %v1528_v31  ;;  %v1530_v34 = vpop.f32.mrb[3].mxu1  ;;  %v3351_v8 = vld [vmem:[%s3460_s19 + $0x3c0] ss:$16 sps:$4 sm:$0xff]  }
 0x133   : > { %v1926_v49 = vpop.f32.mrb[16].mxu0 }
 0x134   : > { %1740 = vmatmul.mubr.bf16.gmra.mrb[108].mxu1 %v3333_v30  ;;  %v1928_v50 = vpop.f32.mrb[17].mxu0  ;;  %v3372_v30 = vld [vmem:[%s3460_s19 + $0x448] ss:$16 sps:$4 sm:$0xff]  }
 0x135   : > { %1747 = vmatprep.mubr.bf16.mxu1 %v3337_v32  ;;  %v1929_v52 = vpop.f32.mrb[18].mxu0  ;;  %v3376_v32 = vld [vmem:[%s3460_s19 + $0x46c] ss:$16 sps:$4 sm:$0xff]  }
 0x136   : > { %v1931_v54 = vpop.f32.mrb[19].mxu0 }
 0x137   : > { %v1533_v41 = vpop.f32.mrb[4].mxu1  ;;  %v3369_v54 = vld [vmem:[%s3460_s19 + $0x420] ss:$16 sps:$4 sm:$0xff]  }
 0x138   : > { %v3743_v42 = vadd.f32 %v1902_v13, %v1533_v41  ;;  %v1535_v43 = vpop.f32.mrb[5].mxu1  ;;  %2141 = vmatmul.mubr.bf16.gmra.mrb[124].mxu0 %v3354_v51 }
 0x139   : > { %v1536_v45 = vpop.f32.mrb[6].mxu1  ;;  %2947 = vmatprep.mubr.msk.bf16.mxu0 %vm1364_vm1, %v3358_v53 }
 0x13a   : > { %v3748_v47 = vadd.f32 %v1905_v16, %v1536_v45  ;;  %v1538_v48 = vpop.f32.mrb[7].mxu1 }
 0x13b   : > { %v1934_v63 = vpop.f32.mrb[20].mxu0 }
 0x13c   : > { %1748 = vmatmul.mubr.bf16.gmra.mrb[112].mxu1 %v3339_v44  ;;  %v1936_v0 = vpop.f32.mrb[21].mxu0 }
 0x13d   : > { %1755 = vmatprep.mubr.bf16.mxu1 %v3343_v46  ;;  %v1937_v2 = vpop.f32.mrb[22].mxu0  ;;  %v3378_v46 = vld [vmem:[%s3460_s19 + $0x468] ss:$16 sps:$4 sm:$0xff]  }
 0x13e   : > { %v1939_v4 = vpop.f32.mrb[23].mxu0 }
 0x13f   : > { %v1541_v55 = vpop.f32.mrb[8].mxu1 }
 0x140   : > { %v3752_v56 = vadd.f32 %v1910_v21, %v1541_v55  ;;  %v1543_v57 = vpop.f32.mrb[9].mxu1  ;;  %2149 = vmatmul.mubr.bf16.gmra.mrb[128].mxu0 %v3360_v1  ;;  %v3388_v1 = vld [vmem:[%s3460_s19 + $0x4ac] ss:$16 sps:$4 sm:$0xff]  }
 0x141   : > { %v1544_v59 = vpop.f32.mrb[10].mxu1  ;;  %2948 = vmatprep.mubr.msk.bf16.mxu0 %vm1364_vm1, %v3364_v3  ;;  %v3373_v57 = vld [vmem:[%s3460_s19 + $0x444] ss:$16 sps:$4 sm:$0xff]  }
 0x142   : > { %v3757_v61 = vadd.f32 %v1913_v24, %v1544_v59  ;;  %v1546_v62 = vpop.f32.mrb[11].mxu1  ;;  %v3361_v24 = vld [vmem:[%s3460_s19 + $0x404] ss:$16 sps:$4 sm:$0xff]  }
 0x143   : > { %v1942_v13 = vpop.f32.mrb[24].mxu0 }
 0x144   : > { %1756 = vmatmul.mubr.bf16.gmra.mrb[116].mxu1 %v3345_v58  ;;  %v1944_v14 = vpop.f32.mrb[25].mxu0 }
 0x145   : > { %1763 = vmatprep.mubr.bf16.mxu1 %v3349_v60  ;;  %v1945_v16 = vpop.f32.mrb[26].mxu0 }
 0x146   : > { %v1947_v18 = vpop.f32.mrb[27].mxu0 }
 0x147   : > { %v1549_v5 = vpop.f32.mrb[12].mxu1 }
 0x148   : > { %v3761_v6 = vadd.f32 %v1918_v35, %v1549_v5  ;;  %v1551_v7 = vpop.f32.mrb[13].mxu1  ;;  %2157 = vmatmul.mubr.bf16.gmra.mrb[132].mxu0 %v3366_v15  ;;  %v3390_v15 = vld [vmem:[%s3460_s19 + $0x4a8] ss:$16 sps:$4 sm:$0xff]  }
 0x149   : > { %v1552_v9 = vpop.f32.mrb[14].mxu1  ;;  %2949 = vmatprep.mubr.msk.bf16.mxu0 %vm1364_vm1, %v3370_v17  ;;  %v3375_v7 = vld [vmem:[%s3460_s19 + $0x440] ss:$16 sps:$4 sm:$0xff]   ;;  %v3394_v17 = vld [vmem:[%s3460_s19 + $0x4cc] ss:$16 sps:$4 sm:$0xff]  }
 0x14a   : > { %v3766_v11 = vadd.f32 %v1921_v38, %v1552_v9  ;;  %v1554_v12 = vpop.f32.mrb[15].mxu1  ;;  %v3363_v38 = vld [vmem:[%s3460_s19 + $0x400] ss:$16 sps:$4 sm:$0xff]   ;;  %v3379_v9 = vld [vmem:[%s3460_s19 + $0x464] ss:$16 sps:$4 sm:$0xff]  }
 0x14b   : > { %v1950_v27 = vpop.f32.mrb[28].mxu0 }
 0x14c   : > { %1764 = vmatmul.mubr.bf16.gmra.mrb[120].mxu1 %v3351_v8  ;;  %v1952_v29 = vpop.f32.mrb[29].mxu0 }
 0x14d   : > { %1771 = vmatprep.mubr.bf16.mxu1 %v3355_v10  ;;  %v1953_v31 = vpop.f32.mrb[30].mxu0 }
 0x14e   : > { %v1955_v34 = vpop.f32.mrb[31].mxu0 }
 0x14f   : > { %v1557_v19 = vpop.f32.mrb[16].mxu1 }
 0x150   : > { %v3770_v20 = vadd.f32 %v1926_v49, %v1557_v19  ;;  %v1559_v21 = vpop.f32.mrb[17].mxu1  ;;  %2165 = vmatmul.mubr.bf16.gmra.mrb[136].mxu0 %v3372_v30  ;;  %v3382_v49 = vld [vmem:[%s3460_s19 + $0x48c] ss:$16 sps:$4 sm:$0xff]  }
 0x151   : > { %v1560_v23 = vpop.f32.mrb[18].mxu1  ;;  %2950 = vmatprep.mubr.msk.bf16.mxu0 %vm1364_vm1, %v3376_v32  ;;  %v3396_v32 = vld [vmem:[%s3460_s19 + $0x4c8] ss:$16 sps:$4 sm:$0xff]  }
 0x152   : > { %v3775_v25 = vadd.f32 %v1929_v52, %v1560_v23  ;;  %v1562_v26 = vpop.f32.mrb[19].mxu1  ;;  %v3381_v23 = vld [vmem:[%s3460_s19 + $0x460] ss:$16 sps:$4 sm:$0xff]  }
 0x153   : > { %v1958_v44 = vpop.f32.mrb[32].mxu0  ;;  %v3385_v26 = vld [vmem:[%s3460_s19 + $0x484] ss:$16 sps:$4 sm:$0xff]  }
 0x154   : > { %1772 = vmatmul.mubr.bf16.gmra.mrb[124].mxu1 %v3357_v22  ;;  %v1960_v45 = vpop.f32.mrb[33].mxu0 }
 0x155   : > { %1779 = vmatprep.mubr.bf16.mxu1 %v3361_v24  ;;  %v1961_v48 = vpop.f32.mrb[34].mxu0  ;;  %v3391_v45 = vld [vmem:[%s3460_s19 + $0x4a4] ss:$16 sps:$4 sm:$0xff]  }
 0x156   : > { %v1963_v50 = vpop.f32.mrb[35].mxu0 }
 0x157   : > { %v1565_v35 = vpop.f32.mrb[20].mxu1 }
 0x158   : > { %v3779_v36 = vadd.f32 %v1934_v63, %v1565_v35  ;;  %v1567_v37 = vpop.f32.mrb[21].mxu1  ;;  %2173 = vmatmul.mubr.bf16.gmra.mrb[140].mxu0 %v3378_v46  ;;  %v3384_v63 = vld [vmem:[%s3460_s19 + $0x488] ss:$16 sps:$4 sm:$0xff]   ;;  %v3400_v35 = vld [vmem:[%s3460_s19 + $0x4ec] ss:$16 sps:$4 sm:$0xff]  }
 0x159   : > { %v1568_v39 = vpop.f32.mrb[22].mxu1  ;;  %2951 = vmatprep.mubr.msk.bf16.mxu0 %vm1364_vm1, %v3382_v49 }
 0x15a   : > { %v3784_v41 = vadd.f32 %v1937_v2, %v1568_v39  ;;  %v1570_v43 = vpop.f32.mrb[23].mxu1 }
 0x15b   : > { %v1966_v60 = vpop.f32.mrb[36].mxu0  ;;  %v3387_v43 = vld [vmem:[%s3460_s19 + $0x480] ss:$16 sps:$4 sm:$0xff]  }
 0x15c   : > { %1780 = vmatmul.mubr.bf16.gmra.mrb[128].mxu1 %v3363_v38  ;;  %v1968_v62 = vpop.f32.mrb[37].mxu0 }
 0x15d   : > { %1787 = vmatprep.mubr.bf16.mxu1 %v3367_v40  ;;  %v1969_v0 = vpop.f32.mrb[38].mxu0  ;;  %v3393_v62 = vld [vmem:[%s3460_s19 + $0x4a0] ss:$16 sps:$4 sm:$0xff]  }
 0x15e   : > { %v1971_v2 = vpop.f32.mrb[39].mxu0 }
 0x15f   : > { %v1573_v51 = vpop.f32.mrb[24].mxu1 }
 0x160   : > { %v3788_v52 = vadd.f32 %v1942_v13, %v1573_v51  ;;  %v1575_v53 = vpop.f32.mrb[25].mxu1  ;;  %2181 = vmatmul.mubr.bf16.gmra.mrb[144].mxu0 %v3384_v63  ;;  %v3402_v51 = vld [vmem:[%s3460_s19 + $0x4e8] ss:$16 sps:$4 sm:$0xff]  }
 0x161   : > { %v1576_v55 = vpop.f32.mrb[26].mxu1  ;;  %2952 = vmatprep.mubr.msk.bf16.mxu0 %vm1364_vm1, %v3388_v1 }
 0x162   : > { %v3793_v58 = vadd.f32 %v1945_v16, %v1576_v55  ;;  %v1578_v59 = vpop.f32.mrb[27].mxu1 }
 0x163   : > { %v1974_v13 = vpop.f32.mrb[40].mxu0 }
 0x164   : > { %4272 = vst [vmem:[#allocation3_spill] sm:$0xff] %v3793_v58  ;;  %1788 = vmatmul.mubr.bf16.gmra.mrb[132].mxu1 %v3369_v54  ;;  %v1976_v14 = vpop.f32.mrb[41].mxu0  ;;  %v3406_v54 = vld [vmem:[%s3460_s19 + $0x50c] ss:$16 sps:$4 sm:$0xff]  }
 0x165   : > { %1795 = vmatprep.mubr.bf16.mxu1 %v3373_v57  ;;  %v1977_v16 = vpop.f32.mrb[42].mxu0 }
 0x166   : > { %v1979_v18 = vpop.f32.mrb[43].mxu0 }
 0x167   : > { %v1581_v3 = vpop.f32.mrb[28].mxu1 }
 0x168   : > { %v3797_v4 = vadd.f32 %v1950_v27, %v1581_v3  ;;  %v1583_v5 = vpop.f32.mrb[29].mxu1  ;;  %2189 = vmatmul.mubr.bf16.gmra.mrb[148].mxu0 %v3390_v15 }
 0x169   : > { %v1584_v8 = vpop.f32.mrb[30].mxu1  ;;  %2953 = vmatprep.mubr.msk.bf16.mxu0 %vm1364_vm1, %v3394_v17  ;;  %v3399_v17 = vld [vmem:[%s3460_s19 + $0x4c0] ss:$16 sps:$4 sm:$0xff]  }
 0x16a   : > { %4273 = vst [vmem:[#allocation4_spill] sm:$0xff] %v3797_v4  ;;  %v3802_v10 = vadd.f32 %v1953_v31, %v1584_v8  ;;  %v1586_v12 = vpop.f32.mrb[31].mxu1 }
 0x16b   : > { %v1982_v30 = vpop.f32.mrb[44].mxu0  ;;  %v3412_v12 = vld [vmem:[%s3460_s19 + $0x52c] ss:$16 sps:$4 sm:$0xff]  }
 0x16c   : > { %4274 = vst [vmem:[#allocation5_spill] sm:$0xff] %v3802_v10  ;;  %1796 = vmatmul.mubr.bf16.gmra.mrb[136].mxu1 %v3375_v7  ;;  %v1984_v31 = vpop.f32.mrb[45].mxu0  ;;  %v3408_v7 = vld [vmem:[%s3460_s19 + $0x508] ss:$16 sps:$4 sm:$0xff]  }
 0x16d   : > { %1803 = vmatprep.mubr.bf16.mxu1 %v3379_v9  ;;  %v1985_v34 = vpop.f32.mrb[46].mxu0  ;;  %v3414_v31 = vld [vmem:[%s3460_s19 + $0x528] ss:$16 sps:$4 sm:$0xff]  }
 0x16e   : > { %v1987_v37 = vpop.f32.mrb[47].mxu0 }
 0x16f   : > { %v1589_v19 = vpop.f32.mrb[32].mxu1 }
 0x170   : > { %v3806_v21 = vadd.f32 %v1958_v44, %v1589_v19  ;;  %v1591_v22 = vpop.f32.mrb[33].mxu1  ;;  %2197 = vmatmul.mubr.bf16.gmra.mrb[152].mxu0 %v3396_v32  ;;  %v3403_v19 = vld [vmem:[%s3460_s19 + $0x4e4] ss:$16 sps:$4 sm:$0xff]  }
 0x171   : > { %v1592_v24 = vpop.f32.mrb[34].mxu1  ;;  %2954 = vmatprep.mubr.msk.bf16.mxu0 %vm1364_vm1, %v3400_v35 }
 0x172   : > { %4275 = vst [vmem:[#allocation6_spill] sm:$0xff] %v3806_v21  ;;  %v3811_v27 = vadd.f32 %v1961_v48, %v1592_v24  ;;  %v1594_v29 = vpop.f32.mrb[35].mxu1 }
 0x173   : > { %v1990_v49 = vpop.f32.mrb[48].mxu0 }
 0x174   : > { %4276 = vst [vmem:[#allocation7_spill] sm:$0xff] %v3811_v27  ;;  %1804 = vmatmul.mubr.bf16.gmra.mrb[140].mxu1 %v3381_v23  ;;  %v1992_v50 = vpop.f32.mrb[49].mxu0 }
 0x175   : > { %1811 = vmatprep.mubr.bf16.mxu1 %v3385_v26  ;;  %v1993_v53 = vpop.f32.mrb[50].mxu0 }
 0x176   : > { %v1995_v55 = vpop.f32.mrb[51].mxu0 }
 0x177   : > { %v1597_v38 = vpop.f32.mrb[36].mxu1 }
 0x178   : > { %v3815_v39 = vadd.f32 %v1966_v60, %v1597_v38  ;;  %v1599_v40 = vpop.f32.mrb[37].mxu1  ;;  %2205 = vmatmul.mubr.bf16.gmra.mrb[156].mxu0 %v3402_v51 }
 0x179   : > { %v1600_v44 = vpop.f32.mrb[38].mxu1  ;;  %2955 = vmatprep.mubr.msk.bf16.mxu0 %vm1364_vm1, %v3406_v54 }
 0x17a   : > { %4277 = vst [vmem:[#allocation8_spill] sm:$0xff] %v3815_v39  ;;  %v3820_v46 = vadd.f32 %v1969_v0, %v1600_v44  ;;  %v1602_v48 = vpop.f32.mrb[39].mxu1  ;;  %v3397_v0 = vld [vmem:[%s3460_s19 + $0x4c4] ss:$16 sps:$4 sm:$0xff]  }
 0x17b   : > { %v1998_v3 = vpop.f32.mrb[52].mxu0  ;;  %v3409_v44 = vld [vmem:[%s3460_s19 + $0x504] ss:$16 sps:$4 sm:$0xff]  }
 0x17c   : > { %4278 = vst [vmem:[#allocation9_spill] sm:$0xff] %v3820_v46  ;;  %1812 = vmatmul.mubr.bf16.gmra.mrb[144].mxu1 %v3387_v43  ;;  %v2000_v5 = vpop.f32.mrb[53].mxu0  ;;  %v3405_v43 = vld [vmem:[%s3460_s19 + $0x4e0] ss:$16 sps:$4 sm:$0xff]  }
 0x17d   : > { %1819 = vmatprep.mubr.bf16.mxu1 %v3391_v45  ;;  %v2001_v9 = vpop.f32.mrb[54].mxu0  ;;  %v3415_v5 = vld [vmem:[%s3460_s19 + $0x524] ss:$16 sps:$4 sm:$0xff]  }
 0x17f   : > { %v1605_v57 = vpop.f32.mrb[40].mxu1 }
 0x180   : > { %v3824_v59 = vadd.f32 %v1974_v13, %v1605_v57  ;;  %v1607_v60 = vpop.f32.mrb[41].mxu1  ;;  %v2003_v13 = vpop.f32.mrb[55].mxu0  ;;  %2213 = vmatmul.mubr.bf16.gmra.mrb[160].mxu0 %v3408_v7 }
 0x181   : > { %v1608_v63 = vpop.f32.mrb[42].mxu1  ;;  %2956 = vmatprep.mubr.msk.bf16.mxu0 %vm1364_vm1, %v3412_v12 }
 0x182   : > { %4279 = vst [vmem:[#allocation10_spill] sm:$0xff] %v3824_v59  ;;  %v3829_v1 = vadd.f32 %v1977_v16, %v1608_v63  ;;  %v1610_v2 = vpop.f32.mrb[43].mxu1 }
 0x183   : > { %v2006_v26 = vpop.f32.mrb[56].mxu0 }
 0x184   : > { %1820 = vmatmul.mubr.bf16.gmra.mrb[148].mxu1 %v3393_v62  ;;  %v2008_v29 = vpop.f32.mrb[57].mxu0 }
 0x185   : > { %1827 = vmatprep.mubr.bf16.mxu1 %v3397_v0  ;;  %v2009_v32 = vpop.f32.mrb[58].mxu0  ;;  %v3411_v0 = vld [vmem:[%s3460_s19 + $0x500] ss:$16 sps:$4 sm:$0xff]  }
 0x186   : > { %v2011_v35 = vpop.f32.mrb[59].mxu0  ;;  %v3417_v29 = vld [vmem:[%s3460_s19 + $0x520] ss:$16 sps:$4 sm:$0xff]  }
 0x187   : > { %v1613_v14 = vpop.f32.mrb[44].mxu1 }
 0x188   : > { %v3835_v15 = vadd.f32 %v1982_v30, %v1613_v14  ;;  %v1615_v16 = vpop.f32.mrb[45].mxu1  ;;  %2221 = vmatmul.mubr.bf16.gmra.mrb[164].mxu0 %v3414_v31 }
 0x189   : > { %v1616_v18 = vpop.f32.mrb[46].mxu1 }
 0x18a   : > { %v3842_v23 = vadd.f32 %v1985_v34, %v1616_v18  ;;  %v1618_v24 = vpop.f32.mrb[47].mxu1 }
 0x18b   : > { %v2014_v51 = vpop.f32.mrb[60].mxu0 }
 0x18c   : > { %1828 = vmatmul.mubr.bf16.gmra.mrb[152].mxu1 %v3399_v17  ;;  %v2016_v54 = vpop.f32.mrb[61].mxu0 }
 0x18d   : > { %1835 = vmatprep.mubr.bf16.mxu1 %v3403_v19 }
 0x18f   : > { %v1621_v37 = vpop.f32.mrb[48].mxu1 }
 0x190   : > { %v3847_v38 = vadd.f32 %v1990_v49, %v1621_v37  ;;  %v1623_v40 = vpop.f32.mrb[49].mxu1  ;;  %v2017_v49 = vpop.f32.mrb[62].mxu0 }
 0x191   : > { %v1624_v34 = vpop.f32.mrb[50].mxu1  ;;  %v2019_v57 = vpop.f32.mrb[63].mxu0 }
 0x192   : > { %v3853_v48 = vadd.f32 %v1993_v53, %v1624_v34  ;;  %v1626_v50 = vpop.f32.mrb[51].mxu1 }
 0x193   : > { %v2022_v13 = vpop.f32.mrb[64].mxu0 }
 0x194   : > { %1836 = vmatmul.mubr.bf16.gmra.mrb[156].mxu1 %v3405_v43  ;;  %v2024_v14 = vpop.f32.mrb[65].mxu0 }
 0x195   : > { %1843 = vmatprep.mubr.bf16.mxu1 %v3409_v44  ;;  %v2025_v17 = vpop.f32.mrb[66].mxu0 }
 0x197   : > { %v1629_v60 = vpop.f32.mrb[52].mxu1 }
 0x198   : > { %v3857_v62 = vadd.f32 %v1998_v3, %v1629_v60  ;;  %v1631_v63 = vpop.f32.mrb[53].mxu1  ;;  %v2027_v3 = vpop.f32.mrb[67].mxu0 }
 0x199   : > { %v1632_v2 = vpop.f32.mrb[54].mxu1 }
 0x19a   : > { %v3863_v7 = vadd.f32 %v2001_v9, %v1632_v2  ;;  %v1634_v12 = vpop.f32.mrb[55].mxu1 }
 0x19b   : > { %v2030_v40 = vpop.f32.mrb[68].mxu0 }
 0x19c   : > { %1844 = vmatmul.mubr.bf16.gmra.mrb[160].mxu1 %v3411_v0  ;;  %v2032_v43 = vpop.f32.mrb[69].mxu0 }
 0x19d   : > { %1851 = vmatprep.mubr.bf16.mxu1 %v3415_v5  ;;  %v2033_v44 = vpop.f32.mrb[70].mxu0 }
 0x19e   : > { %v2035_v50 = vpop.f32.mrb[71].mxu0 }
 0x19f   : > { %v1637_v18 = vpop.f32.mrb[56].mxu1 }
 0x1a0   : > { %v3867_v19 = vadd.f32 %v2006_v26, %v1637_v18  ;;  %v1639_v24 = vpop.f32.mrb[57].mxu1 }
 0x1a1   : > { %v1640_v31 = vpop.f32.mrb[58].mxu1 }
 0x1a2   : > { %v3872_v35 = vadd.f32 %v2009_v32, %v1640_v31  ;;  %v1642_v37 = vpop.f32.mrb[59].mxu1 }
 0x1a3   : > { %v2038_v2 = vpop.f32.mrb[72].mxu0 }
 0x1a4   : > { %1852 = vmatmul.mubr.bf16.gmra.mrb[164].mxu1 %v3417_v29  ;;  %v2040_v5 = vpop.f32.mrb[73].mxu0 }
 0x1a5   : > { %v2041_v14 = vpop.f32.mrb[74].mxu0 }
 0x1a6   : > { %v2043_v3 = vpop.f32.mrb[75].mxu0 }
 0x1a7   : > { %v1645_v54 = vpop.f32.mrb[60].mxu1 }
 0x1a8   : > { %v3876_v26 = vadd.f32 %v2014_v51, %v1645_v54  ;;  %v1647_v57 = vpop.f32.mrb[61].mxu1 }
 0x1a9   : > { %v1648_v60 = vpop.f32.mrb[62].mxu1 }
 0x1aa   : > { %v3880_v0 = vadd.f32 %v2017_v49, %v1648_v60  ;;  %v1650_v32 = vpop.f32.mrb[63].mxu1 }
 0x1ab   : > { %v2046_v43 = vpop.f32.mrb[76].mxu0 }
 0x1ac   : > { %v2048_v50 = vpop.f32.mrb[77].mxu0 }
 0x1ad   : > { %v2049_v57 = vpop.f32.mrb[78].mxu0 }
 0x1ae   : > { %v2051_v60 = vpop.f32.mrb[79].mxu0 }
 0x1af   : > { %v1653_v18 = vpop.f32.mrb[64].mxu1 }
 0x1b0   : > { %v3884_v24 = vadd.f32 %v2022_v13, %v1653_v18  ;;  %v1655_v51 = vpop.f32.mrb[65].mxu1 }
 0x1b1   : > { %v1656_v29 = vpop.f32.mrb[66].mxu1 }
 0x1b2   : > { %v3888_v37 = vadd.f32 %v2025_v17, %v1656_v29  ;;  %v1658_v49 = vpop.f32.mrb[67].mxu1 }
 0x1b3   : > { %v2054_v29 = vpop.f32.mrb[80].mxu0 }
 0x1b4   : > { %v2056_v49 = vpop.f32.mrb[81].mxu0 }
 0x1b5   : > { %v2057_v31 = vpop.f32.mrb[82].mxu0 }
 0x1b6   : > { %v2059_v54 = vpop.f32.mrb[83].mxu0 }
 0x1b7   : > { %v1661_v32 = vpop.f32.mrb[68].mxu1 }
 0x1b8   : > { %v3892_v5 = vadd.f32 %v2030_v40, %v1661_v32  ;;  %v1663_v13 = vpop.f32.mrb[69].mxu1 }
 0x1b9   : > { %v1664_v3 = vpop.f32.mrb[70].mxu1 }
 0x1ba   : > { %4280 = vst [vmem:[#allocation11_spill] sm:$0xff] %v3892_v5  ;;  %v3896_v51 = vadd.f32 %v2033_v44, %v1664_v3  ;;  %v1666_v17 = vpop.f32.mrb[71].mxu1 }
 0x1bb   : > { %v2062_v3 = vpop.f32.mrb[84].mxu0 }
 0x1bc   : > { %4281 = vst [vmem:[#allocation12_spill] sm:$0xff] %v3896_v51  ;;  %v2064_v17 = vpop.f32.mrb[85].mxu0 }
 0x1bd   : > { %v2065_v18 = vpop.f32.mrb[86].mxu0 }
 0x1be   : > { %v2067_v50 = vpop.f32.mrb[87].mxu0 }
 0x1bf   : > { %v1669_v12 = vpop.f32.mrb[72].mxu1 }
 0x1c0   : > { %v3900_v60 = vadd.f32 %v2038_v2, %v1669_v12  ;;  %v1671_v40 = vpop.f32.mrb[73].mxu1 }
 0x1c1   : > { %v1672_v32 = vpop.f32.mrb[74].mxu1 }
 0x1c2   : > { %4282 = vst [vmem:[#allocation13_spill] sm:$0xff] %v3900_v60  ;;  %v3904_v63 = vadd.f32 %v2041_v14, %v1672_v32  ;;  %v1674_v44 = vpop.f32.mrb[75].mxu1 }
 0x1c3   : > { %v2070_v32 = vpop.f32.mrb[88].mxu0 }
 0x1c4   : > { %4283 = vst [vmem:[#allocation14_spill] sm:$0xff] %v3904_v63  ;;  %v2072_v44 = vpop.f32.mrb[89].mxu0 }
 0x1c5   : > { %v2073_v13 = vpop.f32.mrb[90].mxu0 }
 0x1c6   : > { %v2075_v49 = vpop.f32.mrb[91].mxu0 }
 0x1c7   : > { %v1677_v34 = vpop.f32.mrb[76].mxu1 }
 0x1c8   : > { %v3908_v54 = vadd.f32 %v2046_v43, %v1677_v34  ;;  %v1679_v2 = vpop.f32.mrb[77].mxu1 }
 0x1c9   : > { %v1680_v12 = vpop.f32.mrb[78].mxu1 }
 0x1ca   : > { %4284 = vst [vmem:[#allocation15_spill] sm:$0xff] %v3908_v54  ;;  %v3912_v9 = vadd.f32 %v2049_v57, %v1680_v12  ;;  %v1682_v14 = vpop.f32.mrb[79].mxu1 }
 0x1cb   : > { %v2078_v12 = vpop.f32.mrb[92].mxu0 }
 0x1cc   : > { %4285 = vst [vmem:[#allocation16_spill] sm:$0xff] %v3912_v9  ;;  %v2080_v14 = vpop.f32.mrb[93].mxu0 }
 0x1cd   : > { %v2081_v40 = vpop.f32.mrb[94].mxu0 }
 0x1ce   : > { %v2083_v17 = vpop.f32.mrb[95].mxu0 }
 0x1cf   : > { %v1685_v16 = vpop.f32.mrb[80].mxu1 }
 0x1d0   : > { %v3916_v50 = vadd.f32 %v2054_v29, %v1685_v16  ;;  %v1687_v34 = vpop.f32.mrb[81].mxu1 }
 0x1d1   : > { %v1688_v43 = vpop.f32.mrb[82].mxu1 }
 0x1d2   : > { %4286 = vst [vmem:[#allocation17_spill] sm:$0xff] %v3916_v50  ;;  %v3920_v53 = vadd.f32 %v2057_v31, %v1688_v43  ;;  %v1690_v57 = vpop.f32.mrb[83].mxu1 }
 0x1d3   : > { %v2086_v30 = vpop.f32.mrb[96].mxu0 }
 0x1d4   : > { %4287 = vst [vmem:[#allocation18_spill] sm:$0xff] %v3920_v53  ;;  %v2088_v2 = vpop.f32.mrb[97].mxu0 }
 0x1d5   : > { %v2089_v31 = vpop.f32.mrb[98].mxu0 }
 0x1d6   : > { %v2091_v43 = vpop.f32.mrb[99].mxu0 }
 0x1d7   : > { %v1693_v55 = vpop.f32.mrb[84].mxu1 }
 0x1d8   : > { %v3924_v49 = vadd.f32 %v2062_v3, %v1693_v55  ;;  %v1695_v16 = vpop.f32.mrb[85].mxu1 }
 0x1d9   : > { %v1696_v29 = vpop.f32.mrb[86].mxu1 }
 0x1da   : > { %v3926_v34 = vadd.f32 %v2065_v18, %v1696_v29  ;;  %v1698_v45 = vpop.f32.mrb[87].mxu1 }
 0x1db   : > { %v2094_v53 = vpop.f32.mrb[100].mxu0 }
 0x1dc   : > { %v2096_v55 = vpop.f32.mrb[101].mxu0 }
 0x1dd   : > { %v2097_v3 = vpop.f32.mrb[102].mxu0 }
 0x1de   : > { %v2099_v16 = vpop.f32.mrb[103].mxu0 }
 0x1df   : > { %v1701_v57 = vpop.f32.mrb[88].mxu1 }
 0x1e0   : > { %v3928_v22 = vadd.f32 %v2070_v32, %v1701_v57  ;;  %v1703_v14 = vpop.f32.mrb[89].mxu1 }
 0x1e1   : > { %v1704_v8 = vpop.f32.mrb[90].mxu1 }
 0x1e2   : > { %v3930_v44 = vadd.f32 %v2073_v13, %v1704_v8  ;;  %v1706_v17 = vpop.f32.mrb[91].mxu1 }
 0x1e3   : > { %v2102_v50 = vpop.f32.mrb[104].mxu0 }
 0x1e4   : > { %v2104_v32 = vpop.f32.mrb[105].mxu0 }
 0x1e5   : > { %v2105_v57 = vpop.f32.mrb[106].mxu0 }
 0x1e6   : > { %v2107_v14 = vpop.f32.mrb[107].mxu0 }
 0x1e7   : > { %v1709_v59 = vpop.f32.mrb[92].mxu1 }
 0x1e8   : > { %v3932_v18 = vadd.f32 %v2078_v12, %v1709_v59  ;;  %v1711_v45 = vpop.f32.mrb[93].mxu1 }
 0x1e9   : > { %v1712_v29 = vpop.f32.mrb[94].mxu1 }
 0x1ea   : > { %v3934_v2 = vadd.f32 %v2081_v40, %v1712_v29  ;;  %v1714_v43 = vpop.f32.mrb[95].mxu1 }
 0x1eb   : > { %v2110_v9 = vpop.f32.mrb[108].mxu0 }
 0x1ec   : > { %v2112_v59 = vpop.f32.mrb[109].mxu0 }
 0x1ed   : > { %v2113_v12 = vpop.f32.mrb[110].mxu0 }
 0x1ee   : > { %v2115_v45 = vpop.f32.mrb[111].mxu0 }
 0x1ef   : > { %v1717_v46 = vpop.f32.mrb[96].mxu1 }
 0x1f0   : > { %v3936_v8 = vadd.f32 %v2086_v30, %v1717_v46  ;;  %v1719_v13 = vpop.f32.mrb[97].mxu1 }
 0x1f1   : > { %v1720_v17 = vpop.f32.mrb[98].mxu1 }
 0x1f2   : > { %v3938_v55 = vadd.f32 %v2089_v31, %v1720_v17  ;;  %v1722_v16 = vpop.f32.mrb[99].mxu1 }
 0x1f3   : > { %v2118_v54 = vpop.f32.mrb[112].mxu0 }
 0x1f4   : > { %v2120_v46 = vpop.f32.mrb[113].mxu0 }
 0x1f5   : > { %v2121_v30 = vpop.f32.mrb[114].mxu0 }
 0x1f6   : > { %v2123_v13 = vpop.f32.mrb[115].mxu0 }
 0x1f7   : > { %v1725_v39 = vpop.f32.mrb[100].mxu1 }
 0x1f8   : > { %v3940_v40 = vadd.f32 %v2094_v53, %v1725_v39  ;;  %v1727_v29 = vpop.f32.mrb[101].mxu1 }
 0x1f9   : > { %v1728_v43 = vpop.f32.mrb[102].mxu1 }
 0x1fa   : > { %v3942_v32 = vadd.f32 %v2097_v3, %v1728_v43  ;;  %v1730_v14 = vpop.f32.mrb[103].mxu1 }
 0x1fb   : > { %v2126_v63 = vpop.f32.mrb[116].mxu0 }
 0x1fc   : > { %v2128_v39 = vpop.f32.mrb[117].mxu0 }
 0x1fd   : > { %v2129_v53 = vpop.f32.mrb[118].mxu0 }
 0x1fe   : > { %v2131_v29 = vpop.f32.mrb[119].mxu0 }
 0x1ff   : > { %v1733_v27 = vpop.f32.mrb[104].mxu1 }
 0x200   : > { %v3944_v31 = vadd.f32 %v2102_v50, %v1733_v27  ;;  %v1735_v17 = vpop.f32.mrb[105].mxu1 }
 0x201   : > { %v1736_v16 = vpop.f32.mrb[106].mxu1 }
 0x202   : > { %v3946_v59 = vadd.f32 %v2105_v57, %v1736_v16  ;;  %v1738_v45 = vpop.f32.mrb[107].mxu1 }
 0x203   : > { %v2134_v60 = vpop.f32.mrb[120].mxu0 }
 0x204   : > { %v2136_v27 = vpop.f32.mrb[121].mxu0 }
 0x205   : > { %v2137_v50 = vpop.f32.mrb[122].mxu0 }
 0x206   : > { %v2139_v17 = vpop.f32.mrb[123].mxu0 }
 0x207   : > { %v1741_v21 = vpop.f32.mrb[108].mxu1 }
 0x208   : > { %v3948_v3 = vadd.f32 %v2110_v9, %v1741_v21  ;;  %v1743_v43 = vpop.f32.mrb[109].mxu1 }
 0x209   : > { %v1744_v14 = vpop.f32.mrb[110].mxu1 }
 0x20a   : > { %v3950_v46 = vadd.f32 %v2113_v12, %v1744_v14  ;;  %v1746_v13 = vpop.f32.mrb[111].mxu1 }
 0x20b   : > { %v2142_v51 = vpop.f32.mrb[124].mxu0 }
 0x20c   : > { %v2144_v21 = vpop.f32.mrb[125].mxu0 }
 0x20d   : > { %v2145_v9 = vpop.f32.mrb[126].mxu0 }
 0x20e   : > { %v2147_v43 = vpop.f32.mrb[127].mxu0 }
 0x20f   : > { %v1749_v10 = vpop.f32.mrb[112].mxu1 }
 0x210   : > { %v3952_v57 = vadd.f32 %v2118_v54, %v1749_v10  ;;  %v1751_v16 = vpop.f32.mrb[113].mxu1 }
 0x211   : > { %v1752_v45 = vpop.f32.mrb[114].mxu1 }
 0x212   : > { %4288 = vst [vmem:[#allocation19_spill] sm:$0xff] %v3952_v57  ;;  %v3954_v39 = vadd.f32 %v2121_v30, %v1752_v45  ;;  %v1754_v29 = vpop.f32.mrb[115].mxu1 }
 0x213   : > { %v2150_v5 = vpop.f32.mrb[128].mxu0 }
 0x214   : > { %4289 = vst [vmem:[#allocation20_spill] sm:$0xff] %v3954_v39  ;;  %v2152_v10 = vpop.f32.mrb[129].mxu0 }
 0x215   : > { %v2153_v54 = vpop.f32.mrb[130].mxu0 }
 0x216   : > { %v2155_v16 = vpop.f32.mrb[131].mxu0 }
 0x217   : > { %v1757_v4 = vpop.f32.mrb[116].mxu1 }
 0x218   : > { %v3956_v12 = vadd.f32 %v2126_v63, %v1757_v4  ;;  %v1759_v14 = vpop.f32.mrb[117].mxu1 }
 0x219   : > { %v1760_v13 = vpop.f32.mrb[118].mxu1 }
 0x21a   : > { %4290 = vst [vmem:[#allocation21_spill] sm:$0xff] %v3956_v12  ;;  %v3958_v27 = vadd.f32 %v2129_v53, %v1760_v13  ;;  %v1762_v17 = vpop.f32.mrb[119].mxu1 }
 0x21b   : > { %v2158_v39 = vpop.f32.mrb[132].mxu0 }
 0x21c   : > { %4291 = vst [vmem:[#allocation22_spill] sm:$0xff] %v3958_v27  ;;  %v2160_v4 = vpop.f32.mrb[133].mxu0 }
 0x21d   : > { %v3964_v63 = vpop.f32.mrb[134].mxu0 }
 0x21e   : > { %v2163_v14 = vpop.f32.mrb[135].mxu0 }
 0x21f   : > { %v1765_v57 = vpop.f32.mrb[120].mxu1 }
 0x220   : > { %v3960_v30 = vadd.f32 %v2134_v60, %v1765_v57  ;;  %v1767_v45 = vpop.f32.mrb[121].mxu1  ;;  %v2320_v60 = vld [vmem:[#allocation2] sm:$0xff] }
 0x221   : > { %v1768_v29 = vpop.f32.mrb[122].mxu1  ;;  %vm2341_vm2 = vcmp.gt.f32.partialorder %v2320_v60, 1.0 }
 0x222   : > { %4292 = vst [vmem:[#allocation23_spill] sm:$0xff] %v3960_v30  ;;  %v3962_v21 = vadd.f32 %v2137_v50, %v1768_v29  ;;  %v1770_v43 = vpop.f32.mrb[123].mxu1  ;;  %v3976_v29 = vld [vmem:[%s4254_s2] ss:$0 sm:$0xff]  ;;  %v2322_v30 = vld [vmem:[#allocation2 + $0x10] sm:$0xff] }
 0x223   : > { %v3968_v12 = vpop.f32.mrb[136].mxu0  ;;  %vm2343_vm6 = vcmp.gt.f32.partialorder %v2322_v30, 1.0 }
 0x224   : > { %4293 = vst [vmem:[#allocation24_spill] sm:$0xff] %v3962_v21  ;;  %v2168_v57 = vpop.f32.mrb[137].mxu0 }
 0x225   : > { %v3971_v45 = vpop.f32.mrb[138].mxu0 }
 0x226   : > { %v2171_v43 = vpop.f32.mrb[139].mxu0 }
 0x227   : > { %v1773_v53 = vpop.f32.mrb[124].mxu1 }
 0x228   : > { %v3966_v13 = vadd.f32 %v2142_v51, %v1773_v53  ;;  %v1775_v17 = vpop.f32.mrb[125].mxu1  ;;  %v4295_v51 = vmax.f32 %v3734_v28, %v3829_v1 }
 0x229   : > { %v1776_v10 = vpop.f32.mrb[126].mxu1 }
 0x22a   : > { %4294 = vst [vmem:[#allocation25_spill] sm:$0xff] %v3966_v13  ;;  %v2146_v27 = vadd.f32 %v2145_v9, %v1776_v10  ;;  %v1778_v16 = vpop.f32.mrb[127].mxu1  ;;  %v2404_v9 = vmul.f32 0.95, %v2320_v60  ;;  %v2321_v10 = vld [vmem:[#allocation2 + $0x8] sm:$0xff] }
 0x22b   : > { %v3984_v28 = vpop.f32.mrb[140].mxu0  ;;  %v2405_v1 = vmul.f32 0.95, %v2321_v10  ;;  %vm2342_vm4 = vcmp.gt.f32.partialorder %v2321_v10, 1.0 }
 0x22c   : > { %v2250_v50 = vmax.f32 %v3924_v49, %v2146_v27  ;;  %v3428_v27 = vmov 0.0   ;;  %v2176_v60 = vpop.f32.mrb[141].mxu0 }
 0x22d   : > { %v2958_v16 = vsel %vm2341_vm2, 1.0, %v3428_v27 }
 0x22e   : > { %v2271_v4 = vmax.f32 %v4295_v51, %v2250_v50 }
 0x22f   : > { %v1781_v14 = vpop.f32.mrb[128].mxu1 }
 0x230   : > { %v2299_v53 = vadd.f32 %v3976_v29, %v2271_v4  ;;  %v2151_v17 = vadd.f32 %v2150_v5, %v1781_v14  ;;  %v1783_v49 = vpop.f32.mrb[129].mxu1  ;;  %v4296_v5 = vmax.f32 %v3739_v33, %v3835_v15  ;;  %v3990_v14 = vpop.f32.mrb[142].mxu0  ;;  %v2959_v15 = vsel %vm2342_vm4, 1.0, %v3428_v27 }
 0x231   : > { %v1784_v57 = vpop.f32.mrb[130].mxu1  ;;  %v2323_v49 = vld [vmem:[#allocation2 + $0x18] sm:$0xff] }
 0x232   : > { %v2425_v13 = vadd.f32 %v2404_v9, %v2299_v53  ;;  %v2251_v21 = vmax.f32 %v3926_v34, %v2151_v17  ;;  %v2154_v43 = vadd.f32 %v2153_v54, %v1784_v57  ;;  %v1786_v58 = vpop.f32.mrb[131].mxu1  ;;  %v2406_v9 = vmul.f32 0.95, %v2322_v30  ;;  %v2179_v34 = vpop.f32.mrb[143].mxu0 }
 0x233   : > { %v4297_v54 = vmax.f32 %v3743_v42, %v3842_v23  ;;  %v2960_v57 = vsel %vm2343_vm6, 1.0, %v3428_v27  ;;  %vm2344_vm8 = vcmp.gt.f32.partialorder %v2323_v49, 1.0  ;;  %v4298_v34 = vmax.f32 %v3748_v47, %v3847_v38 }
 0x234   : > { %v2446_v50 = vsub.f32 %v2425_v13, %v2958_v16  ;;  %v2272_v51 = vmax.f32 %v4296_v5, %v2251_v21  ;;  %v2252_v4 = vmax.f32 %v3928_v22, %v2154_v43  ;;  %v4299_v47 = vmax.f32 %v3752_v56, %v3853_v48 }
 0x236   : > { %vm2467_vm5 = vcmp.gt.f32.partialorder %v2446_v50, 1.0  ;;  %2489 = vst.msk [vmem:[#allocation2] sm:$0xff] %vm2488_vm3, %v2446_v50  ;;  %v2300_v58 = vadd.f32 %v3976_v29, %v2272_v51  ;;  %v2273_v13 = vmax.f32 %v4297_v54, %v2252_v4  ;;  %v2324_v50 = vld [vmem:[#allocation2 + $0x20] sm:$0xff]  ;;  %v4005_v51 = vpop.f32.mrb[144].mxu0 }
 0x237   : > { %v2979_v33 = vsel %vm2467_vm5, 1.0, %v3428_v27  ;;  %v1789_v22 = vpop.f32.mrb[132].mxu1  ;;  %vm2345_vm10 = vcmp.gt.f32.partialorder %v2324_v50, 1.0  ;;  %v2408_v54 = vmul.f32 0.95, %v2324_v50 }
 0x238   : > { %v3023_v21 = vpack.c.bf16 %v2979_v33, %v2979_v33  ;;  %v2426_v53 = vadd.f32 %v2405_v1, %v2300_v58  ;;  %v2301_v17 = vadd.f32 %v3976_v29, %v2273_v13  ;;  %v2159_v10 = vadd.f32 %v2158_v39, %v1789_v22  ;;  %v1791_v16 = vpop.f32.mrb[133].mxu1  ;;  %v2184_v39 = vpop.f32.mrb[145].mxu0 }
 0x239   : > { %v1792_v43 = vpop.f32.mrb[134].mxu1  ;;  %v2407_v1 = vmul.f32 0.95, %v2323_v49  ;;  %v4012_v58 = vpop.f32.mrb[146].mxu0  ;;  %v2961_v22 = vsel %vm2344_vm8, 1.0, %v3428_v27  ;;  %v2962_v56 = vsel %vm2345_vm10, 1.0, %v3428_v27 }
 0x23a   : > { %2638 = vst.msk [vmem:[%s3465_s22] sm:$0xf] %vm2637_vm7, %v3023_v21  ;;  %v2447_v42 = vsub.f32 %v2426_v53, %v2959_v15  ;;  %v2427_v23 = vadd.f32 %v2406_v9, %v2301_v17  ;;  %v2253_v30 = vmax.f32 %v3930_v44, %v2159_v10  ;;  %v2162_v60 = vadd.f32 %v3964_v63, %v1792_v43  ;;  %v1794_v5 = vpop.f32.mrb[135].mxu1  ;;  %v2187_v13 = vpop.f32.mrb[147].mxu0 }
 0x23c   : > { %vm2468_vm9 = vcmp.gt.f32.partialorder %v2447_v42, 1.0  ;;  %2490 = vst.msk [vmem:[#allocation2 + $0x8] sm:$0xff] %vm2488_vm3, %v2447_v42  ;;  %v2448_v4 = vsub.f32 %v2427_v23, %v2960_v57  ;;  %v2274_v9 = vmax.f32 %v4298_v34, %v2253_v30  ;;  %v2254_v44 = vmax.f32 %v3932_v18, %v2162_v60  ;;  %v2325_v57 = vld [vmem:[#allocation2 + $0x28] sm:$0xff]  ;;  %v2326_v60 = vld [vmem:[#allocation2 + $0x30] sm:$0xff] }
 0x23d   : > { %v2980_v63 = vsel %vm2468_vm9, 1.0, %v3428_v27  ;;  %vm2346_vm12 = vcmp.gt.f32.partialorder %v2325_v57, 1.0  ;;  %vm2347_vm14 = vcmp.gt.f32.partialorder %v2326_v60, 1.0 }
 0x23e   : > { %v3024_v33 = vpack.c.bf16 %v2980_v63, %v2980_v63  ;;  %vm2469_vm11 = vcmp.gt.f32.partialorder %v2448_v4, 1.0  ;;  %2491 = vst.msk [vmem:[#allocation2 + $0x10] sm:$0xff] %vm2488_vm3, %v2448_v4  ;;  %v2302_v15 = vadd.f32 %v3976_v29, %v2274_v9  ;;  %v2275_v38 = vmax.f32 %v4299_v47, %v2254_v44 }
 0x23f   : > { %v2981_v18 = vsel %vm2469_vm11, 1.0, %v3428_v27  ;;  %v1797_v21 = vpop.f32.mrb[136].mxu1  ;;  %v4300_v4 = vmax.f32 %v3757_v61, %v3857_v62  ;;  %v2410_v44 = vmul.f32 0.95, %v2326_v60  ;;  %v4301_v61 = vmax.f32 %v3761_v6, %v3863_v7 }
 0x240   : > { %2639 = vst.msk [vmem:[%s3465_s22 + $0x4] sm:$0xf] %vm2637_vm7, %v3024_v33  ;;  %v3025_v53 = vpack.c.bf16 %v2981_v18, %v2981_v18  ;;  %v2428_v17 = vadd.f32 %v2407_v1, %v2302_v15  ;;  %v2303_v10 = vadd.f32 %v3976_v29, %v2275_v38  ;;  %v2167_v16 = vadd.f32 %v3968_v12, %v1797_v21  ;;  %v1799_v43 = vpop.f32.mrb[137].mxu1  ;;  %v4033_v1 = vpop.f32.mrb[148].mxu0  ;;  %v2327_v21 = vld [vmem:[#allocation2 + $0x38] sm:$0xff] }
 0x241   : > { %v1800_v48 = vpop.f32.mrb[138].mxu1  ;;  %v2409_v12 = vmul.f32 0.95, %v2325_v57  ;;  %v2192_v39 = vpop.f32.mrb[149].mxu0  ;;  %v2963_v33 = vsel %vm2346_vm12, 1.0, %v3428_v27  ;;  %v2964_v6 = vsel %vm2347_vm14, 1.0, %v3428_v27 }
 0x242   : > { %2640 = vst.msk [vmem:[%s3465_s22 + $0x8] sm:$0xf] %vm2637_vm7, %v3025_v53  ;;  %v2449_v42 = vsub.f32 %v2428_v17, %v2961_v22  ;;  %v2429_v49 = vadd.f32 %v2408_v54, %v2303_v10  ;;  %v2255_v23 = vmax.f32 %v3934_v2, %v2167_v16  ;;  %v2170_v30 = vadd.f32 %v3971_v45, %v1800_v48  ;;  %v1802_v5 = vpop.f32.mrb[139].mxu1  ;;  %v4040_v9 = vpop.f32.mrb[150].mxu0  ;;  %v2328_v43 = vld [vmem:[#allocation2 + $0x40] sm:$0xff] }
 0x243   : > { %v2195_v63 = vpop.f32.mrb[151].mxu0  ;;  %vm2348_vm0 = vcmp.gt.f32.partialorder %v2327_v21, 1.0  ;;  %vm2349_vm2 = vcmp.gt.f32.partialorder %v2328_v43, 1.0  ;;  %v2412_v5 = vmul.f32 0.95, %v2328_v43 }
 0x244   : > { %vm2470_vm13 = vcmp.gt.f32.partialorder %v2449_v42, 1.0  ;;  %2492 = vst.msk [vmem:[#allocation2 + $0x18] sm:$0xff] %vm2488_vm3, %v2449_v42  ;;  %v2450_v50 = vsub.f32 %v2429_v49, %v2962_v56  ;;  %v2276_v34 = vmax.f32 %v4300_v4, %v2255_v23  ;;  %v2256_v2 = vmax.f32 %v3936_v8, %v2170_v30  ;;  %v4061_v48 = vpop.f32.mrb[152].mxu0 }
 0x245   : > { %v2982_v45 = vsel %vm2470_vm13, 1.0, %v3428_v27  ;;  %v2200_v42 = vpop.f32.mrb[153].mxu0  ;;  %v4302_v23 = vmax.f32 %v3766_v11, %v3867_v19  ;;  %v4303_v11 = vmax.f32 %v3770_v20, %v3872_v35  ;;  %v2965_v4 = vsel %vm2348_vm0, 1.0, %v3428_v27 }
 0x246   : > { %v3026_v54 = vpack.c.bf16 %v2982_v45, %v2982_v45  ;;  %vm2471_vm15 = vcmp.gt.f32.partialorder %v2450_v50, 1.0  ;;  %2493 = vst.msk [vmem:[#allocation2 + $0x20] sm:$0xff] %vm2488_vm3, %v2450_v50  ;;  %v2304_v13 = vadd.f32 %v3976_v29, %v2276_v34  ;;  %v2277_v62 = vmax.f32 %v4301_v61, %v2256_v2  ;;  %v4068_v60 = vpop.f32.mrb[154].mxu0 }
 0x247   : > { %v2983_v8 = vsel %vm2471_vm15, 1.0, %v3428_v27  ;;  %v1805_v15 = vpop.f32.mrb[140].mxu1  ;;  %v2966_v20 = vsel %vm2349_vm2, 1.0, %v3428_v27 }
 0x248   : > { %2641 = vst.msk [vmem:[%s3465_s22 + $0xc] sm:$0xf] %vm2637_vm7, %v3026_v54  ;;  %v3027_v47 = vpack.c.bf16 %v2983_v8, %v2983_v8  ;;  %v2430_v38 = vadd.f32 %v2409_v12, %v2304_v13  ;;  %v2305_v18 = vadd.f32 %v3976_v29, %v2277_v62  ;;  %v2175_v22 = vadd.f32 %v3984_v28, %v1805_v15  ;;  %v1807_v53 = vpop.f32.mrb[141].mxu1  ;;  %v2203_v12 = vpop.f32.mrb[155].mxu0  ;;  %v2329_v54 = vld [vmem:[#allocation2 + $0x48] sm:$0xff]  ;;  %v2330_v15 = vld [vmem:[#allocation2 + $0x50] sm:$0xff] }
 0x249   : > { %v1808_v7 = vpop.f32.mrb[142].mxu1  ;;  %v2411_v28 = vmul.f32 0.95, %v2327_v21  ;;  %vm2350_vm5 = vcmp.gt.f32.partialorder %v2329_v54, 1.0  ;;  %v4304_v21 = vmax.f32 %v3775_v25, %v3876_v26  ;;  %vm2351_vm8 = vcmp.gt.f32.partialorder %v2330_v15, 1.0 }
 0x24a   : > { %2642 = vst.msk [vmem:[%s3465_s22 + $0x10] sm:$0xf] %vm2637_vm7, %v3027_v47  ;;  %v2451_v17 = vsub.f32 %v2430_v38, %v2963_v33  ;;  %v2431_v10 = vadd.f32 %v2410_v44, %v2305_v18  ;;  %v2257_v16 = vmax.f32 %v3938_v55, %v2175_v22  ;;  %v2178_v57 = vadd.f32 %v3990_v14, %v1808_v7  ;;  %v1810_v56 = vpop.f32.mrb[143].mxu1 }
 0x24b   : > { %v4089_v38 = vpop.f32.mrb[156].mxu0  ;;  %v2414_v7 = vmul.f32 0.95, %v2330_v15  ;;  %v4305_v25 = vmax.f32 %v3779_v36, %v3880_v0  ;;  %v2968_v36 = vsel %vm2351_vm8, 1.0, %v3428_v27 }
 0x24c   : > { %vm2472_vm1 = vcmp.gt.f32.partialorder %v2451_v17, 1.0  ;;  %2494 = vst.msk [vmem:[#allocation2 + $0x28] sm:$0xff] %vm2488_vm3, %v2451_v17  ;;  %v2452_v49 = vsub.f32 %v2431_v10, %v2964_v6  ;;  %v2278_v30 = vmax.f32 %v4302_v23, %v2257_v16  ;;  %v2258_v55 = vmax.f32 %v3940_v40, %v2178_v57  ;;  %v2208_v18 = vpop.f32.mrb[157].mxu0  ;;  %v2331_v23 = vld [vmem:[#allocation2 + $0x58] sm:$0xff] }
 0x24d   : > { %v2984_v14 = vsel %vm2472_vm1, 1.0, %v3428_v27  ;;  %v4096_v6 = vpop.f32.mrb[158].mxu0  ;;  %v2967_v57 = vsel %vm2350_vm5, 1.0, %v3428_v27  ;;  %vm2352_vm10 = vcmp.gt.f32.partialorder %v2331_v23, 1.0 }
 0x24e   : > { %v3028_v39 = vpack.c.bf16 %v2984_v14, %v2984_v14  ;;  %vm2473_vm4 = vcmp.gt.f32.partialorder %v2452_v49, 1.0  ;;  %2495 = vst.msk [vmem:[#allocation2 + $0x30] sm:$0xff] %vm2488_vm3, %v2452_v49  ;;  %v2306_v50 = vadd.f32 %v3976_v29, %v2278_v30  ;;  %v2279_v19 = vmax.f32 %v4303_v11, %v2258_v55  ;;  %v2211_v17 = vpop.f32.mrb[159].mxu0 }
 0x24f   : > { %v2985_v40 = vsel %vm2473_vm4, 1.0, %v3428_v27  ;;  %v1813_v34 = vpop.f32.mrb[144].mxu1  ;;  %v4308_v17 = vld [vmem:[#allocation3_spill] sm:$0xff] }
 0x250   : > { %2643 = vst.msk [vmem:[%s3465_s22 + $0x14] sm:$0xf] %vm2637_vm7, %v3028_v39  ;;  %v3029_v2 = vpack.c.bf16 %v2985_v40, %v2985_v40  ;;  %v2432_v45 = vadd.f32 %v2411_v28, %v2306_v50  ;;  %v2307_v44 = vadd.f32 %v3976_v29, %v2279_v19  ;;  %v2183_v63 = vadd.f32 %v4005_v51, %v1813_v34  ;;  %v1815_v13 = vpop.f32.mrb[145].mxu1  ;;  %v2332_v39 = vld [vmem:[#allocation2 + $0x60] sm:$0xff] }
 0x251   : > { %v1816_v35 = vpop.f32.mrb[146].mxu1  ;;  %v2413_v51 = vmul.f32 0.95, %v2329_v54  ;;  %vm2353_vm12 = vcmp.gt.f32.partialorder %v2332_v39, 1.0  ;;  %v2969_v13 = vsel %vm2352_vm10, 1.0, %v3428_v27 }
 0x252   : > { %2644 = vst.msk [vmem:[%s3465_s22 + $0x18] sm:$0xf] %vm2637_vm7, %v3029_v2  ;;  %v2453_v61 = vsub.f32 %v2432_v45, %v2965_v4  ;;  %v2433_v62 = vadd.f32 %v2412_v5, %v2307_v44  ;;  %v2259_v8 = vmax.f32 %v3942_v32, %v2183_v63  ;;  %v2186_v33 = vadd.f32 %v4012_v58, %v1816_v35  ;;  %v1818_v47 = vpop.f32.mrb[147].mxu1 }
 0x253   : > { %v4117_v11 = vpop.f32.mrb[160].mxu0  ;;  %v4306_v4 = vmax.f32 %v3784_v41, %v3884_v24  ;;  %v2416_v45 = vmul.f32 0.95, %v2332_v39  ;;  %v4307_v41 = vmax.f32 %v3788_v52, %v3888_v37  ;;  %v2970_v52 = vsel %vm2353_vm12, 1.0, %v3428_v27 }
 0x254   : > { %vm2474_vm6 = vcmp.gt.f32.partialorder %v2453_v61, 1.0  ;;  %2496 = vst.msk [vmem:[#allocation2 + $0x38] sm:$0xff] %vm2488_vm3, %v2453_v61  ;;  %v2454_v22 = vsub.f32 %v2433_v62, %v2966_v20  ;;  %v2280_v53 = vmax.f32 %v4304_v21, %v2259_v8  ;;  %v2260_v32 = vmax.f32 %v3944_v31, %v2186_v33  ;;  %v2216_v19 = vpop.f32.mrb[161].mxu0  ;;  %v2333_v33 = vld [vmem:[#allocation2 + $0x68] sm:$0xff]  ;;  %v2334_v21 = vld [vmem:[#allocation2 + $0x70] sm:$0xff] }
 0x255   : > { %v2986_v58 = vsel %vm2474_vm6, 1.0, %v3428_v27  ;;  %v4124_v2 = vpop.f32.mrb[162].mxu0  ;;  %vm2354_vm14 = vcmp.gt.f32.partialorder %v2333_v33, 1.0  ;;  %vm2355_vm0 = vcmp.gt.f32.partialorder %v2334_v21, 1.0 }
 0x256   : > { %v3030_v10 = vpack.c.bf16 %v2986_v58, %v2986_v58  ;;  %vm2475_vm9 = vcmp.gt.f32.partialorder %v2454_v22, 1.0  ;;  %2497 = vst.msk [vmem:[#allocation2 + $0x40] sm:$0xff] %vm2488_vm3, %v2454_v22  ;;  %v2308_v16 = vadd.f32 %v3976_v29, %v2280_v53  ;;  %v2281_v26 = vmax.f32 %v4305_v25, %v2260_v32  ;;  %v2219_v44 = vpop.f32.mrb[163].mxu0 }
 0x257   : > { %v2987_v31 = vsel %vm2475_vm9, 1.0, %v3428_v27  ;;  %v1821_v43 = vpop.f32.mrb[148].mxu1  ;;  %v2972_v19 = vsel %vm2355_vm0, 1.0, %v3428_v27  ;;  %v2336_v44 = vld [vmem:[#allocation2 + $0x80] sm:$0xff] }
 0x258   : > { %2645 = vst.msk [vmem:[%s3465_s22 + $0x1c] sm:$0xf] %vm2637_vm7, %v3030_v10  ;;  %v3031_v56 = vpack.c.bf16 %v2987_v31, %v2987_v31  ;;  %v2434_v28 = vadd.f32 %v2413_v51, %v2308_v16  ;;  %v2309_v42 = vadd.f32 %v3976_v29, %v2281_v26  ;;  %v2191_v49 = vadd.f32 %v4033_v1, %v1821_v43  ;;  %v1823_v30 = vpop.f32.mrb[149].mxu1  ;;  %v4309_v10 = vld [vmem:[#allocation11_spill] sm:$0xff] }
 0x259   : > { %v1824_v0 = vpop.f32.mrb[150].mxu1  ;;  %v2415_v1 = vmul.f32 0.95, %v2331_v23  ;;  %v4310_v16 = vmax.f32 %v4308_v17, %v4309_v10  ;;  %v4311_v26 = vld [vmem:[#allocation19_spill] sm:$0xff]  ;;  %vm2357_vm5 = vcmp.gt.f32.partialorder %v2336_v44, 1.0 }
 0x25a   : > { %2646 = vst.msk [vmem:[%s3465_s22 + $0x20] sm:$0xf] %vm2637_vm7, %v3031_v56  ;;  %v2455_v55 = vsub.f32 %v2434_v28, %v2967_v57  ;;  %v2435_v14 = vadd.f32 %v2414_v7, %v2309_v42  ;;  %v2261_v5 = vmax.f32 %v3946_v59, %v2191_v49  ;;  %v2194_v12 = vadd.f32 %v4040_v9, %v1824_v0  ;;  %v1826_v50 = vpop.f32.mrb[151].mxu1  ;;  %v4312_v42 = vld [vmem:[#allocation4_spill] sm:$0xff] }
 0x25b   : > { %v4145_v32 = vpop.f32.mrb[164].mxu0  ;;  %v2418_v57 = vmul.f32 0.95, %v2334_v21  ;;  %v4313_v49 = vld [vmem:[#allocation12_spill] sm:$0xff]  ;;  %v2971_v0 = vsel %vm2354_vm14, 1.0, %v3428_v27  ;;  %v2335_v50 = vld [vmem:[#allocation2 + $0x78] sm:$0xff] }
 0x25c   : > { %vm2476_vm11 = vcmp.gt.f32.partialorder %v2455_v55, 1.0  ;;  %2498 = vst.msk [vmem:[#allocation2 + $0x48] sm:$0xff] %vm2488_vm3, %v2455_v55  ;;  %v2456_v40 = vsub.f32 %v2435_v14, %v2968_v36  ;;  %v2282_v34 = vmax.f32 %v4306_v4, %v2261_v5  ;;  %v2262_v59 = vmax.f32 %v3948_v3, %v2194_v12  ;;  %v2224_v58 = vpop.f32.mrb[165].mxu0 }
 0x25d   : > { %v2988_v9 = vsel %vm2476_vm11, 1.0, %v3428_v27  ;;  %v4152_v31 = vpop.f32.mrb[166].mxu0  ;;  %v4314_v23 = vmax.f32 %v4312_v42, %v4313_v49  ;;  %vm2356_vm2 = vcmp.gt.f32.partialorder %v2335_v50, 1.0  ;;  %v2337_v58 = vld [vmem:[#allocation2 + $0x88] sm:$0xff]  ;;  %v2974_v17 = vsel %vm2357_vm5, 1.0, %v3428_v27 }
 0x25e   : > { %v3032_v63 = vpack.c.bf16 %v2988_v9, %v2988_v9  ;;  %vm2477_vm13 = vcmp.gt.f32.partialorder %v2456_v40, 1.0  ;;  %2499 = vst.msk [vmem:[#allocation2 + $0x50] sm:$0xff] %vm2488_vm3, %v2456_v40  ;;  %v2310_v54 = vadd.f32 %v3976_v29, %v2282_v34  ;;  %v2283_v24 = vmax.f32 %v4307_v41, %v2262_v59  ;;  %v2227_v43 = vpop.f32.mrb[167].mxu0  ;;  %v4315_v59 = vld [vmem:[#allocation20_spill] sm:$0xff]  ;;  %v4316_v41 = vld [vmem:[#allocation5_spill] sm:$0xff]  ;;  %v4325_v42 = vld [vmem:[#allocation15_spill] sm:$0xff] }
 0x25f   : > { %v2989_v3 = vsel %vm2477_vm13, 1.0, %v3428_v27  ;;  %v1829_v20 = vpop.f32.mrb[152].mxu1  ;;  %vm2358_vm8 = vcmp.gt.f32.partialorder %v2337_v58, 1.0 }
 0x260   : > { %2647 = vst.msk [vmem:[%s3465_s22 + $0x24] sm:$0xf] %vm2637_vm7, %v3032_v63  ;;  %v3033_v35 = vpack.c.bf16 %v2989_v3, %v2989_v3  ;;  %v2436_v61 = vadd.f32 %v2415_v1, %v2310_v54  ;;  %v2311_v62 = vadd.f32 %v3976_v29, %v2283_v24  ;;  %v2199_v8 = vadd.f32 %v4061_v48, %v1829_v20  ;;  %v1831_v15 = vpop.f32.mrb[153].mxu1  ;;  %v4317_v24 = vld [vmem:[#allocation13_spill] sm:$0xff] }
 0x261   : > { %v1832_v37 = vpop.f32.mrb[154].mxu1  ;;  %v2417_v48 = vmul.f32 0.95, %v2333_v33  ;;  %v2419_v54 = vmul.f32 0.95, %v2335_v50  ;;  %v4318_v3 = vmax.f32 %v4316_v41, %v4317_v24  ;;  %v4319_v20 = vld [vmem:[#allocation21_spill] sm:$0xff] }
 0x262   : > { %2648 = vst.msk [vmem:[%s3465_s22 + $0x28] sm:$0xf] %vm2637_vm7, %v3033_v35  ;;  %v2457_v47 = vsub.f32 %v2436_v61, %v2969_v13  ;;  %v2437_v51 = vadd.f32 %v2416_v45, %v2311_v62  ;;  %v2263_v18 = vmax.f32 %v3950_v46, %v2199_v8  ;;  %v2202_v22 = vadd.f32 %v4068_v60, %v1832_v37  ;;  %v1834_v53 = vpop.f32.mrb[155].mxu1  ;;  %v4320_v33 = vld [vmem:[#allocation6_spill] sm:$0xff]  ;;  %v4331_v24 = vld [vmem:[#allocation24_spill] sm:$0xff] }
 0x263   : > { %v2420_v62 = vmul.f32 0.95, %v2336_v44  ;;  %v4321_v15 = vld [vmem:[#allocation14_spill] sm:$0xff] }
 0x264   : > { %vm2478_vm15 = vcmp.gt.f32.partialorder %v2457_v47, 1.0  ;;  %2500 = vst.msk [vmem:[#allocation2 + $0x58] sm:$0xff] %vm2488_vm3, %v2457_v47  ;;  %v2458_v7 = vsub.f32 %v2437_v51, %v2970_v52  ;;  %v2284_v25 = vmax.f32 %v4310_v16, %v2263_v18  ;;  %v2264_v46 = vmax.f32 %v4311_v26, %v2202_v22  ;;  %v4323_v26 = vld [vmem:[#allocation22_spill] sm:$0xff] }
 0x265   : > { %v2990_v60 = vsel %vm2478_vm15, 1.0, %v3428_v27  ;;  %v4322_v52 = vmax.f32 %v4320_v33, %v4321_v15  ;;  %v2973_v51 = vsel %vm2356_vm2, 1.0, %v3428_v27  ;;  %v4335_v15 = vld [vmem:[#allocation25_spill] sm:$0xff] }
 0x266   : > { %v3034_v56 = vpack.c.bf16 %v2990_v60, %v2990_v60  ;;  %vm2479_vm1 = vcmp.gt.f32.partialorder %v2458_v7, 1.0  ;;  %2501 = vst.msk [vmem:[#allocation2 + $0x60] sm:$0xff] %vm2488_vm3, %v2458_v7  ;;  %v2312_v28 = vadd.f32 %v3976_v29, %v2284_v25  ;;  %v2285_v30 = vmax.f32 %v4314_v23, %v2264_v46 }
 0x267   : > { %v2991_v36 = vsel %vm2479_vm1, 1.0, %v3428_v27  ;;  %v1837_v55 = vpop.f32.mrb[156].mxu1 }
 0x268   : > { %2649 = vst.msk [vmem:[%s3465_s22 + $0x2c] sm:$0xf] %vm2637_vm7, %v3034_v56  ;;  %v3035_v14 = vpack.c.bf16 %v2991_v36, %v2991_v36  ;;  %v2438_v5 = vadd.f32 %v2417_v48, %v2312_v28  ;;  %v2313_v12 = vadd.f32 %v3976_v29, %v2285_v30  ;;  %v2207_v39 = vadd.f32 %v4089_v38, %v1837_v55  ;;  %v1839_v1 = vpop.f32.mrb[157].mxu1  ;;  %v4324_v28 = vld [vmem:[#allocation7_spill] sm:$0xff] }
 0x269   : > { %v1840_v40 = vpop.f32.mrb[158].mxu1  ;;  %v2421_v56 = vmul.f32 0.95, %v2337_v58  ;;  %v4326_v49 = vmax.f32 %v4324_v28, %v4325_v42  ;;  %v4327_v30 = vld [vmem:[#allocation23_spill] sm:$0xff] }
 0x26a   : > { %2650 = vst.msk [vmem:[%s3465_s22 + $0x30] sm:$0xf] %vm2637_vm7, %v3035_v14  ;;  %v2459_v4 = vsub.f32 %v2438_v5, %v2971_v0  ;;  %v2439_v34 = vadd.f32 %v2418_v57, %v2313_v12  ;;  %v2265_v9 = vmax.f32 %v4315_v59, %v2207_v39  ;;  %v2210_v45 = vadd.f32 %v4096_v6, %v1840_v40  ;;  %v1842_v63 = vpop.f32.mrb[159].mxu1  ;;  %v2338_v57 = vld [vmem:[#allocation2 + $0x90] sm:$0xff] }
 0x26b   : > { %vm2359_vm10 = vcmp.gt.f32.partialorder %v2338_v57, 1.0  ;;  %v2422_v55 = vmul.f32 0.95, %v2338_v57  ;;  %v4328_v5 = vld [vmem:[#allocation8_spill] sm:$0xff] }
 0x26c   : > { %vm2480_vm4 = vcmp.gt.f32.partialorder %v2459_v4, 1.0  ;;  %2502 = vst.msk [vmem:[#allocation2 + $0x68] sm:$0xff] %vm2488_vm3, %v2459_v4  ;;  %v2460_v38 = vsub.f32 %v2439_v34, %v2972_v19  ;;  %v2286_v13 = vmax.f32 %v4318_v3, %v2265_v9  ;;  %v2266_v35 = vmax.f32 %v4319_v20, %v2210_v45  ;;  %v4329_v12 = vld [vmem:[#allocation16_spill] sm:$0xff]  ;;  %v2339_v45 = vld [vmem:[#allocation2 + $0x98] sm:$0xff]  ;;  %v2340_v20 = vld [vmem:[#allocation2 + $0xa0] sm:$0xff] }
 0x26d   : > { %v2992_v61 = vsel %vm2480_vm4, 1.0, %v3428_v27  ;;  %v4330_v39 = vmax.f32 %v4328_v5, %v4329_v12  ;;  %v2975_v19 = vsel %vm2358_vm8, 1.0, %v3428_v27  ;;  %v2976_v63 = vsel %vm2359_vm10, 1.0, %v3428_v27 }
 0x26e   : > { %v3036_v6 = vpack.c.bf16 %v2992_v61, %v2992_v61  ;;  %vm2481_vm6 = vcmp.gt.f32.partialorder %v2460_v38, 1.0  ;;  %2503 = vst.msk [vmem:[#allocation2 + $0x70] sm:$0xff] %vm2488_vm3, %v2460_v38  ;;  %v2314_v8 = vadd.f32 %v3976_v29, %v2286_v13  ;;  %v2287_v37 = vmax.f32 %v4322_v52, %v2266_v35 }
 0x26f   : > { %v2993_v47 = vsel %vm2481_vm6, 1.0, %v3428_v27  ;;  %v1845_v18 = vpop.f32.mrb[160].mxu1  ;;  %vm2360_vm12 = vcmp.gt.f32.partialorder %v2339_v45, 1.0  ;;  %v2423_v61 = vmul.f32 0.95, %v2339_v45  ;;  %vm2361_vm14 = vcmp.gt.f32.partialorder %v2340_v20, 1.0 }
 0x270   : > { %2651 = vst.msk [vmem:[%s3465_s22 + $0x34] sm:$0xf] %vm2637_vm7, %v3036_v6  ;;  %v3037_v22 = vpack.c.bf16 %v2993_v47, %v2993_v47  ;;  %v2440_v21 = vadd.f32 %v2419_v54, %v2314_v8  ;;  %v2315_v53 = vadd.f32 %v3976_v29, %v2287_v37  ;;  %v2215_v48 = vadd.f32 %v4117_v11, %v1845_v18  ;;  %v1847_v7 = vpop.f32.mrb[161].mxu1  ;;  %v4333_v6 = vld [vmem:[#allocation17_spill] sm:$0xff]  ;;  %v4336_v18 = vld [vmem:[#allocation10_spill] sm:$0xff] }
 0x271   : > { %v1848_v10 = vpop.f32.mrb[162].mxu1  ;;  %v2977_v58 = vsel %vm2360_vm12, 1.0, %v3428_v27 }
 0x272   : > { %2652 = vst.msk [vmem:[%s3465_s22 + $0x38] sm:$0xf] %vm2637_vm7, %v3037_v22  ;;  %v2461_v16 = vsub.f32 %v2440_v21, %v2973_v51  ;;  %v2441_v25 = vadd.f32 %v2420_v62, %v2315_v53  ;;  %v2267_v46 = vmax.f32 %v4323_v26, %v2215_v48  ;;  %v2218_v60 = vadd.f32 %v4124_v2, %v1848_v10  ;;  %v1850_v43 = vpop.f32.mrb[163].mxu1  ;;  %v4332_v62 = vld [vmem:[#allocation9_spill] sm:$0xff]  ;;  %v4337_v22 = vld [vmem:[#allocation18_spill] sm:$0xff] }
 0x273   : > { %v4334_v8 = vmax.f32 %v4332_v62, %v4333_v6  ;;  %v4338_v21 = vmax.f32 %v4336_v18, %v4337_v22 }
 0x274   : > { %vm2482_vm9 = vcmp.gt.f32.partialorder %v2461_v16, 1.0  ;;  %2504 = vst.msk [vmem:[#allocation2 + $0x78] sm:$0xff] %vm2488_vm3, %v2461_v16  ;;  %v2462_v11 = vsub.f32 %v2441_v25, %v2974_v17  ;;  %v2288_v23 = vmax.f32 %v4326_v49, %v2267_v46  ;;  %v2268_v36 = vmax.f32 %v4327_v30, %v2218_v60 }
 0x275   : > { %v2994_v0 = vsel %vm2482_vm9, 1.0, %v3428_v27  ;;  %v2978_v16 = vsel %vm2361_vm14, 1.0, %v3428_v27 }
 0x276   : > { %v3038_v2 = vpack.c.bf16 %v2994_v0, %v2994_v0  ;;  %vm2483_vm11 = vcmp.gt.f32.partialorder %v2462_v11, 1.0  ;;  %2505 = vst.msk [vmem:[#allocation2 + $0x80] sm:$0xff] %vm2488_vm3, %v2462_v11  ;;  %v2316_v14 = vadd.f32 %v3976_v29, %v2288_v23  ;;  %v2289_v50 = vmax.f32 %v4330_v39, %v2268_v36 }
 0x277   : > { %v2995_v1 = vsel %vm2483_vm11, 1.0, %v3428_v27  ;;  %v1853_v40 = vpop.f32.mrb[164].mxu1 }
 0x278   : > { %2653 = vst.msk [vmem:[%s3465_s22 + $0x3c] sm:$0xf] %vm2637_vm7, %v3038_v2  ;;  %v3039_v4 = vpack.c.bf16 %v2995_v1, %v2995_v1  ;;  %v2442_v34 = vadd.f32 %v2421_v56, %v2316_v14  ;;  %v2317_v59 = vadd.f32 %v3976_v29, %v2289_v50  ;;  %v2223_v9 = vadd.f32 %v4145_v32, %v1853_v40  ;;  %v1855_v44 = vpop.f32.mrb[165].mxu1 }
 0x279   : > { %v1856_v54 = vpop.f32.mrb[166].mxu1 }
 0x27a   : > { %2654 = vst.msk [vmem:[%s3465_s22 + $0x40] sm:$0xf] %vm2637_vm7, %v3039_v4  ;;  %v2463_v38 = vsub.f32 %v2442_v34, %v2975_v19  ;;  %v2443_v41 = vadd.f32 %v2422_v55, %v2317_v59  ;;  %v2269_v3 = vmax.f32 %v4331_v24, %v2223_v9  ;;  %v2226_v13 = vadd.f32 %v4152_v31, %v1856_v54  ;;  %v1858_v35 = vpop.f32.mrb[167].mxu1 }
 0x27b   : > { %v2424_v31 = vmul.f32 0.95, %v2340_v20 }
 0x27c   : > { %vm2484_vm13 = vcmp.gt.f32.partialorder %v2463_v38, 1.0  ;;  %2506 = vst.msk [vmem:[#allocation2 + $0x88] sm:$0xff] %vm2488_vm3, %v2463_v38  ;;  %v2464_v32 = vsub.f32 %v2443_v41, %v2976_v63  ;;  %v2290_v33 = vmax.f32 %v4334_v8, %v2269_v3  ;;  %v2270_v52 = vmax.f32 %v4335_v15, %v2226_v13 }
 0x27d   : > { %v2996_v37 = vsel %vm2484_vm13, 1.0, %v3428_v27 }
 0x27e   : > { %v3040_v47 = vpack.c.bf16 %v2996_v37, %v2996_v37  ;;  %vm2485_vm15 = vcmp.gt.f32.partialorder %v2464_v32, 1.0  ;;  %2507 = vst.msk [vmem:[#allocation2 + $0x90] sm:$0xff] %vm2488_vm3, %v2464_v32  ;;  %v2318_v51 = vadd.f32 %v3976_v29, %v2290_v33  ;;  %v2291_v53 = vmax.f32 %v4338_v21, %v2270_v52 }
 0x27f   : > { %v2997_v48 = vsel %vm2485_vm15, 1.0, %v3428_v27 }
 0x280   : > { %2655 = vst.msk [vmem:[%s3465_s22 + $0x44] sm:$0xf] %vm2637_vm7, %v3040_v47  ;;  %v3041_v7 = vpack.c.bf16 %v2997_v48, %v2997_v48  ;;  %v2444_v17 = vadd.f32 %v2423_v61, %v2318_v51  ;;  %v2319_v10 = vadd.f32 %v3976_v29, %v2291_v53 }
 0x282   : > { %2656 = vst.msk [vmem:[%s3465_s22 + $0x48] sm:$0xf] %vm2637_vm7, %v3041_v7  ;;  %v2465_v25 = vsub.f32 %v2444_v17, %v2977_v58  ;;  %v2445_v26 = vadd.f32 %v2424_v31, %v2319_v10 }
 0x284   : > { %vm2486_vm0 = vcmp.gt.f32.partialorder %v2465_v25, 1.0  ;;  %2508 = vst.msk [vmem:[#allocation2 + $0x98] sm:$0xff] %vm2488_vm3, %v2465_v25  ;;  %v2466_v46 = vsub.f32 %v2445_v26, %v2978_v16 }
 0x285   : > { %v2998_v60 = vsel %vm2486_vm0, 1.0, %v3428_v27 }
 0x286   : > { %v3042_v57 = vpack.c.bf16 %v2998_v60, %v2998_v60  ;;  %vm2487_vm1 = vcmp.gt.f32.partialorder %v2466_v46, 1.0  ;;  %2509 = vst.msk [vmem:[#allocation2 + $0xa0] sm:$0xff] %vm2488_vm3, %v2466_v46 }
 0x287   : > { %v2999_v43 = vsel %vm2487_vm1, 1.0, %v3428_v27 }
 0x288   : > { %2657 = vst.msk [vmem:[%s3465_s22 + $0x4c] sm:$0xf] %vm2637_vm7, %v3042_v57  ;;  %v3043_v29 = vpack.c.bf16 %v2999_v43, %v2999_v43 }
 0x28a   : > { %2658 = vst.msk [vmem:[%s3465_s22 + $0x50] sm:$0xf] %vm2637_vm7, %v3043_v29 }
 0x28b PF: > { %s13_s12 = sadd.s32 1, %s3424_s12  }
 0x28c   : > { %p10_p5 = scmp.ge.s32.totalorder %s13_s12, 7  }
 0x28e   :  { %12 = sbr.rel (!%p10_p5) target bundleno = 1 (0x1), region = 66 }

// kernel: _lambda_.6
= control target key start
LH: loop header
LB: loop body
LE: loop exit
PB: predicated region body
PF: predicated region fallthrough
CT: control target
= control target key end

     0   :  { %s850_s12 = smov 0   ;;  %s946_s0 = inlined_call_operand.vmem [shape: bf16[5,64,288], index: 0, kind: input, shape index: {}]   ;;  %s947_s1 = inlined_call_operand.vmem [shape: bf16[288,64], index: 1, kind: input, shape index: {}]   ;;  %s948_s2 = inlined_call_operand.vmem [shape: f32[1,64], index: 2, kind: input, shape index: {}]   ;;  %s949_s3 = inlined_call_operand.vmem [shape: bf16[5,16,64], index: 3, kind: output, shape index: {}]  }
   0x1 LB: > { %s646_s13 = sadd.s32 4294967295, %s826_s12   ;;  %p650_p0 = scmp.ge.s32.totalorder %s826_s12, 1  ;;  %s826_s12 = sphi %s850_s12, %s13_s12  }
   0x2   : > { %p137_p1 = scmp.lt.s32.totalorder %s826_s12, 6 }
   0x4   : > { %p138_p2 = pnand %p650_p0, %p137_p1 }
   0x5   : > { %p161_p3 = scmp.lt.s32.totalorder (!%p138_p2), %s646_s13, 4  ;;  %p654_p4 = scmp.ne.s32.totalorder (!%p138_p2), %s646_s13, 0 }
   0x6   : > { %141 = sbr.rel (%p138_p2) target bundleno = 304 (0x130), region = 32 }
   0xd   : > { %s162_s14 = scalar_select %p161_p3, %s646_s13, 4 }
   0xe   : > { %175 = sbr.rel (%p654_p4) target bundleno = 21 (0x15), region = 36  ;;  %vm176_vm0 = vcmask (!%p654_p4), 523264   ;;  %v828_v0 = vmov (!%p654_p4), 0.0  }
   0xf   : > { %s775_s15 = smul.u32 96, %s162_s14  ;;  %s698_s16 = sshll.u32 %s162_s14, 3  ;;  %177 = vst.msk [vmem:[#allocation2] sm:$0xff] (!%p654_p4), %vm176_vm0, %v828_v0  ;;  %178 = vst.msk [vmem:[#allocation2 + $0x8] sm:$0xff] (!%p654_p4), %vm176_vm0, %v828_v0 }
  0x10   : > { %s861_s19 = scalar_lea.vmem %s949_s3, %s698_s16 }
  0x11   : > { %s866_s22 = scalar_lea.vmem %s946_s0, %s775_s15 }
  0x15 PF: > { %v786_v1 = vld [vmem:[%s947_s1 + $0x40] sm:$0xff]   ;;  %v788_v3 = vld [vmem:[%s947_s1 + $0x48] sm:$0xff]   ;;  %v790_v5 = vld [vmem:[%s947_s1 + $0x50] sm:$0xff]   ;;  %vm399_vm1 = vcmask 261120   ;;  %vm573_vm4 = vcmask 523264   ;;  %vm588_vm6 = vcmask 519168  }
  0x16   : > { %v787_v2 = vld [vmem:[%s947_s1] sm:$0xff]   ;;  %701 = vmatprep.subr.bf16.mxu0 %v786_v1  ;;  %759 = vmatprep.subr.bf16.mxu1 %v786_v1  ;;  %v789_v4 = vld [vmem:[%s947_s1 + $0x8] sm:$0xff]   ;;  %v791_v6 = vld [vmem:[%s947_s1 + $0x10] sm:$0xff]  }
  0x17   : > { %702 = vmatpush3.bf16.msra.mxu0 %v787_v2  ;;  %767 = vmatpush3.bf16.msra.mxu1 %v787_v2  ;;  %v792_v7 = vld [vmem:[%s947_s1 + $0x58] sm:$0xff]   ;;  %v794_v9 = vld [vmem:[%s947_s1 + $0x60] sm:$0xff]   ;;  %v796_v11 = vld [vmem:[%s947_s1 + $0x68] sm:$0xff]  }
  0x18   : > { %703 = vmatprep.subr.bf16.mxu0 %v788_v3  ;;  %760 = vmatprep.subr.bf16.mxu1 %v788_v3  ;;  %v793_v8 = vld [vmem:[%s947_s1 + $0x18] sm:$0xff]   ;;  %v795_v10 = vld [vmem:[%s947_s1 + $0x20] sm:$0xff]   ;;  %v797_v14 = vld [vmem:[%s947_s1 + $0x28] sm:$0xff]  }
  0x19   : > { %v804_v12 = vld [vmem:[%s866_s22 + $0x4] ss:$12 sps:$4 sm:$0xff]   ;;  %v807_v13 = vld [vmem:[%s866_s22 + $0x4c] ss:$12 sps:$4 sm:$0xff]   ;;  %v805_v21 = vld [vmem:[%s866_s22 + $0x48] ss:$12 sps:$4 sm:$0xff]  }
  0x1a   : > { %v798_v15 = vld [vmem:[%s947_s1 + $0x70] sm:$0xff]   ;;  %444 = vmatprep.mubr.bf16.mxu0 %v804_v12  ;;  %468 = vmatprep.mubr.bf16.mxu1 %v807_v13  ;;  %v800_v17 = vld [vmem:[%s947_s1 + $0x78] sm:$0xff]   ;;  %v808_v19 = vld [vmem:[%s947_s1 + $0x80] sm:$0xff]  }
  0x1b   : > { %704 = vmatpush3.bf16.msra.mxu0 %v789_v4  ;;  %768 = vmatpush3.bf16.msra.mxu1 %v789_v4  ;;  %v799_v16 = vld [vmem:[%s947_s1 + $0x30] sm:$0xff]   ;;  %v801_v18 = vld [vmem:[%s947_s1 + $0x38] sm:$0xff]   ;;  %v802_v20 = vld [vmem:[%s866_s22] ss:$12 sps:$4 sm:$0xff]  }
  0x1c   : > { %705 = vmatprep.subr.bf16.mxu0 %v790_v5  ;;  %761 = vmatprep.subr.bf16.mxu1 %v790_v5  ;;  %v810_v22 = vld [vmem:[%s866_s22 + $0x1c] ss:$12 sps:$4 sm:$0xff]   ;;  %v813_v25 = vld [vmem:[%s866_s22 + $0x18] ss:$12 sps:$4 sm:$0xff]   ;;  %v814_v26 = vld [vmem:[%s866_s22 + $0x20] ss:$12 sps:$4 sm:$0xff]  }
  0x1d   : > { %v809_v23 = vld [vmem:[%s947_s1 + $0x88] sm:$0xff]   ;;  %v815_v27 = vld [vmem:[%s866_s22 + $0x34] ss:$12 sps:$4 sm:$0xff]   ;;  %v817_v28 = vld [vmem:[%s866_s22 + $0x38] ss:$12 sps:$4 sm:$0xff]  }
  0x1e   : > { %v812_v24 = vld [vmem:[%s866_s22 + $0x8] ss:$12 sps:$4 sm:$0xff]   ;;  %v818_v29 = vld [vmem:[%s866_s22 + $0x30] ss:$12 sps:$4 sm:$0xff]  }
  0x1f   : > { %706 = vmatpush3.bf16.msra.mxu0 %v791_v6  ;;  %769 = vmatpush3.bf16.msra.mxu1 %v791_v6  ;;  %v819_v30 = vld [vmem:[%s866_s22 + $0x50] ss:$12 sps:$4 sm:$0xff]   ;;  %v558_v12 = vld [vmem:[#allocation2 + $0x8] sm:$0xff] }
  0x20   : > { %707 = vmatprep.subr.bf16.mxu0 %v792_v7  ;;  %762 = vmatprep.subr.bf16.mxu1 %v792_v7  ;;  %vm560_vm3 = vcmp.gt.f32.partialorder %v558_v12, 1.0 }
  0x23   : > { %708 = vmatpush3.bf16.msra.mxu0 %v793_v8  ;;  %770 = vmatpush3.bf16.msra.mxu1 %v793_v8  ;;  %v557_v8 = vld [vmem:[#allocation2] sm:$0xff] }
  0x24   : > { %709 = vmatprep.subr.bf16.mxu0 %v794_v9  ;;  %763 = vmatprep.subr.bf16.mxu1 %v794_v9  ;;  %vm559_vm2 = vcmp.gt.f32.partialorder %v557_v8, 1.0 }
  0x27   : > { %710 = vmatpush3.bf16.msra.mxu0 %v795_v10  ;;  %771 = vmatpush3.bf16.msra.mxu1 %v795_v10 }
  0x28   : > { %711 = vmatprep.subr.bf16.mxu0 %v796_v11  ;;  %764 = vmatprep.subr.bf16.mxu1 %v796_v11  ;;  %v689_v11 = vld [vmem:[%s948_s2] ss:$0 sm:$0xff] }
  0x2b   : > { %712 = vmatpush3.bf16.msra.mxu0 %v797_v14  ;;  %772 = vmatpush3.bf16.msra.mxu1 %v797_v14  ;;  %v565_v14 = vmul.f32 0.95, %v557_v8 }
  0x2c   : > { %713 = vmatprep.subr.bf16.mxu0 %v798_v15  ;;  %765 = vmatprep.subr.bf16.mxu1 %v798_v15 }
  0x2f   : > { %714 = vmatpush3.bf16.msra.mxu0 %v799_v16  ;;  %773 = vmatpush3.bf16.msra.mxu1 %v799_v16 }
  0x30   : > { %715 = vmatprep.subr.bf16.mxu0 %v800_v17  ;;  %766 = vmatprep.subr.bf16.mxu1 %v800_v17 }
  0x33   : > { %716 = vmatpush3.bf16.msra.mxu0 %v801_v18  ;;  %774 = vmatpush3.bf16.msra.mxu1 %v801_v18  ;;  %v566_v18 = vmul.f32 0.95, %v558_v12 }
  0x34   : > { %747 = vmatprep.subr.bf16.mxu1 %v808_v19 }
  0x36   : > { %445 = vmatmul.mubr.bf16.vlgmr.msra.gmra.mrb[0].mxu0 %v802_v20  ;;  %469 = vmatmul.mubr.bf16.vlgmr.msra.gmra.mrb[0].mxu1 %v805_v21 }
  0x37   : > { %748 = vmatpush3.bf16.msra.mxu1 %v808_v19  ;;  %452 = vmatprep.mubr.bf16.mxu0 %v810_v22  ;;  %v829_v19 = vmov 0.0  }
  0x38   : > { %749 = vmatprep.subr.bf16.mxu1 %v809_v23  ;;  %751 = vmatprep.mubr.msk.bf16.mxu1 %vm399_vm1, %v812_v24  ;;  %v690_v20 = vsel %vm559_vm2, 1.0, %v829_v19 }
  0x3b   : > { %750 = vmatpush3.bf16.msra.mxu1 %v809_v23  ;;  %v691_v23 = vsel %vm560_vm3, 1.0, %v829_v19 }
  0x3e   : > { %453 = vmatmul.mubr.bf16.gmra.mrb[4].mxu0 %v813_v25  ;;  %752 = vmatmul.mubr.msk.bf16.vlgmr.msra.gmra.mrb[4].mxu1 %vm399_vm1, %v814_v26 }
  0x3f   : > { %460 = vmatprep.mubr.bf16.mxu0 %v815_v27  ;;  %755 = vmatprep.mubr.msk.bf16.mxu1 %vm399_vm1, %v817_v28 }
  0x46   : > { %461 = vmatmul.mubr.bf16.gmra.mrb[8].mxu0 %v818_v29  ;;  %756 = vmatmul.mubr.msk.bf16.gmra.mrb[8].mxu1 %vm399_vm1, %v819_v30 }
 0x109   : > { %v717_v31 = vpop.f32.mrb[0].mxu0  ;;  %v735_v32 = vpop.f32.mrb[0].mxu1 }
 0x10a   : > { %v718_v33 = vpop.f32.mrb[1].mxu0  ;;  %v736_v34 = vpop.f32.mrb[1].mxu1 }
 0x10b   : > { %v719_v35 = vadd.f32 %v718_v33, %v717_v31  ;;  %v737_v36 = vadd.f32 %v736_v34, %v735_v32  ;;  %v720_v37 = vpop.f32.mrb[2].mxu0  ;;  %v738_v38 = vpop.f32.mrb[2].mxu1 }
 0x10c   : > { %v721_v39 = vpop.f32.mrb[3].mxu0  ;;  %v739_v40 = vpop.f32.mrb[3].mxu1 }
 0x10d   : > { %v722_v41 = vadd.f32 %v721_v39, %v720_v37  ;;  %v740_v42 = vadd.f32 %v739_v40, %v738_v38 }
 0x111   : > { %v723_v43 = vpop.f32.mrb[4].mxu0  ;;  %v753_v44 = vpop.f32.mrb[4].mxu1 }
 0x112   : > { %v724_v45 = vpop.f32.mrb[5].mxu0  ;;  %v511_v46 = vpop.f32.mrb[5].mxu1 }
 0x113   : > { %v725_v47 = vadd.f32 %v724_v45, %v723_v43  ;;  %v512_v48 = vadd.f32 %v719_v35, %v511_v46  ;;  %v726_v49 = vpop.f32.mrb[6].mxu0  ;;  %v754_v50 = vpop.f32.mrb[6].mxu1 }
 0x114   : > { %v727_v51 = vpop.f32.mrb[7].mxu0  ;;  %v514_v52 = vpop.f32.mrb[7].mxu1 }
 0x115   : > { %v520_v53 = vadd.f32 %v753_v44, %v725_v47  ;;  %v728_v54 = vadd.f32 %v727_v51, %v726_v49  ;;  %v515_v55 = vadd.f32 %v722_v41, %v514_v52 }
 0x117   : > { %v542_v56 = vmax.f32 %v512_v48, %v520_v53  ;;  %v523_v57 = vadd.f32 %v754_v50, %v728_v54 }
 0x119   : > { %v543_v58 = vmax.f32 %v515_v55, %v523_v57  ;;  %v729_v59 = vpop.f32.mrb[8].mxu0  ;;  %v757_v60 = vpop.f32.mrb[8].mxu1 }
 0x11a   : > { %v536_v61 = vadd.f32 %v757_v60, %v737_v36  ;;  %v730_v62 = vpop.f32.mrb[9].mxu0  ;;  %v527_v63 = vpop.f32.mrb[9].mxu1 }
 0x11b   : > { %v731_v0 = vadd.f32 %v730_v62, %v729_v59  ;;  %v732_v1 = vpop.f32.mrb[10].mxu0  ;;  %v758_v2 = vpop.f32.mrb[10].mxu1 }
 0x11c   : > { %v539_v3 = vadd.f32 %v758_v2, %v740_v42  ;;  %v733_v4 = vpop.f32.mrb[11].mxu0  ;;  %v530_v5 = vpop.f32.mrb[11].mxu1 }
 0x11d   : > { %v528_v6 = vadd.f32 %v731_v0, %v527_v63  ;;  %v734_v7 = vadd.f32 %v733_v4, %v732_v1 }
 0x11f   : > { %v544_v9 = vmax.f32 %v528_v6, %v536_v61  ;;  %v531_v10 = vadd.f32 %v734_v7, %v530_v5 }
 0x121   : > { %v546_v13 = vmax.f32 %v542_v56, %v544_v9  ;;  %v545_v15 = vmax.f32 %v531_v10, %v539_v3 }
 0x123   : > { %v555_v16 = vadd.f32 %v689_v11, %v546_v13  ;;  %v547_v17 = vmax.f32 %v543_v58, %v545_v15 }
 0x125   : > { %v567_v21 = vadd.f32 %v565_v14, %v555_v16  ;;  %v556_v22 = vadd.f32 %v689_v11, %v547_v17 }
 0x127   : > { %v569_v24 = vsub.f32 %v567_v21, %v690_v20  ;;  %v568_v25 = vadd.f32 %v566_v18, %v556_v22 }
 0x129   : > { %vm571_vm5 = vcmp.gt.f32.partialorder %v569_v24, 1.0  ;;  %574 = vst.msk [vmem:[#allocation2] sm:$0xff] %vm573_vm4, %v569_v24  ;;  %v570_v26 = vsub.f32 %v568_v25, %v691_v23 }
 0x12a   : > { %v692_v27 = vsel %vm571_vm5, 1.0, %v829_v19 }
 0x12b   : > { %v699_v28 = vpack.c.bf16 %v692_v27, %v692_v27  ;;  %vm572_vm7 = vcmp.gt.f32.partialorder %v570_v26, 1.0  ;;  %575 = vst.msk [vmem:[#allocation2 + $0x8] sm:$0xff] %vm573_vm4, %v570_v26 }
 0x12c   : > { %v693_v29 = vsel %vm572_vm7, 1.0, %v829_v19 }
 0x12d   : > { %589 = vst.msk [vmem:[%s861_s19] sm:$0xf] %vm588_vm6, %v699_v28  ;;  %v700_v30 = vpack.c.bf16 %v693_v29, %v693_v29 }
 0x12f   : > { %590 = vst.msk [vmem:[%s861_s19 + $0x4] sm:$0xf] %vm588_vm6, %v700_v30 }
 0x130 PF: > { %s13_s12 = sadd.s32 1, %s826_s12  }
 0x131   : > { %p10_p5 = scmp.ge.s32.totalorder %s13_s12, 7  }
 0x133   :  { %12 = sbr.rel (!%p10_p5) target bundleno = 1 (0x1), region = 66 }

// kernel: _lambda_.7
= control target key start
LH: loop header
LB: loop body
LE: loop exit
PB: predicated region body
PF: predicated region fallthrough
CT: control target
= control target key end

     0   :  { %12 = vsyncpa [#allocation6], 0  ;;  %s2827_s0 = inlined_call_operand.vmem [shape: bf16[5,2,384], index: 0, kind: input, shape index: {}]   ;;  %s2828_s1 = inlined_call_operand.vmem [shape: bf16[384,512], index: 1, kind: input, shape index: {}]   ;;  %s2829_s2 = inlined_call_operand.vmem [shape: f32[1,512], index: 2, kind: input, shape index: {}]   ;;  %s2830_s3 = inlined_call_operand.vmem [shape: bf16[512,128], index: 3, kind: input, shape index: {}]   ;;  %s2831_s4 = inlined_call_operand.vmem [shape: f32[1,128], index: 4, kind: input, shape index: {}]   ;;  %s2832_s5 = inlined_call_operand.vmem [shape: bf16[128,128], index: 5, kind: input, shape index: {}]   ;;  %s2833_s6 = inlined_call_operand.vmem [shape: f32[1,128], index: 6, kind: input, shape index: {}]   ;;  %s2834_s7 = inlined_call_operand.hbm [shape: f32[5,2,128], index: 7, kind: output, shape index: {}]  }
   0x1   :  { %14 = vsyncpa [#allocation6 + $0x1], 0  ;;  %s2267_s24 = smov 0   ;;  %s2269_s25 = smov 0  }
   0x2   :  { %s2271_s26 = smov 0   ;;  %s2273_s27 = smov 0  }
   0x3 LB: > { %s2288_s28 = sadd.s32 4294967295, %s2217_s27   ;;  %s1682_s29 = sadd.s32 4294967294, %s2217_s27   ;;  %s2217_s27 = sphi %s2273_s27, %s2842_s27   ;;  %s2213_s26 = sphi %s2271_s26, %s2841_s26   ;;  %s2209_s25 = sphi %s2269_s25, %s2840_s25   ;;  %s2205_s24 = sphi %s2267_s24, %s2839_s24  }
   0x4   : > { %s2292_s30 = sadd.s32 1, %s2217_s27   ;;  %s179_s8 = sadd.s32 1, %s2213_s26 }
   0x5   : > { %s176_s9 = ssub.s32 %s2217_s27, %s2292_s30  ;;  %p189_p0 = scmp.ne.s32.totalorder %s2213_s26, %s2209_s25 }
   0x6   : > { %p177_p1 = scmp.eq.s32.totalorder %s176_s9, 0  ;;  %p190_p2 = scmp.eq.s32.totalorder %s2288_s28, 4 }
   0x7   : > { %p195_p3 = scmp.ne.s32.totalorder %s2209_s25, %s2205_s24  ;;  %p196_p4 = scmp.eq.s32.totalorder %s1682_s29, 4 }
   0x8   : > { %s2303_s10 = scalar_select %p177_p1, %s2213_s26, %s179_s8  }
   0x9   : > { %p2305_p5 = por %p190_p2, %p189_p0  ;;  %p2309_p6 = por %p196_p4, %p195_p3 }
   0xa   : > { %p1685_p7 = scmp.ge.s32.totalorder %s2217_s27, 1  ;;  %p239_p8 = scmp.lt.s32.totalorder %s2217_s27, 6 }
   0xc   : > { %p240_p9 = pnand %p1685_p7, %p239_p8 }
   0xd   : > { %s2835_s13 = sand.u32 (!%p240_p9), 1, %s2209_s25   ;;  %p270_p10 = scmp.lt.s32.totalorder (!%p240_p9), %s2288_s28, 4 }
   0xe   : > { %243 = sbr.rel (%p240_p9) target bundleno = 819 (0x333), region = 48  ;;  %s2319_s14 = sshll.u32 (!%p240_p9), %s2835_s13, 1 }
   0xf   : > { %s269_s20 = scalar_lea.vmem (!%p240_p9), [#allocation5], %s2319_s14  ;;  %p1687_p11 = scmp.ne.s32.totalorder (!%p240_p9), %s2288_s28, 0 }
  0x15   : > { %s271_s15 = scalar_select %p270_p10, %s2288_s28, 4 }
  0x16   : > { %278 = sbr.rel (%p1687_p11) target bundleno = 29 (0x1d), region = 52  ;;  %v2219_v0 = vmov (!%p1687_p11), 0.0  }
  0x17   : > { %s1924_s16 = smul.u32 3, %s271_s15  ;;  %279 = vst [vmem:[#allocation2] sm:$0xff] (!%p1687_p11), %v2219_v0  ;;  %280 = vst [vmem:[#allocation3] sm:$0x3] (!%p1687_p11), %v2219_v0 }
  0x18   : > { %281 = vst [vmem:[#allocation4] sm:$0x3] (!%p1687_p11), %v2219_v0 }
  0x19   : > { %s2325_s19 = scalar_lea.vmem %s2827_s0, %s1924_s16 }
  0x1d PF: > { %v1971_v1 = vld [vmem:[%s2828_s1 + $0x4] ss:$16 sps:$4 sm:$0xff]   ;;  %v1973_v2 = vld [vmem:[%s2828_s1 + $0xc] ss:$16 sps:$4 sm:$0xff]   ;;  %v1975_v3 = vld [vmem:[%s2828_s1] ss:$16 sps:$4 sm:$0xff]   ;;  %v381_v39 = vlaneseq }
  0x1e   : > { %908 = vmatprep.subr.bf16.mxu0 %v1971_v1  ;;  %v1976_v4 = vld [vmem:[%s2828_s1 + $0x8] ss:$16 sps:$4 sm:$0xff]   ;;  %990 = vmatprep.subr.bf16.mxu1 %v1973_v2  ;;  %v1977_v5 = vld [vmem:[%s2828_s1 + $0x24] ss:$16 sps:$4 sm:$0xff]   ;;  %v1979_v6 = vld [vmem:[%s2828_s1 + $0x2c] ss:$16 sps:$4 sm:$0xff]  }
  0x1f   : > { %909 = vmatpush1.bf16.msra.mxu0 %v1975_v3  ;;  %991 = vmatpush1.bf16.msra.mxu1 %v1976_v4  ;;  %v1981_v7 = vld [vmem:[%s2828_s1 + $0x20] ss:$16 sps:$4 sm:$0xff]   ;;  %v1982_v8 = vld [vmem:[%s2828_s1 + $0x28] ss:$16 sps:$4 sm:$0xff]   ;;  %v1983_v9 = vld [vmem:[%s2828_s1 + $0x44] ss:$16 sps:$4 sm:$0xff]  }
  0x20   : > { %910 = vmatprep.subr.bf16.mxu0 %v1977_v5  ;;  %992 = vmatprep.subr.bf16.mxu1 %v1979_v6  ;;  %v1985_v10 = vld [vmem:[%s2828_s1 + $0x4c] ss:$16 sps:$4 sm:$0xff]   ;;  %v1987_v11 = vld [vmem:[%s2828_s1 + $0x40] ss:$16 sps:$4 sm:$0xff]   ;;  %v1988_v12 = vld [vmem:[%s2828_s1 + $0x48] ss:$16 sps:$4 sm:$0xff]  }
  0x21   : > { %v1989_v13 = vld [vmem:[%s2828_s1 + $0x64] ss:$16 sps:$4 sm:$0xff]   ;;  %v1991_v14 = vld [vmem:[%s2828_s1 + $0x6c] ss:$16 sps:$4 sm:$0xff]   ;;  %v1993_v15 = vld [vmem:[%s2828_s1 + $0x60] ss:$16 sps:$4 sm:$0xff]  }
  0x22   : > { %v1994_v16 = vld [vmem:[%s2828_s1 + $0x68] ss:$16 sps:$4 sm:$0xff]   ;;  %v1995_v17 = vld [vmem:[%s2828_s1 + $0x84] ss:$16 sps:$4 sm:$0xff]   ;;  %v1997_v18 = vld [vmem:[%s2828_s1 + $0x8c] ss:$16 sps:$4 sm:$0xff]  }
  0x23   : > { %911 = vmatpush1.bf16.msra.mxu0 %v1981_v7  ;;  %993 = vmatpush1.bf16.msra.mxu1 %v1982_v8  ;;  %v1999_v19 = vld [vmem:[%s2828_s1 + $0x80] ss:$16 sps:$4 sm:$0xff]   ;;  %v2000_v20 = vld [vmem:[%s2828_s1 + $0x88] ss:$16 sps:$4 sm:$0xff]   ;;  %v2001_v21 = vld [vmem:[%s2828_s1 + $0xa4] ss:$16 sps:$4 sm:$0xff]  }
  0x24   : > { %912 = vmatprep.subr.bf16.mxu0 %v1983_v9  ;;  %994 = vmatprep.subr.bf16.mxu1 %v1985_v10  ;;  %v2003_v22 = vld [vmem:[%s2828_s1 + $0xac] ss:$16 sps:$4 sm:$0xff]   ;;  %v2005_v23 = vld [vmem:[%s2828_s1 + $0xa0] ss:$16 sps:$4 sm:$0xff]   ;;  %v2006_v24 = vld [vmem:[%s2828_s1 + $0xa8] ss:$16 sps:$4 sm:$0xff]  }
  0x25   : > { %v2007_v25 = vld [vmem:[%s2828_s1 + $0xc4] ss:$16 sps:$4 sm:$0xff]   ;;  %v2009_v26 = vld [vmem:[%s2828_s1 + $0xcc] ss:$16 sps:$4 sm:$0xff]   ;;  %v2011_v27 = vld [vmem:[%s2828_s1 + $0xc0] ss:$16 sps:$4 sm:$0xff]  }
  0x26   : > { %v2012_v28 = vld [vmem:[%s2828_s1 + $0xc8] ss:$16 sps:$4 sm:$0xff]   ;;  %v2013_v29 = vld [vmem:[%s2828_s1 + $0xe4] ss:$16 sps:$4 sm:$0xff]   ;;  %v2015_v30 = vld [vmem:[%s2828_s1 + $0xec] ss:$16 sps:$4 sm:$0xff]  }
  0x27   : > { %913 = vmatpush1.bf16.msra.mxu0 %v1987_v11  ;;  %995 = vmatpush1.bf16.msra.mxu1 %v1988_v12  ;;  %v2017_v31 = vld [vmem:[%s2828_s1 + $0xe0] ss:$16 sps:$4 sm:$0xff]   ;;  %v2018_v32 = vld [vmem:[%s2828_s1 + $0xe8] ss:$16 sps:$4 sm:$0xff]   ;;  %v2019_v33 = vld [vmem:[%s2828_s1 + $0x104] ss:$16 sps:$4 sm:$0xff]  }
  0x28   : > { %914 = vmatprep.subr.bf16.mxu0 %v1989_v13  ;;  %996 = vmatprep.subr.bf16.mxu1 %v1991_v14  ;;  %v2021_v34 = vld [vmem:[%s2828_s1 + $0x10c] ss:$16 sps:$4 sm:$0xff]   ;;  %v2023_v35 = vld [vmem:[%s2828_s1 + $0x100] ss:$16 sps:$4 sm:$0xff]   ;;  %v2024_v36 = vld [vmem:[%s2828_s1 + $0x108] ss:$16 sps:$4 sm:$0xff]  }
  0x29   : > { %v2025_v37 = vld [vmem:[%s2828_s1 + $0x124] ss:$16 sps:$4 sm:$0xff]   ;;  %v2027_v38 = vld [vmem:[%s2828_s1 + $0x12c] ss:$16 sps:$4 sm:$0xff]   ;;  %v2220_v40 = vmov 1966171168  }
  0x2a   : > { %v411_v41 = vunpack.c.l.s4 %v2220_v40  ;;  %v2029_v42 = vld [vmem:[%s2828_s1 + $0x120] ss:$16 sps:$4 sm:$0xff]   ;;  %v2030_v43 = vld [vmem:[%s2828_s1 + $0x128] ss:$16 sps:$4 sm:$0xff]   ;;  %v2031_v44 = vld [vmem:[%s2828_s1 + $0x144] ss:$16 sps:$4 sm:$0xff]  }
  0x2b   : > { %915 = vmatpush1.bf16.msra.mxu0 %v1993_v15  ;;  %997 = vmatpush1.bf16.msra.mxu1 %v1994_v16  ;;  %v2033_v45 = vld [vmem:[%s2828_s1 + $0x14c] ss:$16 sps:$4 sm:$0xff]   ;;  %v2455_v46 = vshrl.u32 %v381_v39, 7  ;;  %v2035_v48 = vld [vmem:[%s2828_s1 + $0x140] ss:$16 sps:$4 sm:$0xff]   ;;  %vm2224_vm2 = vmmov 0  }
  0x2c   : > { %916 = vmatprep.subr.bf16.mxu0 %v1995_v17  ;;  %998 = vmatprep.subr.bf16.mxu1 %v1997_v18  ;;  %v412_v47 = vunpack.c.0.s8 %v411_v41  ;;  %v2036_v49 = vld [vmem:[%s2828_s1 + $0x148] ss:$16 sps:$4 sm:$0xff]   ;;  %v2037_v50 = vld [vmem:[%s2828_s1 + $0x164] ss:$16 sps:$4 sm:$0xff]   ;;  %v2039_v51 = vld [vmem:[%s2828_s1 + $0x16c] ss:$16 sps:$4 sm:$0xff]  }
  0x2d   : > { %v1688_v53 = vld.sshfl [vmem:[%s2325_s19] sm:$0x13 pattern:$0x75316420]  ;;  %v2042_v55 = vld [vmem:[%s2828_s1 + $0x168] ss:$16 sps:$4 sm:$0xff]  }
  0x2e   : > { %v415_v52 = vsub.s32 %v412_v47, %v2455_v46  ;;  %v2041_v54 = vld [vmem:[%s2828_s1 + $0x160] ss:$16 sps:$4 sm:$0xff]   ;;  %v409_v56 = vcombine.high %v1688_v53, %v1688_v53  ;;  %v2043_v57 = vld [vmem:[%s2828_s1 + $0x184] ss:$16 sps:$4 sm:$0xff]   ;;  %v2045_v58 = vld [vmem:[%s2828_s1 + $0x18c] ss:$16 sps:$4 sm:$0xff]  }
  0x2f   : > { %917 = vmatpush1.bf16.msra.mxu0 %v1999_v19  ;;  %999 = vmatpush1.bf16.msra.mxu1 %v2000_v20  ;;  %v2047_v60 = vld [vmem:[%s2828_s1 + $0x180] ss:$16 sps:$4 sm:$0xff]   ;;  %v2048_v61 = vld [vmem:[%s2828_s1 + $0x188] ss:$16 sps:$4 sm:$0xff]   ;;  %v2049_v62 = vld [vmem:[%s2828_s1 + $0x1a4] ss:$16 sps:$4 sm:$0xff]  }
  0x30   : > { %918 = vmatprep.subr.bf16.mxu0 %v2001_v21  ;;  %1000 = vmatprep.subr.bf16.mxu1 %v2003_v22  ;;  %v423_v59 = vrot.slane %v409_v56, %v415_v52  ;;  %v2051_v63 = vld [vmem:[%s2828_s1 + $0x1ac] ss:$16 sps:$4 sm:$0xff]   ;;  %v2053_v0 = vld [vmem:[%s2828_s1 + $0x1a0] ss:$16 sps:$4 sm:$0xff]   ;;  %v2054_v1 = vld [vmem:[%s2828_s1 + $0x1a8] ss:$16 sps:$4 sm:$0xff]   ;;  %v2537_v14 = vrot.slane %v1688_v53, %v415_v52 }
  0x31   : > { %v2055_v2 = vld [vmem:[%s2828_s1 + $0x1c4] ss:$16 sps:$4 sm:$0xff]   ;;  %v2057_v3 = vld [vmem:[%s2828_s1 + $0x1cc] ss:$16 sps:$4 sm:$0xff]   ;;  %v2059_v4 = vld [vmem:[%s2828_s1 + $0x1c0] ss:$16 sps:$4 sm:$0xff]  }
  0x32   : > { %940 = vmatprep.mubr.bf16.mxu0 %v423_v59  ;;  %1022 = vmatprep.mubr.bf16.mxu1 %v423_v59  ;;  %v2060_v5 = vld [vmem:[%s2828_s1 + $0x1c8] ss:$16 sps:$4 sm:$0xff]   ;;  %v2061_v6 = vld [vmem:[%s2828_s1 + $0x1e4] ss:$16 sps:$4 sm:$0xff]   ;;  %v2063_v7 = vld [vmem:[%s2828_s1 + $0x1ec] ss:$16 sps:$4 sm:$0xff]   ;;  %v424_v47 = vcombine.high %v2537_v14, %v2537_v14 }
  0x33   : > { %919 = vmatpush1.bf16.msra.mxu0 %v2005_v23  ;;  %1001 = vmatpush1.bf16.msra.mxu1 %v2006_v24  ;;  %v2065_v8 = vld [vmem:[%s2828_s1 + $0x1e0] ss:$16 sps:$4 sm:$0xff]   ;;  %v2066_v9 = vld [vmem:[%s2828_s1 + $0x1e8] ss:$16 sps:$4 sm:$0xff]   ;;  %v2069_v10 = vld [vmem:[%s2828_s1 + $0x204] ss:$16 sps:$4 sm:$0xff]  }
  0x34   : > { %920 = vmatprep.subr.bf16.mxu0 %v2007_v25  ;;  %1002 = vmatprep.subr.bf16.mxu1 %v2009_v26  ;;  %v2072_v11 = vld [vmem:[%s2828_s1 + $0x20c] ss:$16 sps:$4 sm:$0xff]   ;;  %v2067_v12 = vld [vmem:[%s2828_s1 + $0x200] ss:$16 sps:$4 sm:$0xff]   ;;  %v2070_v13 = vld [vmem:[%s2828_s1 + $0x208] ss:$16 sps:$4 sm:$0xff]  }
  0x35   : > { %v2075_v15 = vld [vmem:[%s2828_s1 + $0x224] ss:$16 sps:$4 sm:$0xff]   ;;  %v2078_v16 = vld [vmem:[%s2828_s1 + $0x22c] ss:$16 sps:$4 sm:$0xff]   ;;  %v2073_v17 = vld [vmem:[%s2828_s1 + $0x220] ss:$16 sps:$4 sm:$0xff]  }
  0x36   : > { %v2076_v18 = vld [vmem:[%s2828_s1 + $0x228] ss:$16 sps:$4 sm:$0xff]   ;;  %v2081_v19 = vld [vmem:[%s2828_s1 + $0x244] ss:$16 sps:$4 sm:$0xff]   ;;  %v2084_v20 = vld [vmem:[%s2828_s1 + $0x24c] ss:$16 sps:$4 sm:$0xff]  }
  0x37   : > { %921 = vmatpush1.bf16.msra.mxu0 %v2011_v27  ;;  %1003 = vmatpush1.bf16.msra.mxu1 %v2012_v28  ;;  %v2221_v21 = vmov 0   ;;  %v2079_v22 = vld [vmem:[%s2828_s1 + $0x240] ss:$16 sps:$4 sm:$0xff]   ;;  %v2082_v23 = vld [vmem:[%s2828_s1 + $0x248] ss:$16 sps:$4 sm:$0xff]   ;;  %s1836_s23 = sshll.u32 %s2288_s28, 5 }
  0x38   : > { %922 = vmatprep.subr.bf16.mxu0 %v2013_v29  ;;  %1004 = vmatprep.subr.bf16.mxu1 %v2015_v30  ;;  %v2087_v24 = vld [vmem:[%s2828_s1 + $0x264] ss:$16 sps:$4 sm:$0xff]   ;;  %v2090_v25 = vld [vmem:[%s2828_s1 + $0x26c] ss:$16 sps:$4 sm:$0xff]   ;;  %v2085_v26 = vld [vmem:[%s2828_s1 + $0x260] ss:$16 sps:$4 sm:$0xff]   ;;  %s2780_s9 = scalar_lea.hbm %s2834_s7, %s1836_s23 }
  0x39   : > { %v2088_v27 = vld [vmem:[%s2828_s1 + $0x268] ss:$16 sps:$4 sm:$0xff]   ;;  %v2093_v28 = vld [vmem:[%s2828_s1 + $0x284] ss:$16 sps:$4 sm:$0xff]   ;;  %v2096_v29 = vld [vmem:[%s2828_s1 + $0x28c] ss:$16 sps:$4 sm:$0xff]  }
  0x3a   : > { %v2091_v30 = vld [vmem:[%s2828_s1 + $0x280] ss:$16 sps:$4 sm:$0xff]   ;;  %v2106_v39 = vld [vmem:[%s2828_s1 + $0x2c8] ss:$16 sps:$4 sm:$0xff]   ;;  %v2111_v40 = vld [vmem:[%s2828_s1 + $0x2e4] ss:$16 sps:$4 sm:$0xff]  }
  0x3b   : > { %923 = vmatpush1.bf16.msra.mxu0 %v2017_v31  ;;  %1005 = vmatpush1.bf16.msra.mxu1 %v2018_v32  ;;  %v2094_v31 = vld [vmem:[%s2828_s1 + $0x288] ss:$16 sps:$4 sm:$0xff]   ;;  %v2099_v32 = vld [vmem:[%s2828_s1 + $0x2a4] ss:$16 sps:$4 sm:$0xff]   ;;  %v2114_v41 = vld [vmem:[%s2828_s1 + $0x2ec] ss:$16 sps:$4 sm:$0xff]  }
  0x3c   : > { %924 = vmatprep.subr.bf16.mxu0 %v2019_v33  ;;  %1006 = vmatprep.subr.bf16.mxu1 %v2021_v34  ;;  %v2102_v33 = vld [vmem:[%s2828_s1 + $0x2ac] ss:$16 sps:$4 sm:$0xff]   ;;  %v2097_v34 = vld [vmem:[%s2828_s1 + $0x2a0] ss:$16 sps:$4 sm:$0xff]   ;;  %s1623_s29 = sshll.u32 %s269_s20, 4  ;;  %s2838_s28 = sand.u32 1, %s2209_s25   ;;  %s2782_s29 = int_to_ptr.vmem [resolvable:$true] %s1623_s29 }
  0x3d   : > { %v2120_v52 = vld [vmem:[%s2830_s3 + $0x8] sm:$0xff]   ;;  %v2125_v56 = vld [vmem:[%s2830_s3 + $0xd0] sm:$0xff]   ;;  %v2128_v59 = vld [vmem:[%s2830_s3 + $0x18] sm:$0xff]   ;;  %s1610_s15 = scalar_lea.sflag [#allocation6], %s2838_s28  ;;  %s2155_s16 = scalar_lea.vmem %s2782_s29, 32 }
  0x3e   : > { %v2122_v53 = vld [vmem:[%s2830_s3 + $0x88] sm:$0xff]   ;;  %p2156_p12 = scmp.ne.s32.totalorder %s2782_s29, %s2155_s16  ;;  %s2226_s17 = smov [#allocation5]  }
  0x3f   : > { %925 = vmatpush1.bf16.msra.mxu0 %v2023_v35  ;;  %1007 = vmatpush1.bf16.msra.mxu1 %v2024_v36  ;;  %v2100_v35 = vld [vmem:[%s2828_s1 + $0x2a8] ss:$16 sps:$4 sm:$0xff]   ;;  %v2105_v36 = vld [vmem:[%s2828_s1 + $0x2c4] ss:$16 sps:$4 sm:$0xff]   ;;  %s2159_s18 = sshll.u32 %s2226_s17, 4  ;;  %s2160_s18 = int_to_ptr.vmem [resolvable:$false] %s2159_s18 }
  0x40   : > { %926 = vmatprep.subr.bf16.mxu0 %v2025_v37  ;;  %1008 = vmatprep.subr.bf16.mxu1 %v2027_v38  ;;  %v2108_v37 = vld [vmem:[%s2828_s1 + $0x2cc] ss:$16 sps:$4 sm:$0xff]   ;;  %v2103_v38 = vld [vmem:[%s2828_s1 + $0x2c0] ss:$16 sps:$4 sm:$0xff]   ;;  %p2157_p13 = pnand %p2156_p12, %p2305_p5  ;;  %s2161_s19 = scalar_lea.vmem %s2160_s18, 64 }
  0x41   : > { %p2162_p1 = scmp.lt.s32.totalorder %s2782_s29, %s2160_s18  ;;  %p2163_p2 = scmp.lt.s32.totalorder %s2161_s19, %s2155_s16 }
  0x42   : > { %p2158_p0 = pneg %p2157_p13 }
  0x43   : > { %927 = vmatpush1.bf16.msra.mxu0 %v2029_v42  ;;  %1009 = vmatpush1.bf16.msra.mxu1 %v2030_v43  ;;  %v2109_v42 = vld [vmem:[%s2828_s1 + $0x2e0] ss:$16 sps:$4 sm:$0xff]   ;;  %v2112_v43 = vld [vmem:[%s2828_s1 + $0x2e8] ss:$16 sps:$4 sm:$0xff]   ;;  %p2164_p3 = por %p2163_p2, %p2162_p1 }
  0x44   : > { %928 = vmatprep.subr.bf16.mxu0 %v2031_v44  ;;  %1010 = vmatprep.subr.bf16.mxu1 %v2033_v45  ;;  %v2115_v44 = vld [vmem:[%s2830_s3 + $0x40] sm:$0xff]  }
  0x45   : > { %v2117_v45 = vld [vmem:[%s2830_s3 + $0xc0] sm:$0xff]   ;;  %p2165_p4 = pnand %p2164_p3, %p2158_p0 }
  0x47   : > { %929 = vmatpush1.bf16.msra.mxu0 %v2035_v48  ;;  %1011 = vmatpush1.bf16.msra.mxu1 %v2036_v49  ;;  %v2116_v48 = vld [vmem:[%s2830_s3] sm:$0xff]  }
  0x48   : > { %930 = vmatprep.subr.bf16.mxu0 %v2037_v50  ;;  %1012 = vmatprep.subr.bf16.mxu1 %v2039_v51  ;;  %v2118_v49 = vld [vmem:[%s2830_s3 + $0x80] sm:$0xff]   ;;  %v2119_v50 = vld [vmem:[%s2830_s3 + $0x48] sm:$0xff]  }
  0x49   : > { %v2121_v51 = vld [vmem:[%s2830_s3 + $0xc8] sm:$0xff]  }
  0x4b   : > { %931 = vmatpush1.bf16.msra.mxu0 %v2041_v54  ;;  %1013 = vmatpush1.bf16.msra.mxu1 %v2042_v55  ;;  %v2123_v54 = vld [vmem:[%s2830_s3 + $0x50] sm:$0xff]  }
  0x4c   : > { %932 = vmatprep.subr.bf16.mxu0 %v2043_v57  ;;  %1014 = vmatprep.subr.bf16.mxu1 %v2045_v58  ;;  %v2124_v55 = vld [vmem:[%s2830_s3 + $0x10] sm:$0xff]   ;;  %v2127_v58 = vld [vmem:[%s2830_s3 + $0x58] sm:$0xff]  }
  0x4d   : > { %v2126_v57 = vld [vmem:[%s2830_s3 + $0x90] sm:$0xff]  }
  0x4f   : > { %933 = vmatpush1.bf16.msra.mxu0 %v2047_v60  ;;  %1015 = vmatpush1.bf16.msra.mxu1 %v2048_v61  ;;  %v2129_v60 = vld [vmem:[%s2830_s3 + $0xd8] sm:$0xff]  }
  0x50   : > { %934 = vmatprep.subr.bf16.mxu0 %v2049_v62  ;;  %1016 = vmatprep.subr.bf16.mxu1 %v2051_v63  ;;  %v2130_v61 = vld [vmem:[%s2830_s3 + $0x98] sm:$0xff]   ;;  %v2131_v62 = vld [vmem:[%s2830_s3 + $0x60] sm:$0xff]  }
  0x51   : > { %v2132_v63 = vld [vmem:[%s2830_s3 + $0x20] sm:$0xff]  }
  0x53   : > { %935 = vmatpush1.bf16.msra.mxu0 %v2053_v0  ;;  %1017 = vmatpush1.bf16.msra.mxu1 %v2054_v1  ;;  %v2133_v0 = vld [vmem:[%s2830_s3 + $0xe0] sm:$0xff]  }
  0x54   : > { %936 = vmatprep.subr.bf16.mxu0 %v2055_v2  ;;  %1018 = vmatprep.subr.bf16.mxu1 %v2057_v3  ;;  %v2134_v1 = vld [vmem:[%s2830_s3 + $0xa0] sm:$0xff]   ;;  %v2135_v2 = vld [vmem:[%s2830_s3 + $0x68] sm:$0xff]  }
  0x55   : > { %v2136_v3 = vld [vmem:[%s2830_s3 + $0x28] sm:$0xff]  }
  0x57   : > { %937 = vmatpush1.bf16.msra.mxu0 %v2059_v4  ;;  %1019 = vmatpush1.bf16.msra.mxu1 %v2060_v5  ;;  %v2137_v4 = vld [vmem:[%s2830_s3 + $0xe8] sm:$0xff]  }
  0x58   : > { %938 = vmatprep.subr.bf16.mxu0 %v2061_v6  ;;  %1020 = vmatprep.subr.bf16.mxu1 %v2063_v7  ;;  %v2138_v5 = vld [vmem:[%s2830_s3 + $0xa8] sm:$0xff]   ;;  %v2139_v6 = vld [vmem:[%s2830_s3 + $0x70] sm:$0xff]  }
  0x59   : > { %v2141_v7 = vld [vmem:[%s2830_s3 + $0xf0] sm:$0xff]  }
  0x5b   : > { %939 = vmatpush1.bf16.msra.mxu0 %v2065_v8  ;;  %1021 = vmatpush1.bf16.msra.mxu1 %v2066_v9  ;;  %v2140_v8 = vld [vmem:[%s2830_s3 + $0x30] sm:$0xff]   ;;  %v2143_v9 = vld [vmem:[%s2830_s3 + $0x78] sm:$0xff]  }
  0x5c   : > { %949 = vmatprep.subr.bf16.mxu0 %v2069_v10  ;;  %1031 = vmatprep.subr.bf16.mxu1 %v2072_v11  ;;  %v2142_v10 = vld [vmem:[%s2830_s3 + $0xb0] sm:$0xff]   ;;  %v2145_v11 = vld [vmem:[%s2830_s3 + $0xf8] sm:$0xff]  }
  0x5e   : > { %941 = vmatmul.mubr.bf16.vlgmr.msra.gmra.mrb[0].mxu0 %v2537_v14  ;;  %1023 = vmatmul.mubr.bf16.vlgmr.msra.gmra.mrb[0].mxu1 %v2537_v14  ;;  %v2222_v14 = vmov 0.0  }
  0x5f   : > { %950 = vmatpush1.bf16.msra.mxu0 %v2067_v12  ;;  %1032 = vmatpush1.bf16.msra.mxu1 %v2070_v13  ;;  %v2144_v12 = vld [vmem:[%s2830_s3 + $0x38] sm:$0xff]  }
  0x60   : > { %951 = vmatprep.subr.bf16.mxu0 %v2075_v15  ;;  %1033 = vmatprep.subr.bf16.mxu1 %v2078_v16  ;;  %v2146_v13 = vld [vmem:[%s2830_s3 + $0xb8] sm:$0xff]   ;;  %v383_v15 = vsub.s32 0, %v2455_v46  ;;  %v391_v16 = vsub.s32 2, %v2455_v46 }
  0x61   : > { %981 = vmatprep.mubr.bf16.mxu0 %v2221_v21  ;;  %1063 = vmatprep.mubr.bf16.mxu1 %v2221_v21  ;;  %v395_v21 = vsub.s32 3, %v2455_v46 }
  0x63   : > { %952 = vmatpush1.bf16.msra.mxu0 %v2073_v17  ;;  %1034 = vmatpush1.bf16.msra.mxu1 %v2076_v18  ;;  %v379_v17 = vld [vmem:[%s2829_s2] sm:$0xf]  ;;  %v387_v18 = vsub.s32 1, %v2455_v46 }
  0x64   : > { %953 = vmatprep.subr.bf16.mxu0 %v2081_v19  ;;  %1035 = vmatprep.subr.bf16.mxu1 %v2084_v20  ;;  %v2223_v19 = vmov 1983009808  }
  0x65   : > { %v1084_v20 = vunpack.c.l.s4 %v2223_v19 }
  0x67   : > { %954 = vmatpush1.bf16.msra.mxu0 %v2079_v22  ;;  %1036 = vmatpush1.bf16.msra.mxu1 %v2082_v23  ;;  %v384_v22 = vrot.slane %v379_v17, %v383_v15  ;;  %v392_v23 = vrot.slane %v379_v17, %v391_v16 }
  0x68   : > { %955 = vmatprep.subr.bf16.mxu0 %v2087_v24  ;;  %1037 = vmatprep.subr.bf16.mxu1 %v2090_v25  ;;  %v388_v24 = vrot.slane %v379_v17, %v387_v18  ;;  %v1085_v25 = vunpack.c.0.s8 %v1084_v20 }
  0x6b   : > { %956 = vmatpush1.bf16.msra.mxu0 %v2085_v26  ;;  %1038 = vmatpush1.bf16.msra.mxu1 %v2088_v27  ;;  %v396_v26 = vrot.slane %v379_v17, %v395_v21 }
  0x6c   : > { %957 = vmatprep.subr.bf16.mxu0 %v2093_v28  ;;  %1039 = vmatprep.subr.bf16.mxu1 %v2096_v29 }
  0x6f   : > { %958 = vmatpush1.bf16.msra.mxu0 %v2091_v30  ;;  %1040 = vmatpush1.bf16.msra.mxu1 %v2094_v31 }
  0x70   : > { %959 = vmatprep.subr.bf16.mxu0 %v2099_v32  ;;  %1041 = vmatprep.subr.bf16.mxu1 %v2102_v33 }
  0x73   : > { %960 = vmatpush1.bf16.msra.mxu0 %v2097_v34  ;;  %1042 = vmatpush1.bf16.msra.mxu1 %v2100_v35  ;;  %v1088_v34 = vsub.s32 %v1085_v25, %v2455_v46  ;;  %v1822_v25 = vld [vmem:[%s2833_s6] ss:$0 sm:$0xff] }
  0x74   : > { %961 = vmatprep.subr.bf16.mxu0 %v2105_v36  ;;  %1043 = vmatprep.subr.bf16.mxu1 %v2108_v37 }
  0x77   : > { %962 = vmatpush1.bf16.msra.mxu0 %v2103_v38  ;;  %1044 = vmatpush1.bf16.msra.mxu1 %v2106_v39  ;;  %v1072_v38 = vld [vmem:[#allocation2] sm:$0xff] }
  0x78   : > { %963 = vmatprep.subr.bf16.mxu0 %v2111_v40  ;;  %1045 = vmatprep.subr.bf16.mxu1 %v2114_v41  ;;  %vm1073_vm0 = vcmp.gt.f32.partialorder %v1072_v38, 1.0 }
  0x7b   : > { %964 = vmatpush1.bf16.msra.mxu0 %v2109_v42  ;;  %1046 = vmatpush1.bf16.msra.mxu1 %v2112_v43 }
  0x7c   : > { %1839 = vmatprep.subr.bf16.mxu0 %v2115_v44  ;;  %1861 = vmatprep.subr.bf16.mxu1 %v2117_v45  ;;  %v1076_v44 = vmul.f32 0.95, %v1072_v38 }
  0x7e   : > { %982 = vmatmul.mubr.bf16.vlgmr.msra.gmra.mrb[0].mxu0 %v424_v47  ;;  %1064 = vmatmul.mubr.bf16.vlgmr.msra.gmra.mrb[0].mxu1 %v424_v47 }
  0x7f   : > { %1840 = vmatpush3.bf16.msra.mxu0 %v2116_v48  ;;  %1862 = vmatpush3.bf16.msra.mxu1 %v2118_v49  ;;  %v1785_v48 = vsel %vm1073_vm0, 1.0, %v2222_v14 }
  0x80   : > { %1841 = vmatprep.subr.bf16.mxu0 %v2119_v50  ;;  %1863 = vmatprep.subr.bf16.mxu1 %v2121_v51 }
  0x83   : > { %1842 = vmatpush3.bf16.msra.mxu0 %v2120_v52  ;;  %1864 = vmatpush3.bf16.msra.mxu1 %v2122_v53 }
  0x84   : > { %1843 = vmatprep.subr.bf16.mxu0 %v2123_v54  ;;  %1865 = vmatprep.subr.bf16.mxu1 %v2125_v56 }
  0x87   : > { %1844 = vmatpush3.bf16.msra.mxu0 %v2124_v55  ;;  %1866 = vmatpush3.bf16.msra.mxu1 %v2126_v57  ;;  %v2147_v57 = vld [vmem:[%s2832_s5] sm:$0xff]  }
  0x88   : > { %1845 = vmatprep.subr.bf16.mxu0 %v2127_v58  ;;  %1867 = vmatprep.subr.bf16.mxu1 %v2129_v60 }
  0x8b   : > { %1846 = vmatpush3.bf16.msra.mxu0 %v2128_v59  ;;  %1868 = vmatpush3.bf16.msra.mxu1 %v2130_v61  ;;  %v2148_v61 = vld [vmem:[%s2832_s5 + $0x8] sm:$0xff]  }
  0x8c   : > { %1847 = vmatprep.subr.bf16.mxu0 %v2131_v62  ;;  %1869 = vmatprep.subr.bf16.mxu1 %v2133_v0  ;;  %v2149_v62 = vld [vmem:[%s2832_s5 + $0x10] sm:$0xff]   ;;  %v2151_v0 = vld [vmem:[%s2832_s5 + $0x20] sm:$0xff]  }
  0x8f   : > { %1848 = vmatpush3.bf16.msra.mxu0 %v2132_v63  ;;  %1870 = vmatpush3.bf16.msra.mxu1 %v2134_v1  ;;  %v2150_v63 = vld [vmem:[%s2832_s5 + $0x18] sm:$0xff]   ;;  %v2152_v1 = vld [vmem:[%s2832_s5 + $0x28] sm:$0xff]  }
  0x90   : > { %1849 = vmatprep.subr.bf16.mxu0 %v2135_v2  ;;  %1871 = vmatprep.subr.bf16.mxu1 %v2137_v4  ;;  %v2153_v2 = vld [vmem:[%s2832_s5 + $0x30] sm:$0xff]  }
  0x93   : > { %1850 = vmatpush3.bf16.msra.mxu0 %v2136_v3  ;;  %1872 = vmatpush3.bf16.msra.mxu1 %v2138_v5  ;;  %v2154_v3 = vld [vmem:[%s2832_s5 + $0x38] sm:$0xff]   ;;  %v1787_v5 = vld [vmem:[%s2831_s4] ss:$0 sm:$0xff] }
  0x94   : > { %1851 = vmatprep.subr.bf16.mxu0 %v2139_v6  ;;  %1873 = vmatprep.subr.bf16.mxu1 %v2141_v7  ;;  %v1474_v7 = vld [vmem:[#allocation3] sm:$0x3] }
  0x95   : > { %vm1475_vm3 = vcmp.gt.f32.partialorder %v1474_v7, 1.0  ;;  %v1478_v16 = vmul.f32 0.95, %v1474_v7 }
  0x96   : > { %v1820_v20 = vsel %vm1475_vm3, 1.0, %v2222_v14 }
  0x97   : > { %1852 = vmatpush3.bf16.msra.mxu0 %v2140_v8  ;;  %1874 = vmatpush3.bf16.msra.mxu1 %v2142_v10 }
  0x98   : > { %1853 = vmatprep.subr.bf16.mxu0 %v2143_v9  ;;  %1875 = vmatprep.subr.bf16.mxu1 %v2145_v11 }
  0x9b   : > { %1854 = vmatpush3.bf16.msra.mxu0 %v2144_v12  ;;  %1876 = vmatpush3.bf16.msra.mxu1 %v2146_v13 }
  0x9c   : > { %1892 = vmatprep.subr.bf16.mxu0 %v2222_v14 }
 0x151   : > { %v983_v27 = vpop.f32.mrb[0].mxu0  ;;  %v1065_v28 = vpop.f32.mrb[0].mxu1 }
 0x152   : > { %v1912_v29 = vadd.f32 %v983_v27, %v384_v22  ;;  %v1914_v30 = vadd.f32 %v1065_v28, %v392_v23  ;;  %v985_v31 = vpop.f32.mrb[1].mxu0  ;;  %v1067_v32 = vpop.f32.mrb[1].mxu1  ;;  %v2225_v23 = vmov 1.0|1.0  }
 0x153   : > { %v1913_v33 = vadd.f32 %v985_v31, %v388_v24  ;;  %v1915_v35 = vadd.f32 %v1067_v32, %v396_v26  ;;  %v987_v36 = vpop.f32.mrb[2].mxu0  ;;  %v1069_v37 = vpop.f32.mrb[2].mxu1  ;;  %v1597_v24 = vld [vmem:[#allocation4] sm:$0x3] }
 0x154   : > { %v988_v39 = vpop.f32.mrb[3].mxu0  ;;  %v1070_v40 = vpop.f32.mrb[3].mxu1  ;;  %vm1598_vm6 = vcmp.gt.f32.partialorder %v1597_v24, 1.0  ;;  %v1601_v26 = vmul.f32 0.95, %v1597_v24 }
 0x155   : > { %v1081_v41 = vcombine.low %v1912_v29, %v1913_v33  ;;  %v1082_v42 = vcombine.low %v1914_v30, %v1915_v35  ;;  %v1833_v30 = vsel %vm1598_vm6, 1.0, %v2222_v14 }
 0x157   : > { %v1089_v43 = vrot.slane %v1081_v41, %v1088_v34  ;;  %v1096_v45 = vrot.slane %v1082_v42, %v1088_v34 }
 0x159   : > { %v1097_v47 = vcombine.low %v1089_v43, %v1096_v45 }
 0x15b   : > { %v1099_v49 = vadd.f32 %v1097_v47, %v1076_v44 }
 0x15d   : > { %v1100_v50 = vsub.f32 %v1099_v49, %v1785_v48 }
 0x15f   : > { %vm1101_vm1 = vcmp.gt.f32.partialorder %v1100_v50, 1.0  ;;  %1102 = vst [vmem:[#allocation2] sm:$0xff] %v1100_v50 }
 0x160   : > { %v1786_v46 = vsel %vm1101_vm1, 1.0, %v2222_v14 }
 0x161   : > { %v1113_v51 = vrot.slane %v1786_v46, %v1088_v34  ;;  %v1106_v52 = vcombine.high %v1786_v46, %v1786_v46 }
 0x163   : > { %v1121_v53 = vcombine.high %v1113_v51, %v1113_v51  ;;  %v1120_v54 = vrot.slane %v1106_v52, %v1088_v34  ;;  %v1127_v58 = vpack.c.bf16 %v1113_v51, %v1113_v51 }
 0x165   : > { %v1128_v55 = vpack.c.bf16 %v1121_v53, %v1121_v53  ;;  %v1122_v56 = vcombine.high %v1120_v54, %v1120_v54  ;;  %v1129_v60 = vpack.c.bf16 %v1120_v54, %v1120_v54 }
 0x167   : > { %1426 = vmatprep.mubr.bf16.mxu0 %v1128_v55  ;;  %v1130_v59 = vpack.c.bf16 %v1122_v56, %v1122_v56 }
 0x168   : > { %1427 = vmatmul.mubr.bf16.vlgmr.msra.gmra.mrb[4].mxu0 %v1127_v58 }
 0x169   : > { %1466 = vmatprep.mubr.bf16.mxu1 %v1130_v59  ;;  %1893 = vmatpush3.bf16.msra.mxu0 %v2147_v57 }
 0x16a   : > { %1467 = vmatmul.mubr.bf16.vlgmr.msra.gmra.mrb[4].mxu1 %v1129_v60  ;;  %1894 = vmatprep.subr.bf16.mxu0 %v2222_v14 }
 0x16b   : > { %1908 = vmatprep.mubr.msk.bf16.mxu0 %vm2224_vm2, %v2222_v14 }
 0x16d   : > { %1895 = vmatpush3.bf16.msra.mxu0 %v2148_v61 }
 0x16e   : > { %1896 = vmatprep.subr.bf16.mxu0 %v2222_v14 }
 0x171   : > { %1897 = vmatpush3.bf16.msra.mxu0 %v2149_v62 }
 0x172   : > { %1898 = vmatprep.subr.bf16.mxu0 %v2222_v14 }
 0x175   : > { %1899 = vmatpush3.bf16.msra.mxu0 %v2150_v63 }
 0x176   : > { %1900 = vmatprep.subr.bf16.mxu0 %v2222_v14 }
 0x179   : > { %1901 = vmatpush3.bf16.msra.mxu0 %v2151_v0 }
 0x17a   : > { %1902 = vmatprep.subr.bf16.mxu0 %v2222_v14 }
 0x17d   : > { %1903 = vmatpush3.bf16.msra.mxu0 %v2152_v1 }
 0x17e   : > { %1904 = vmatprep.subr.bf16.mxu0 %v2222_v14 }
 0x181   : > { %1905 = vmatpush3.bf16.msra.mxu0 %v2153_v2 }
 0x182   : > { %1906 = vmatprep.subr.bf16.mxu0 %v2222_v14 }
 0x185   : > { %1907 = vmatpush3.bf16.msra.mxu0 %v2154_v3 }
 0x23b   : > { %v1855_v4 = vpop.f32.mrb[4].mxu0 }
 0x23c   : > { %v1856_v6 = vpop.f32.mrb[5].mxu0 }
 0x23d   : > { %v1857_v8 = vadd.f32 %v1856_v6, %v1855_v4  ;;  %v1858_v9 = vpop.f32.mrb[6].mxu0  ;;  %v1877_v10 = vpop.f32.mrb[4].mxu1 }
 0x23e   : > { %v1859_v11 = vpop.f32.mrb[7].mxu0  ;;  %v1878_v12 = vpop.f32.mrb[5].mxu1 }
 0x23f   : > { %v1429_v13 = vadd.f32 %v1857_v8, %v1787_v5  ;;  %v1879_v15 = vadd.f32 %v1878_v12, %v1877_v10  ;;  %v1880_v17 = vpop.f32.mrb[6].mxu1 }
 0x240   : > { %v1881_v18 = vpop.f32.mrb[7].mxu1 }
 0x241   : > { %v1469_v19 = vadd.f32 %v1879_v15, %v1429_v13 }
 0x243   : > { %v1479_v21 = vadd.f32 %v1478_v16, %v1469_v19 }
 0x245   : > { %v1480_v22 = vsub.f32 %v1479_v21, %v1820_v20 }
 0x247   : > { %1482 = vst [vmem:[#allocation3] sm:$0x3] %v1480_v22  ;;  %vm1481_vm4 = vcmp.gt.f32.partialorder %v1480_v22, 1.0 }
 0x248   : > { %vm1831_vm5 = vmpackc.low %vm1481_vm4, %vm1481_vm4 }
 0x249   : > { %1909 = vmatmul.mubr.msk.bf16.vlgmr.msra.gmra.mrb[8].mxu0 %vm1831_vm5, %v2225_v23 }
 0x31c   : > { %v1591_v27 = vpop.f32.mrb[8].mxu0 }
 0x31d   : > { %v1592_v28 = vadd.f32 %v1822_v25, %v1591_v27  ;;  %v1910_v29 = vpop.f32.mrb[9].mxu0 }
 0x31e   : > { %v1594_v31 = vpop.f32.mrb[10].mxu0 }
 0x31f   : > { %v1602_v32 = vadd.f32 %v1601_v26, %v1592_v28  ;;  %v1911_v33 = vpop.f32.mrb[11].mxu0 }
 0x321   : > { %v1603_v34 = vsub.f32 %v1602_v32, %v1833_v30 }
 0x323   : > { %1607 = vst [vmem:[#allocation4] sm:$0x3] %v1603_v34  ;;  %vm1604_vm7 = vcmp.gt.f32.partialorder %v1603_v34, 1.0 }
 0x324   : > { %v1834_v35 = vsel %vm1604_vm7, 1.0, %v2222_v14 }
 0x325   : > { %1608 = vst [vmem:[%s269_s20] sm:$0x3] %v1834_v35 }
 0x326   : > { %2168 = shalt.err (!%p2165_p4)
}
 0x327   : > { %s2169_s14 = scalar_lea.hbm %s2780_s9, 32  ;;  %s2173_s22 = scalar_lea.hbm %s2834_s7, 160 }
 0x328   : > { %p2170_p7 = scmp.ne.s32.totalorder %s2780_s9, %s2169_s14  ;;  %p2174_p10 = scmp.lt.u32.totalorder %s2780_s9, %s2834_s7 }
 0x329   : > { %p2175_p11 = scmp.lt.u32.totalorder %s2173_s22, %s2169_s14  ;;  %p2177_p13 = scmp.lt.u32.totalorder %s2169_s14, %s2780_s9 }
 0x32a   : > { %p2171_p8 = pnand %p2170_p7, %p2305_p5 }
 0x32b   : > { %p2176_p12 = por %p2175_p11, %p2174_p10 }
 0x32c   : > { %p2172_p9 = pneg %p2171_p8 }
 0x32d   : > { %p2178_p0 = por %p2177_p13, %p2176_p12 }
 0x32f   : > { %p2179_p1 = pnand %p2178_p0, %p2172_p9 }
 0x331   : > { %2182 = shalt.err (!%p2179_p1)
}
 0x332   : > { %1925 = dma.vmem_to_hbm [thread:$0]  (%p2305_p5), %s2782_s29, 32, %s2780_s9, %s1610_s15  }
 0x333 PF: > { %p1931_p2 = scmp.ge.s32.totalorder %s2217_s27, 2  ;;  %s1635_s8 = sand.u32 1, %s2205_s24  }
 0x334   : > { %s1636_s28 = scalar_lea.sflag [#allocation6], %s1635_s8 }
 0x335   : > { %p1928_p3 = pnand %p1931_p2, %p2309_p6 }
 0x337   : > { %2200 = dma.done.wait (!%p1928_p3), %s1636_s28, 32  }
 0x338   : > { %2202 = vsyncadd (!%p1928_p3), %s1636_s28, 4294967264  ;;  %p17_p4 = scmp.ge.s32.totalorder %s2292_s30, 7   ;;  %s2839_s24 = smov %s2209_s25 }
 0x339   : > { %s2840_s25 = smov %s2213_s26  ;;  %s2841_s26 = smov %s2303_s10 }
 0x33a   : > { %s2842_s27 = smov %s2292_s30  ;;  %19 = sbr.rel (!%p17_p4) target bundleno = 3 (0x3), region = 87 }
 0x341   :  { %1641 = vsyncpa [#allocation6], 1 }
 0x342   :  { %1643 = vsyncpa [#allocation6 + $0x1], 1 }

</bundles_post_ra>
